<compile_context>
chip_gen: v7x
topology: tpu7x:2x2x1
jax: 0.10.0
libtpu: 0.0.40
codegen_flags: <defaults>
</compile_context>

<pallas_src>
import functools

import jax
import jax.numpy as jnp
from jax.experimental import pallas as pl
from jax.experimental.pallas import tpu as pltpu


def _round_up(n, m):
    return ((n + m - 1) // m) * m


# ----------------------------------------------------------------------------
# Pallas kernel: per batch-block grid step
#   3x3 conv as 9 shifted tap matmuls (bf16 -> f32) -> +bias -> ReLU
#   -> per-sample GAP sum -> classifier matmul (scale folded into weights)
#   -> +bias -> lane-dense store
# ----------------------------------------------------------------------------
def image_classifier_kernel(x_ref, wconv_ref, bconv_ref, wcls_ref, bcls_ref,
                            out_ref, *, H, W, C):
    # x_ref    : (B_TILE, H+2, W+2, C)  bf16 halo-padded NHWC images
    # wconv_ref: (9, C, F_PAD)          bf16 conv weights, tap-major
    # bconv_ref: (1, F_PAD)             f32  conv bias (zero-padded cols)
    # wcls_ref : (F_PAD, T_PAD)         bf16 classifier weights * 1/(H*W)
    # bcls_ref : (1, T_PAD)             f32  classifier bias (zero-padded)
    # out_ref  : (B_TILE, T_PAD)        f32  logits
    bt = x_ref.shape[0]
    f_pad = wconv_ref.shape[-1]

    x = x_ref[...]                                       # (bt, H+2, W+2, C) bf16

    # 3x3 'same' conv as 9 shifted tap matmuls (K = C per tap), f32 accumulation.
    conv = None
    for t in range(9):
        di, dj = t // 3, t % 3
        tap = x[:, di:di + H, dj:dj + W, :]              # (bt, H, W, C)
        tap2d = tap.reshape(bt * H * W, C)               # lane dim (C) preserved
        part = jnp.dot(tap2d, wconv_ref[t],
                       preferred_element_type=jnp.float32)   # (bt*H*W, F_PAD)
        conv = part if conv is None else conv + part

    conv = jnp.maximum(conv + bconv_ref[...], 0.0)       # f32 bias + ReLU

    # global-average-pool: per-sample sum over H*W (XLU reduce); the 1/(H*W)
    # scale is folded into wcls in the wrapper.
    feats = jnp.sum(conv.reshape(bt, H * W, f_pad), axis=1)   # (bt, F_PAD) f32

    logits = jnp.dot(feats, wcls_ref[...].astype(jnp.float32),
                     preferred_element_type=jnp.float32)      # (bt, T_PAD)
    out_ref[...] = logits + bcls_ref[...]


# ----------------------------------------------------------------------------
# Glue: layout conversion, halo padding, weight packing
# ----------------------------------------------------------------------------
def image_classifier_forward(x_nchw, params, *, b_tile=8,
                             vmem_limit_bytes=32 * 1024 * 1024):
    """Forward pass matching PretrainedImageClassifier.forward(x) semantics.

    x_nchw: (B, Cin, H, W) float32 (PyTorch NCHW convention)
    returns: (B, num_cls) float32 logits
    """
    x_nhwc = jnp.transpose(x_nchw, (0, 2, 3, 1)).astype(jnp.float32)
    B, H, W, C = x_nhwc.shape

    conv_w = params["conv_w"]          # (F, Cin, 3, 3)   torch OIHW
    conv_b = params["conv_b"]          # (F,)
    cls_w = params["cls_w"]            # (T, F)           torch layout
    cls_b = params["cls_b"]            # (T,)

    F = conv_w.shape[0]
    T = cls_w.shape[0]
    F_PAD = _round_up(F, 128)          # lane-dense feature dim for MXU / stores
    T_PAD = _round_up(T, 128)          # lane-dense logits store
    hw = H * W

    B_TILE = min(b_tile, B)
    assert B % B_TILE == 0, "batch must be divisible by the batch tile"

    # Halo-padded NHWC image in bf16: only inflation is the 1-pixel halo
    # (~(H+2)(W+2)/(H W)), replacing the old 9x im2col patches array.
    x_pad = jnp.pad(x_nhwc, ((0, 0), (1, 1), (1, 1), (0, 0))).astype(jnp.bfloat16)

    # (F, C, 3, 3) -> (3, 3, C, F) -> (9, C, F_PAD); zero-padded feature cols
    # (bias also zero-padded, so ReLU keeps those columns exactly 0).
    wconv = jnp.transpose(conv_w, (2, 3, 1, 0)).reshape(9, C, F)
    wconv = jnp.pad(wconv, ((0, 0), (0, 0), (0, F_PAD - F))).astype(jnp.bfloat16)
    bconv = jnp.pad(conv_b.reshape(1, F),
                    ((0, 0), (0, F_PAD - F))).astype(jnp.float32)
    # Classifier weights: transpose, fold the GAP 1/(H*W) scale in, store bf16
    # (halves HBM/VMEM bytes); zero-padded rows/cols contribute nothing.
    wcls = jnp.pad(cls_w.T * (1.0 / hw),
                   ((0, F_PAD - F), (0, T_PAD - T))).astype(jnp.bfloat16)
    bcls = jnp.pad(cls_b.reshape(1, T),
                   ((0, 0), (0, T_PAD - T))).astype(jnp.float32)

    # Per-step VMEM working set: double-buffered activation/out blocks,
    # single-buffered weights, f32 conv intermediate.  Must stay well inside
    # the scoped limit on every generation (v5e default 16 MiB, v7x 64 MiB
    # physical).  See TODO(synk) above for the row-block streaming fallback.
    step_bytes = (
        2 * B_TILE * (H + 2) * (W + 2) * C * 2       # x blocks (bf16, 2 bufs)
        + wconv.size * 2 + bconv.size * 4 + wcls.size * 2 + bcls.size * 4
        + B_TILE * hw * F_PAD * 4                    # conv intermediate (f32)
        + 2 * B_TILE * T_PAD * 4)                    # out blocks (f32, 2 bufs)
    assert step_bytes < vmem_limit_bytes, (
        f"per-step working set {step_bytes} B exceeds the VMEM budget "
        f"{vmem_limit_bytes} B; shrink B_TILE or stream row blocks")

    kernel = functools.partial(image_classifier_kernel, H=H, W=W, C=C)

    flops = 2 * B * hw * 9 * C * F_PAD + 2 * B * F_PAD * T_PAD
    bytes_accessed = (x_pad.size * 2 + wconv.size * 2 + bconv.size * 4
                      + wcls.size * 2 + bcls.size * 4 + B * T_PAD * 4)

    const = dict(pipeline_mode=pl.Buffered(1))   # block index never changes

    out = pl.pallas_call(
        kernel,
        out_shape=jax.ShapeDtypeStruct((B, T_PAD), jnp.float32),
        grid=(B // B_TILE,),
        in_specs=[
            # batch block of halo-padded images (double-buffered by default)
            pl.BlockSpec((B_TILE, H + 2, W + 2, C), lambda b: (b, 0, 0, 0)),
            # weights / biases: full-resident, single-buffered
            pl.BlockSpec((9, C, F_PAD), lambda b: (0, 0, 0), **const),
            pl.BlockSpec((1, F_PAD), lambda b: (0, 0), **const),
            pl.BlockSpec((F_PAD, T_PAD), lambda b: (0, 0), **const),
            pl.BlockSpec((1, T_PAD), lambda b: (0, 0), **const),
        ],
        out_specs=pl.BlockSpec((B_TILE, T_PAD), lambda b: (b, 0)),
        compiler_params=pltpu.CompilerParams(
            dimension_semantics=("parallel",),
            vmem_limit_bytes=vmem_limit_bytes),
        cost_estimate=pl.CostEstimate(flops=flops, transcendentals=0,
                                      bytes_accessed=bytes_accessed),
    )(x_pad, wconv, bconv, wcls, bcls)

    return out[:, :T]


# ----------------------------------------------------------------------------
# Pure-JAX reference (same math; mirrors the kernel's bf16-rounded operands)
# ----------------------------------------------------------------------------
def _reference_forward(x_nchw, params):
    x = jnp.transpose(x_nchw, (0, 2, 3, 1)).astype(jnp.float32)
    B, H, W, C = x.shape
    xb = x.astype(jnp.bfloat16).astype(jnp.float32)
    w_hwio = jnp.transpose(params["conv_w"], (2, 3, 1, 0))
    w_hwio = w_hwio.astype(jnp.bfloat16).astype(jnp.float32)
    conv = jax.lax.conv_general_dilated(
        xb, w_hwio, window_strides=(1, 1), padding="SAME",
        dimension_numbers=("NHWC", "HWIO", "NHWC"),
        precision=jax.lax.Precision.HIGHEST)
    conv = jnp.maximum(conv + params["conv_b"][None, None, None, :], 0.0)
    feats_sum = conv.reshape(B, H * W, -1).sum(axis=1)          # (B, F)
    wcls_s = (params["cls_w"].T * (1.0 / (H * W)))
    wcls_s = wcls_s.astype(jnp.bfloat16).astype(jnp.float32)
    logits = jnp.dot(feats_sum, wcls_s, precision=jax.lax.Precision.HIGHEST)
    return logits + params["cls_b"][None, :]


# ----------------------------------------------------------------------------
# Main
# ----------------------------------------------------------------------------
if __name__ == "__main__":
    # Small synthetic config consistent with the module's forward:
    #   batch=2, in_channels=4, spatial 16x16, feature_dim=32, num_cls=8
    B, Cin, H, W = 2, 4, 16, 16
    feature_dim = 32
    num_cls = 8

    key = jax.random.PRNGKey(0)
    k_x, k_cw, k_cb, k_lw, k_lb = jax.random.split(key, 5)

    x = jax.random.normal(k_x, (B, Cin, H, W), dtype=jnp.float32)

    params = {
        # synthetic backbone conv: (F, Cin, 3, 3) torch layout
        "conv_w": jax.random.normal(k_cw, (feature_dim, Cin, 3, 3),
                                    dtype=jnp.float32) * 0.1,
        "conv_b": jax.random.normal(k_cb, (feature_dim,), dtype=jnp.float32) * 0.1,
        # nn.Linear(feature_dim, num_cls): weight (T, F), bias (T,)
        "cls_w": jax.random.normal(k_lw, (num_cls, feature_dim),
                                   dtype=jnp.float32) * 0.1,
        "cls_b": jax.random.normal(k_lb, (num_cls,), dtype=jnp.float32) * 0.1,
    }

    out = image_classifier_forward(x, params)
    out = jax.block_until_ready(out)

    ref = _reference_forward(x, params)
    assert out.shape == (B, num_cls)
    assert jnp.allclose(out, ref, atol=2e-2, rtol=2e-2), "mismatch vs reference"

    print("KERNEL_OK")
</pallas_src>

<mosaic_0001>
module attributes {stable_mosaic.version = 11 : i64} {
  func.func @image_classifier_kernel(%arg0: i32, %arg1: memref<2x18x18x4xbf16, #tpu.memory_space<vmem>>, %arg2: memref<9x4x128xbf16, #tpu.memory_space<vmem>>, %arg3: memref<1x128xf32, #tpu.memory_space<vmem>>, %arg4: memref<128x128xbf16, #tpu.memory_space<vmem>>, %arg5: memref<1x128xf32, #tpu.memory_space<vmem>>, %arg6: memref<2x128xf32, #tpu.memory_space<vmem>>) attributes {dimension_semantics = [#tpu.dimension_semantics<parallel>], iteration_bounds = array<i64: 1>, scalar_prefetch = 0 : i64, scratch_operands = 0 : i64, tpu.core_type = #tpu.core_type<tc>, window_params = [{transform_indices = @transform_0, window_bounds = array<i64: 2, 18, 18, 4>}, {pipeline_mode = #tpu.pipeline_mode<synchronous>, transform_indices = @transform_1, window_bounds = array<i64: 9, 4, 128>}, {pipeline_mode = #tpu.pipeline_mode<synchronous>, transform_indices = @transform_2, window_bounds = array<i64: 1, 128>}, {pipeline_mode = #tpu.pipeline_mode<synchronous>, transform_indices = @transform_3, window_bounds = array<i64: 128, 128>}, {pipeline_mode = #tpu.pipeline_mode<synchronous>, transform_indices = @transform_4, window_bounds = array<i64: 1, 128>}, {transform_indices = @transform_5, window_bounds = array<i64: 2, 128>}]} {
    %c0 = arith.constant 0 : index
    %c0_0 = arith.constant 0 : index
    %c0_1 = arith.constant 0 : index
    %c0_2 = arith.constant 0 : index
    %0 = vector.load %arg1[%c0, %c0_0, %c0_1, %c0_2] : memref<2x18x18x4xbf16, #tpu.memory_space<vmem>>, vector<2x18x18x4xbf16>
    %1 = vector.extract_strided_slice %0 {offsets = [0, 0, 0, 0], sizes = [2, 16, 16, 4], strides = [1, 1, 1, 1]} : vector<2x18x18x4xbf16> to vector<2x16x16x4xbf16>
    %2 = vector.shape_cast %1 : vector<2x16x16x4xbf16> to vector<512x4xbf16>
    %c0_3 = arith.constant 0 : index
    %c0_4 = arith.constant 0 : index
    %c0_5 = arith.constant 0 : index
    %3 = vector.load %arg2[%c0_3, %c0_4, %c0_5] : memref<9x4x128xbf16, #tpu.memory_space<vmem>>, vector<1x4x128xbf16>
    %4 = vector.shape_cast %3 : vector<1x4x128xbf16> to vector<4x128xbf16>
    %cst = arith.constant dense<0.000000e+00> : vector<512x128xf32>
    %5 = tpu.matmul %2, %4, %cst {dimension_numbers = #tpu.dot_dimension_numbers<[1], [0], [0], [1], [0, 0, 1, 1], [], []>} : vector<512x4xbf16>, vector<4x128xbf16>, vector<512x128xf32> -> vector<512x128xf32>
    %6 = vector.extract_strided_slice %0 {offsets = [0, 0, 1, 0], sizes = [2, 16, 16, 4], strides = [1, 1, 1, 1]} : vector<2x18x18x4xbf16> to vector<2x16x16x4xbf16>
    %7 = vector.shape_cast %6 : vector<2x16x16x4xbf16> to vector<512x4xbf16>
    %c1 = arith.constant 1 : index
    %c0_6 = arith.constant 0 : index
    %c0_7 = arith.constant 0 : index
    %8 = vector.load %arg2[%c1, %c0_6, %c0_7] : memref<9x4x128xbf16, #tpu.memory_space<vmem>>, vector<1x4x128xbf16>
    %9 = vector.shape_cast %8 : vector<1x4x128xbf16> to vector<4x128xbf16>
    %cst_8 = arith.constant dense<0.000000e+00> : vector<512x128xf32>
    %10 = tpu.matmul %7, %9, %cst_8 {dimension_numbers = #tpu.dot_dimension_numbers<[1], [0], [0], [1], [0, 0, 1, 1], [], []>} : vector<512x4xbf16>, vector<4x128xbf16>, vector<512x128xf32> -> vector<512x128xf32>
    %11 = arith.addf %5, %10 : vector<512x128xf32>
    %12 = vector.extract_strided_slice %0 {offsets = [0, 0, 2, 0], sizes = [2, 16, 16, 4], strides = [1, 1, 1, 1]} : vector<2x18x18x4xbf16> to vector<2x16x16x4xbf16>
    %13 = vector.shape_cast %12 : vector<2x16x16x4xbf16> to vector<512x4xbf16>
    %c2 = arith.constant 2 : index
    %c0_9 = arith.constant 0 : index
    %c0_10 = arith.constant 0 : index
    %14 = vector.load %arg2[%c2, %c0_9, %c0_10] : memref<9x4x128xbf16, #tpu.memory_space<vmem>>, vector<1x4x128xbf16>
    %15 = vector.shape_cast %14 : vector<1x4x128xbf16> to vector<4x128xbf16>
    %cst_11 = arith.constant dense<0.000000e+00> : vector<512x128xf32>
    %16 = tpu.matmul %13, %15, %cst_11 {dimension_numbers = #tpu.dot_dimension_numbers<[1], [0], [0], [1], [0, 0, 1, 1], [], []>} : vector<512x4xbf16>, vector<4x128xbf16>, vector<512x128xf32> -> vector<512x128xf32>
    %17 = arith.addf %11, %16 : vector<512x128xf32>
    %18 = vector.extract_strided_slice %0 {offsets = [0, 1, 0, 0], sizes = [2, 16, 16, 4], strides = [1, 1, 1, 1]} : vector<2x18x18x4xbf16> to vector<2x16x16x4xbf16>
    %19 = vector.shape_cast %18 : vector<2x16x16x4xbf16> to vector<512x4xbf16>
    %c3 = arith.constant 3 : index
    %c0_12 = arith.constant 0 : index
    %c0_13 = arith.constant 0 : index
    %20 = vector.load %arg2[%c3, %c0_12, %c0_13] : memref<9x4x128xbf16, #tpu.memory_space<vmem>>, vector<1x4x128xbf16>
    %21 = vector.shape_cast %20 : vector<1x4x128xbf16> to vector<4x128xbf16>
    %cst_14 = arith.constant dense<0.000000e+00> : vector<512x128xf32>
    %22 = tpu.matmul %19, %21, %cst_14 {dimension_numbers = #tpu.dot_dimension_numbers<[1], [0], [0], [1], [0, 0, 1, 1], [], []>} : vector<512x4xbf16>, vector<4x128xbf16>, vector<512x128xf32> -> vector<512x128xf32>
    %23 = arith.addf %17, %22 : vector<512x128xf32>
    %24 = vector.extract_strided_slice %0 {offsets = [0, 1, 1, 0], sizes = [2, 16, 16, 4], strides = [1, 1, 1, 1]} : vector<2x18x18x4xbf16> to vector<2x16x16x4xbf16>
    %25 = vector.shape_cast %24 : vector<2x16x16x4xbf16> to vector<512x4xbf16>
    %c4 = arith.constant 4 : index
    %c0_15 = arith.constant 0 : index
    %c0_16 = arith.constant 0 : index
    %26 = vector.load %arg2[%c4, %c0_15, %c0_16] : memref<9x4x128xbf16, #tpu.memory_space<vmem>>, vector<1x4x128xbf16>
    %27 = vector.shape_cast %26 : vector<1x4x128xbf16> to vector<4x128xbf16>
    %cst_17 = arith.constant dense<0.000000e+00> : vector<512x128xf32>
    %28 = tpu.matmul %25, %27, %cst_17 {dimension_numbers = #tpu.dot_dimension_numbers<[1], [0], [0], [1], [0, 0, 1, 1], [], []>} : vector<512x4xbf16>, vector<4x128xbf16>, vector<512x128xf32> -> vector<512x128xf32>
    %29 = arith.addf %23, %28 : vector<512x128xf32>
    %30 = vector.extract_strided_slice %0 {offsets = [0, 1, 2, 0], sizes = [2, 16, 16, 4], strides = [1, 1, 1, 1]} : vector<2x18x18x4xbf16> to vector<2x16x16x4xbf16>
    %31 = vector.shape_cast %30 : vector<2x16x16x4xbf16> to vector<512x4xbf16>
    %c5 = arith.constant 5 : index
    %c0_18 = arith.constant 0 : index
    %c0_19 = arith.constant 0 : index
    %32 = vector.load %arg2[%c5, %c0_18, %c0_19] : memref<9x4x128xbf16, #tpu.memory_space<vmem>>, vector<1x4x128xbf16>
    %33 = vector.shape_cast %32 : vector<1x4x128xbf16> to vector<4x128xbf16>
    %cst_20 = arith.constant dense<0.000000e+00> : vector<512x128xf32>
    %34 = tpu.matmul %31, %33, %cst_20 {dimension_numbers = #tpu.dot_dimension_numbers<[1], [0], [0], [1], [0, 0, 1, 1], [], []>} : vector<512x4xbf16>, vector<4x128xbf16>, vector<512x128xf32> -> vector<512x128xf32>
    %35 = arith.addf %29, %34 : vector<512x128xf32>
    %36 = vector.extract_strided_slice %0 {offsets = [0, 2, 0, 0], sizes = [2, 16, 16, 4], strides = [1, 1, 1, 1]} : vector<2x18x18x4xbf16> to vector<2x16x16x4xbf16>
    %37 = vector.shape_cast %36 : vector<2x16x16x4xbf16> to vector<512x4xbf16>
    %c6 = arith.constant 6 : index
    %c0_21 = arith.constant 0 : index
    %c0_22 = arith.constant 0 : index
    %38 = vector.load %arg2[%c6, %c0_21, %c0_22] : memref<9x4x128xbf16, #tpu.memory_space<vmem>>, vector<1x4x128xbf16>
    %39 = vector.shape_cast %38 : vector<1x4x128xbf16> to vector<4x128xbf16>
    %cst_23 = arith.constant dense<0.000000e+00> : vector<512x128xf32>
    %40 = tpu.matmul %37, %39, %cst_23 {dimension_numbers = #tpu.dot_dimension_numbers<[1], [0], [0], [1], [0, 0, 1, 1], [], []>} : vector<512x4xbf16>, vector<4x128xbf16>, vector<512x128xf32> -> vector<512x128xf32>
    %41 = arith.addf %35, %40 : vector<512x128xf32>
    %42 = vector.extract_strided_slice %0 {offsets = [0, 2, 1, 0], sizes = [2, 16, 16, 4], strides = [1, 1, 1, 1]} : vector<2x18x18x4xbf16> to vector<2x16x16x4xbf16>
    %43 = vector.shape_cast %42 : vector<2x16x16x4xbf16> to vector<512x4xbf16>
    %c7 = arith.constant 7 : index
    %c0_24 = arith.constant 0 : index
    %c0_25 = arith.constant 0 : index
    %44 = vector.load %arg2[%c7, %c0_24, %c0_25] : memref<9x4x128xbf16, #tpu.memory_space<vmem>>, vector<1x4x128xbf16>
    %45 = vector.shape_cast %44 : vector<1x4x128xbf16> to vector<4x128xbf16>
    %cst_26 = arith.constant dense<0.000000e+00> : vector<512x128xf32>
    %46 = tpu.matmul %43, %45, %cst_26 {dimension_numbers = #tpu.dot_dimension_numbers<[1], [0], [0], [1], [0, 0, 1, 1], [], []>} : vector<512x4xbf16>, vector<4x128xbf16>, vector<512x128xf32> -> vector<512x128xf32>
    %47 = arith.addf %41, %46 : vector<512x128xf32>
    %48 = vector.extract_strided_slice %0 {offsets = [0, 2, 2, 0], sizes = [2, 16, 16, 4], strides = [1, 1, 1, 1]} : vector<2x18x18x4xbf16> to vector<2x16x16x4xbf16>
    %49 = vector.shape_cast %48 : vector<2x16x16x4xbf16> to vector<512x4xbf16>
    %c8 = arith.constant 8 : index
    %c0_27 = arith.constant 0 : index
    %c0_28 = arith.constant 0 : index
    %50 = vector.load %arg2[%c8, %c0_27, %c0_28] : memref<9x4x128xbf16, #tpu.memory_space<vmem>>, vector<1x4x128xbf16>
    %51 = vector.shape_cast %50 : vector<1x4x128xbf16> to vector<4x128xbf16>
    %cst_29 = arith.constant dense<0.000000e+00> : vector<512x128xf32>
    %52 = tpu.matmul %49, %51, %cst_29 {dimension_numbers = #tpu.dot_dimension_numbers<[1], [0], [0], [1], [0, 0, 1, 1], [], []>} : vector<512x4xbf16>, vector<4x128xbf16>, vector<512x128xf32> -> vector<512x128xf32>
    %53 = arith.addf %47, %52 : vector<512x128xf32>
    %c0_30 = arith.constant 0 : index
    %c0_31 = arith.constant 0 : index
    %54 = vector.load %arg3[%c0_30, %c0_31] : memref<1x128xf32, #tpu.memory_space<vmem>>, vector<1x128xf32>
    %55 = vector.broadcast %54 : vector<1x128xf32> to vector<512x128xf32>
    %56 = arith.addf %53, %55 : vector<512x128xf32>
    %cst_32 = arith.constant 0.000000e+00 : f32
    %57 = vector.broadcast %cst_32 : f32 to vector<512x128xf32>
    %58 = arith.maximumf %56, %57 : vector<512x128xf32>
    %59 = vector.shape_cast %58 : vector<512x128xf32> to vector<2x256x128xf32>
    %cst_33 = arith.constant dense<0.000000e+00> : vector<2x128xf32>
    %60 = vector.multi_reduction <add>, %59, %cst_33 [1] : vector<2x256x128xf32> to vector<2x128xf32>
    %c0_34 = arith.constant 0 : index
    %c0_35 = arith.constant 0 : index
    %61 = vector.load %arg4[%c0_34, %c0_35] : memref<128x128xbf16, #tpu.memory_space<vmem>>, vector<128x128xbf16>
    %62 = arith.extf %61 : vector<128x128xbf16> to vector<128x128xf32>
    %cst_36 = arith.constant dense<0.000000e+00> : vector<2x128xf32>
    %63 = tpu.matmul %60, %62, %cst_36 {dimension_numbers = #tpu.dot_dimension_numbers<[1], [0], [0], [1], [0, 0, 1, 1], [], []>} : vector<2x128xf32>, vector<128x128xf32>, vector<2x128xf32> -> vector<2x128xf32>
    %c0_37 = arith.constant 0 : index
    %c0_38 = arith.constant 0 : index
    %64 = vector.load %arg5[%c0_37, %c0_38] : memref<1x128xf32, #tpu.memory_space<vmem>>, vector<1x128xf32>
    %65 = vector.broadcast %64 : vector<1x128xf32> to vector<2x128xf32>
    %66 = arith.addf %63, %65 : vector<2x128xf32>
    %c0_39 = arith.constant 0 : index
    %c0_40 = arith.constant 0 : index
    %67 = vector.load %arg6[%c0_39, %c0_40] : memref<2x128xf32, #tpu.memory_space<vmem>>, vector<2x128xf32>
    tpu.vector_store %arg6[%c0_39, %c0_40], %66 {strides = array<i32>} : memref<2x128xf32, #tpu.memory_space<vmem>>, vector<2x128xf32>,
    return
  }
  func.func @transform_0(%arg0: i32) -> (i32, i32, i32, i32) {
    %c0_i32 = arith.constant 0 : i32
    %c0_i32_0 = arith.constant 0 : i32
    %c0_i32_1 = arith.constant 0 : i32
    %c0_i32_2 = arith.constant 0 : i32
    return %arg0, %c0_i32, %c0_i32_0, %c0_i32_1 : i32, i32, i32, i32
  }
  func.func @transform_1(%arg0: i32) -> (i32, i32, i32) {
    %c0_i32 = arith.constant 0 : i32
    %c0_i32_0 = arith.constant 0 : i32
    %c0_i32_1 = arith.constant 0 : i32
    %c0_i32_2 = arith.constant 0 : i32
    return %c0_i32, %c0_i32_0, %c0_i32_1 : i32, i32, i32
  }
  func.func @transform_2(%arg0: i32) -> (i32, i32) {
    %c0_i32 = arith.constant 0 : i32
    %c0_i32_0 = arith.constant 0 : i32
    %c0_i32_1 = arith.constant 0 : i32
    return %c0_i32, %c0_i32_0 : i32, i32
  }
  func.func @transform_3(%arg0: i32) -> (i32, i32) {
    %c0_i32 = arith.constant 0 : i32
    %c0_i32_0 = arith.constant 0 : i32
    %c0_i32_1 = arith.constant 0 : i32
    return %c0_i32, %c0_i32_0 : i32, i32
  }
  func.func @transform_4(%arg0: i32) -> (i32, i32) {
    %c0_i32 = arith.constant 0 : i32
    %c0_i32_0 = arith.constant 0 : i32
    %c0_i32_1 = arith.constant 0 : i32
    return %c0_i32, %c0_i32_0 : i32, i32
  }
  func.func @transform_5(%arg0: i32) -> (i32, i32) {
    %c0_i32 = arith.constant 0 : i32
    %c0_i32_0 = arith.constant 0 : i32
    return %arg0, %c0_i32 : i32, i32
  }
}

</mosaic_0001>

<bundles_post_ra>
// kernel: tpu_custom_call.1
= control target key start
LH: loop header
LB: loop body
LE: loop exit
PB: predicated region body
PF: predicated region fallthrough
CT: control target
= control target key end

     0   :  { %vm1097_vm0 = vcmask 1041408   ;;  %vm131_vm1 = vsmask.f32 3328  ;;  %vm132_vm2 = vsmask.f32 7440  ;;  %v10005_v29 = vmov 0  ;;  %s9891_s0 = inlined_call_operand.vmem [shape: bf16[2,18,18,4], index: 0, kind: input, shape index: {}]   ;;  %s9892_s1 = inlined_call_operand.vmem [shape: bf16[9,4,128], index: 1, kind: input, shape index: {}]   ;;  %s9893_s2 = inlined_call_operand.vmem [shape: f32[1,128], index: 2, kind: input, shape index: {}]   ;;  %s9894_s3 = inlined_call_operand.vmem [shape: bf16[128,128], index: 3, kind: input, shape index: {}]   ;;  %s9895_s4 = inlined_call_operand.vmem [shape: f32[1,128], index: 4, kind: input, shape index: {}]   ;;  %s9896_s5 = inlined_call_operand.hbm [shape: f32[2,128], index: 5, kind: output, shape index: {}]  }
   0x1   :  { %v5702_v0 = vld [vmem:[%s9892_s1 + $0x8] sm:$0x3]  ;;  %v5441_v1 = vld [vmem:[%s9892_s1 + $0x2] sm:$0x3]  ;;  %v23_v5 = vld [vmem:[%s9891_s0 + $0x4] sm:$0xf] }
   0x2   :  { %7407 = vmatprep.subr.msk.bf16.mxu0 %vm1097_vm0, %v5702_v0  ;;  %7403 = vmatprep.subr.msk.bf16.mxu1 %vm1097_vm0, %v5441_v1  ;;  %v7573_v2 = vsel %vm1097_vm0, %v5702_v0, 0  ;;  %v1099_v3 = vsel %vm1097_vm0, %v5441_v1, 0  ;;  %v22_v4 = vld [vmem:[%s9891_s0] sm:$0xf]  ;;  %v24_v6 = vld [vmem:[%s9891_s0 + $0x8] sm:$0x1]  ;;  %vm7617_vm3 = vmor %vm131_vm1, %vm132_vm2 }
   0x3   :  { %10004 = vst [vmem:[#allocation5_spill] sm:$0xff] %v7573_v2  ;;  %6501 = vmatpush3.bf16.msra.mxu0 %v7573_v2  ;;  %6237 = vmatpush3.bf16.msra.mxu1 %v1099_v3  ;;  %v135_v7 = vshrl.u32 %v22_v4, 16  ;;  %v138_v8 = vshll.u32 %v22_v4, 16  ;;  %v144_v9 = vshll.u32 %v23_v5, 16  ;;  %v148_v10 = vshrl.u32 %v23_v5, 16 }
   0x4   :  { %v7589_v11 = vld [vmem:[%s9891_s0 + $0xc] sm:$0xf]  ;;  %v154_v12 = vshll.u32 %v24_v6, 16  ;;  %v7594_v13 = vld [vmem:[%s9891_s0 + $0x10] sm:$0xf]  ;;  %v10006_v29 = vsel %vm7617_vm3, 4294967295, %v10005_v29 }
   0x5   :  { %v7599_v14 = vld [vmem:[%s9891_s0 + $0x14] sm:$0x1]  ;;  %v137_v15 = vrot.slane %v135_v7, 4  ;;  %v140_v16 = vrot.slane %v138_v8, 5  ;;  %v146_v17 = vrot.slane %v144_v9, 5  ;;  %v150_v18 = vrot.slane %v148_v10, 4 }
   0x6   :  { %v5739_v19 = vld [vmem:[%s9892_s1 + $0xa] sm:$0x3]  ;;  %v156_v20 = vrot.slane %v154_v12, 5  ;;  %v159_v21 = vshrl.u32 %v7589_v11, 16  ;;  %v162_v22 = vshll.u32 %v7589_v11, 16  ;;  %v168_v23 = vshll.u32 %v7594_v13, 16 }
   0x7   :  { %7409 = vmatprep.subr.msk.bf16.mxu0 %vm1097_vm0, %v5739_v19  ;;  %v141_v24 = vor.u32 %v140_v16, %v137_v15  ;;  %v151_v25 = vor.u32 %v150_v18, %v146_v17  ;;  %v172_v26 = vshrl.u32 %v7594_v13, 16  ;;  %v178_v27 = vshll.u32 %v7599_v14, 16  ;;  %v7613_v28 = vld [vmem:[%s9891_s0 + $0x18] sm:$0xf]  ;;  %10007 = vst [vmem:[#allocation6_spill] sm:$0xff] %v10006_v29 }
   0x8   :  { %vm1000_vm4 = vcmask 31744   ;;  %v161_v30 = vrot.slane %v159_v21, 4  ;;  %v164_v31 = vrot.slane %v162_v22, 5  ;;  %v170_v32 = vrot.slane %v168_v23, 5  ;;  %v7624_v33 = vld [vmem:[%s9891_s0 + $0x1c] sm:$0xf] }
   0x9   :  { %v142_v34 = vrot.slane %v141_v24, 4  ;;  %v152_v35 = vrot.slane %v151_v25, 4  ;;  %v174_v36 = vrot.slane %v172_v26, 4  ;;  %v180_v37 = vrot.slane %v178_v27, 5  ;;  %v7630_v40 = vld [vmem:[%s9891_s0 + $0x20] sm:$0x1] }
   0xa   :  { %v165_v38 = vor.u32 %v164_v31, %v161_v30  ;;  %v183_v41 = vshrl.u32 %v7613_v28, 16  ;;  %v186_v42 = vshll.u32 %v7613_v28, 16  ;;  %v192_v46 = vshll.u32 %v7624_v33, 16  ;;  %v7642_v51 = vld [vmem:[%s9891_s0 + $0x24] sm:$0xf] }
   0xb   :  { %v147_v43 = vsel %vm7617_vm3, %v142_v34, %v146_v17  ;;  %v157_v44 = vsel %vm7617_vm3, %v152_v35, %v156_v20  ;;  %v175_v45 = vor.u32 %v174_v36, %v170_v32  ;;  %v196_v54 = vshrl.u32 %v7624_v33, 16  ;;  %v7649_v56 = vld [vmem:[%s9892_s1] sm:$0x3]  ;;  %v7659_v61 = vld [vmem:[%s9891_s0 + $0x28] sm:$0xf] }
   0xc   :  { %v5442_v47 = vcombine.low %v147_v43, %v157_v44  ;;  %v166_v48 = vrot.slane %v165_v38, 4  ;;  %v185_v49 = vrot.slane %v183_v41, 4  ;;  %v188_v50 = vrot.slane %v186_v42, 5  ;;  %v7664_v62 = vld [vmem:[%s9891_s0 + $0x2c] sm:$0x1]  ;;  %7404 = vmatprep.subr.msk.bf16.mxu1 %vm1097_vm0, %v7649_v56 }
   0xd   :  { %v176_v52 = vrot.slane %v175_v45, 4  ;;  %v194_v53 = vrot.slane %v192_v46, 5  ;;  %v202_v55 = vshll.u32 %v7630_v40, 16  ;;  %v198_v0 = vrot.slane %v196_v54, 4  ;;  %v7674_v4 = vld [vmem:[%s9891_s0 + $0x30] sm:$0xf] }
   0xe   :  { %6238 = vmatprep.mubr.msk.bf16.mxu1 %vm1000_vm4, %v5442_v47  ;;  %v171_v57 = vsel %vm7617_vm3, %v166_v48, %v170_v32  ;;  %v189_v58 = vor.u32 %v188_v50, %v185_v49  ;;  %v3570_v3 = vsel %vm1097_vm0, %v5739_v19, 0  ;;  %v207_v7 = vshrl.u32 %v7642_v51, 16  ;;  %v7684_v16 = vld [vmem:[%s9891_s0 + $0x34] sm:$0xf]  ;;  %v7693_v20 = vld [vmem:[%s9891_s0 + $0x38] sm:$0x1] }
   0xf   :  { %v181_v63 = vsel %vm7617_vm3, %v176_v52, %v180_v37  ;;  %v204_v1 = vrot.slane %v202_v55, 5  ;;  %v210_v8 = vshll.u32 %v7642_v51, 16  ;;  %v199_v9 = vor.u32 %v198_v0, %v194_v53  ;;  %v7701_v32 = vld [vmem:[%s9891_s0 + $0x3c] sm:$0xf]  ;;  %v7710_v38 = vld [vmem:[%s9891_s0 + $0x40] sm:$0xf] }
  0x10   :  { %v5443_v5 = vcombine.low %v171_v57, %v181_v63  ;;  %v190_v6 = vrot.slane %v189_v58, 4  ;;  %v216_v10 = vshll.u32 %v7659_v61, 16  ;;  %v220_v12 = vshrl.u32 %v7659_v61, 16  ;;  %v7724_v52 = vld [vmem:[%s9891_s0 + $0x44] sm:$0x1] }
  0x11   :  { %v226_v15 = vshll.u32 %v7664_v62, 16  ;;  %v209_v18 = vrot.slane %v207_v7, 4  ;;  %v212_v19 = vrot.slane %v210_v8, 5  ;;  %v231_v21 = vshrl.u32 %v7674_v4, 16  ;;  %v7734_v0 = vld [vmem:[%s9891_s0 + $0x48] sm:$0xf] }
  0x12   :  { %6502 = vmatprep.mubr.msk.bf16.mxu0 %vm1000_vm4, %v5443_v5  ;;  %6239 = vmatmul.mubr.msk.bf16.vlgmr.msra.gmra.mrb[0].mxu1 %vm1000_vm4, %v5443_v5  ;;  %v195_v17 = vsel %vm7617_vm3, %v190_v6, %v194_v53  ;;  %v200_v22 = vrot.slane %v199_v9, 4  ;;  %v218_v23 = vrot.slane %v216_v10, 5  ;;  %v222_v24 = vrot.slane %v220_v12, 4 }
  0x13   :  { %v228_v25 = vrot.slane %v226_v15, 5  ;;  %v213_v26 = vor.u32 %v212_v19, %v209_v18  ;;  %v233_v27 = vrot.slane %v231_v21, 4  ;;  %v234_v30 = vshll.u32 %v7674_v4, 16  ;;  %v7755_v18 = vld [vmem:[%s9891_s0 + $0x50] sm:$0x1] }
  0x14   :  { %v240_v31 = vshll.u32 %v7684_v16, 16  ;;  %v205_v34 = vsel %vm7617_vm3, %v200_v22, %v204_v1  ;;  %v223_v35 = vor.u32 %v222_v24, %v218_v23  ;;  %v244_v36 = vshrl.u32 %v7684_v16, 16 }
  0x15   :  { %v250_v37 = vshll.u32 %v7693_v20, 16  ;;  %v7712_v41 = vcombine.low %v195_v17, %v205_v34  ;;  %v214_v42 = vrot.slane %v213_v26, 4  ;;  %v236_v43 = vrot.slane %v234_v30, 5  ;;  %v7772_v34 = vld [vmem:[%s9891_s0 + $0x58] sm:$0xf] }
  0x16   :  { %v242_v44 = vrot.slane %v240_v31, 5  ;;  %v224_v45 = vrot.slane %v223_v35, 4  ;;  %v246_v46 = vrot.slane %v244_v36, 4  ;;  %v255_v48 = vshrl.u32 %v7701_v32, 16 }
  0x17   :  { %10008 = vst [vmem:[#allocation7_spill] sm:$0xff] %v7712_v41  ;;  %v252_v47 = vrot.slane %v250_v37, 5  ;;  %6503 = vmatmul.mubr.msk.bf16.vlgmr.msra.gmra.mrb[0].mxu0 %vm1000_vm4, %v7712_v41  ;;  %6242 = vmatprep.mubr.msk.bf16.mxu1 %vm1000_vm4, %v7712_v41  ;;  %v219_v49 = vsel %vm7617_vm3, %v214_v42, %v218_v23  ;;  %v237_v50 = vor.u32 %v236_v43, %v233_v27  ;;  %v258_v53 = vshll.u32 %v7701_v32, 16 }
  0x18   :  { %v264_v54 = vshll.u32 %v7710_v38, 16  ;;  %6567 = vmatpush3.bf16.msra.mxu0 %v3570_v3  ;;  %v229_v55 = vsel %vm7617_vm3, %v224_v45, %v228_v25  ;;  %v247_v57 = vor.u32 %v246_v46, %v242_v44  ;;  %v257_v58 = vrot.slane %v255_v48, 4  ;;  %v7741_v3 = vld [vmem:[%s9891_s0 + $0x4c] sm:$0xf]  ;;  %v7765_v25 = vld [vmem:[%s9891_s0 + $0x54] sm:$0xf] }
  0x19   :  { %v268_v63 = vshrl.u32 %v7710_v38, 16  ;;  %v7736_v1 = vcombine.low %v219_v49, %v229_v55  ;;  %v238_v5 = vrot.slane %v237_v50, 4  ;;  %v260_v6 = vrot.slane %v258_v53, 5  ;;  %v7785_v45 = vld [vmem:[%s9891_s0 + $0x5c] sm:$0x1] }
  0x1a   :  { %v266_v7 = vrot.slane %v264_v54, 5  ;;  %v248_v8 = vrot.slane %v247_v57, 4  ;;  %v274_v10 = vshll.u32 %v7724_v52, 16  ;;  %v1647_v12 = vsel %vm1097_vm0, %v7649_v56, 0  ;;  %v7795_v54 = vld [vmem:[%s9891_s0 + $0x60] sm:$0xf] }
  0x1b   :  { %10009 = vst [vmem:[#allocation8_spill] sm:$0xff] %v7736_v1  ;;  %v270_v9 = vrot.slane %v268_v63, 4  ;;  %6506 = vmatprep.mubr.msk.bf16.mxu0 %vm1000_vm4, %v7736_v1  ;;  %6243 = vmatmul.mubr.msk.bf16.gmra.mrb[4].mxu1 %vm1000_vm4, %v7736_v1  ;;  %v243_v15 = vsel %vm7617_vm3, %v238_v5, %v242_v44  ;;  %v261_v17 = vor.u32 %v260_v6, %v257_v58  ;;  %v279_v19 = vshrl.u32 %v7734_v0, 16  ;;  %v7802_v5 = vld [vmem:[%s9891_s0 + $0x64] sm:$0xf] }
  0x1c   :  { %v282_v21 = vshll.u32 %v7734_v0, 16  ;;  %v253_v56 = vsel %vm7617_vm3, %v248_v8, %v252_v47  ;;  %v276_v23 = vrot.slane %v274_v10, 5  ;;  %6303 = vmatpush3.bf16.msra.mxu1 %v1647_v12  ;;  %v288_v24 = vshll.u32 %v7741_v3, 16 }
  0x1d   :  { %v271_v22 = vor.u32 %v270_v9, %v266_v7  ;;  %v7767_v26 = vcombine.low %v243_v15, %v253_v56  ;;  %v262_v27 = vrot.slane %v261_v17, 4  ;;  %v281_v30 = vrot.slane %v279_v19, 4  ;;  %v7815_v15 = vld [vmem:[%s9891_s0 + $0x68] sm:$0x1] }
  0x1e   :  { %v284_v31 = vrot.slane %v282_v21, 5  ;;  %v290_v36 = vrot.slane %v288_v24, 5  ;;  %v292_v37 = vshrl.u32 %v7741_v3, 16  ;;  %v298_v42 = vshll.u32 %v7755_v18, 16 }
  0x1f   :  { %10010 = vst [vmem:[#allocation9_spill] sm:$0xff] %v7767_v26  ;;  %v272_v35 = vrot.slane %v271_v22, 4  ;;  %6507 = vmatmul.mubr.msk.bf16.gmra.mrb[4].mxu0 %vm1000_vm4, %v7767_v26  ;;  %6246 = vmatprep.mubr.msk.bf16.mxu1 %vm1000_vm4, %v7767_v26  ;;  %v267_v43 = vsel %vm7617_vm3, %v262_v27, %v266_v7  ;;  %v303_v46 = vshrl.u32 %v7765_v25, 16  ;;  %v306_v47 = vshll.u32 %v7765_v25, 16 }
  0x20   :  { %v285_v44 = vor.u32 %v284_v31, %v281_v30  ;;  %v294_v49 = vrot.slane %v292_v37, 4  ;;  %v300_v50 = vrot.slane %v298_v42, 5  ;;  %v312_v53 = vshll.u32 %v7772_v34, 16 }
  0x21   :  { %v277_v48 = vsel %vm7617_vm3, %v272_v35, %v276_v23  ;;  %v305_v58 = vrot.slane %v303_v46, 4  ;;  %v308_v63 = vrot.slane %v306_v47, 5  ;;  %v316_v8 = vshrl.u32 %v7772_v34, 16  ;;  %v7824_v35 = vld [vmem:[%s9891_s0 + $0x6c] sm:$0xf] }
  0x22   :  { %v7797_v55 = vcombine.low %v267_v43, %v277_v48  ;;  %v286_v57 = vrot.slane %v285_v44, 4  ;;  %v295_v6 = vor.u32 %v294_v49, %v290_v36  ;;  %v314_v7 = vrot.slane %v312_v53, 5  ;;  %v7832_v44 = vld [vmem:[%s9891_s0 + $0x70] sm:$0xf] }
  0x23   :  { %v322_v9 = vshll.u32 %v7785_v45, 16  ;;  %v309_v12 = vor.u32 %v308_v63, %v305_v58  ;;  %v327_v17 = vshrl.u32 %v7795_v54, 16  ;;  %v330_v19 = vshll.u32 %v7795_v54, 16 }
  0x24   :  { %10011 = vst [vmem:[#allocation10_spill] sm:$0xff] %v7797_v55  ;;  %6510 = vmatprep.mubr.msk.bf16.mxu0 %vm1000_vm4, %v7797_v55  ;;  %6247 = vmatmul.mubr.msk.bf16.gmra.mrb[8].mxu1 %vm1000_vm4, %v7797_v55  ;;  %v291_v10 = vsel %vm7617_vm3, %v286_v57, %v290_v36  ;;  %v296_v21 = vrot.slane %v295_v6, 4  ;;  %v318_v56 = vrot.slane %v316_v8, 4  ;;  %v336_v23 = vshll.u32 %v7802_v5, 16 }
  0x25   :  { %v324_v22 = vrot.slane %v322_v9, 5  ;;  %v310_v24 = vrot.slane %v309_v12, 4  ;;  %v329_v27 = vrot.slane %v327_v17, 4  ;;  %v332_v30 = vrot.slane %v330_v19, 5 }
  0x26   :  { %v340_v31 = vshrl.u32 %v7802_v5, 16  ;;  %v301_v36 = vsel %vm7617_vm3, %v296_v21, %v300_v50  ;;  %v319_v37 = vor.u32 %v318_v56, %v314_v7  ;;  %v338_v42 = vrot.slane %v336_v23, 5  ;;  %v7841_v50 = vld [vmem:[%s9891_s0 + $0x74] sm:$0x1]  ;;  %v7862_v56 = vld [vmem:[%s9891_s0 + $0x7c] sm:$0xf] }
  0x27   :  { %v346_v43 = vshll.u32 %v7815_v15, 16  ;;  %v7834_v46 = vcombine.low %v291_v10, %v301_v36  ;;  %v315_v47 = vsel %vm7617_vm3, %v310_v24, %v314_v7  ;;  %v333_v48 = vor.u32 %v332_v30, %v329_v27  ;;  %v7854_v10 = vld [vmem:[%s9891_s0 + $0x78] sm:$0xf] }
  0x28   :  { %v342_v49 = vrot.slane %v340_v31, 4  ;;  %v320_v53 = vrot.slane %v319_v37, 4  ;;  %v351_v58 = vshrl.u32 %v7824_v35, 16  ;;  %v354_v63 = vshll.u32 %v7824_v35, 16 }
  0x29   :  { %10012 = vst [vmem:[#allocation11_spill] sm:$0xff] %v7834_v46  ;;  %v348_v57 = vrot.slane %v346_v43, 5  ;;  %6511 = vmatmul.mubr.msk.bf16.gmra.mrb[8].mxu0 %vm1000_vm4, %v7834_v46  ;;  %6250 = vmatprep.mubr.msk.bf16.mxu1 %vm1000_vm4, %v7834_v46  ;;  %v334_v6 = vrot.slane %v333_v48, 4  ;;  %v360_v8 = vshll.u32 %v7832_v44, 16  ;;  %v364_v9 = vshrl.u32 %v7832_v44, 16 }
  0x2a   :  { %v343_v7 = vor.u32 %v342_v49, %v338_v42  ;;  %v325_v12 = vsel %vm7617_vm3, %v320_v53, %v324_v22  ;;  %v353_v17 = vrot.slane %v351_v58, 4  ;;  %v356_v19 = vrot.slane %v354_v63, 5  ;;  %v7871_v22 = vld [vmem:[%s9891_s0 + $0x80] sm:$0x1]  ;;  %v7886_v53 = vld [vmem:[%s9891_s0 + $0x84] sm:$0xf] }
  0x2b   :  { %v370_v21 = vshll.u32 %v7841_v50, 16  ;;  %v7864_v23 = vcombine.low %v315_v47, %v325_v12  ;;  %v339_v24 = vsel %vm7617_vm3, %v334_v6, %v338_v42  ;;  %v362_v30 = vrot.slane %v360_v8, 5  ;;  %v7898_v8 = vld [vmem:[%s9892_s1 + $0xc] sm:$0x3] }
  0x2c   :  { %v344_v27 = vrot.slane %v343_v7, 4  ;;  %v357_v31 = vor.u32 %v356_v19, %v353_v17  ;;  %v366_v36 = vrot.slane %v364_v9, 4  ;;  %v375_v43 = vshrl.u32 %v7854_v10, 16  ;;  %7410 = vmatprep.subr.msk.bf16.mxu0 %vm1097_vm0, %v7898_v8 }
  0x2d   :  { %10013 = vst [vmem:[#allocation12_spill] sm:$0xff] %v7864_v23  ;;  %v372_v37 = vrot.slane %v370_v21, 5  ;;  %6514 = vmatprep.mubr.msk.bf16.mxu0 %vm1000_vm4, %v7864_v23  ;;  %6251 = vmatmul.mubr.msk.bf16.gmra.mrb[12].mxu1 %vm1000_vm4, %v7864_v23  ;;  %v378_v47 = vshll.u32 %v7854_v10, 16  ;;  %v384_v48 = vshll.u32 %v7862_v56, 16  ;;  %v388_v49 = vshrl.u32 %v7862_v56, 16 }
  0x2e   :  { %v349_v42 = vsel %vm7617_vm3, %v344_v27, %v348_v57  ;;  %v358_v63 = vrot.slane %v357_v31, 4  ;;  %v367_v6 = vor.u32 %v366_v36, %v362_v30  ;;  %v377_v7 = vrot.slane %v375_v43, 4  ;;  %v7893_v57 = vld [vmem:[%s9891_s0 + $0x88] sm:$0xf] }
  0x2f   :  { %v7888_v58 = vcombine.low %v339_v24, %v349_v42  ;;  %v380_v9 = vrot.slane %v378_v47, 5  ;;  %v386_v12 = vrot.slane %v384_v48, 5  ;;  %v390_v17 = vrot.slane %v388_v49, 4  ;;  %v7914_v47 = vld [vmem:[%s9891_s0 + $0x8c] sm:$0x1] }
  0x30   :  { %v394_v19 = vshll.u32 %v7871_v22, 16  ;;  %v363_v21 = vsel %vm7617_vm3, %v358_v63, %v362_v30  ;;  %v368_v24 = vrot.slane %v367_v6, 4  ;;  %v399_v27 = vshrl.u32 %v7886_v53, 16  ;;  %v58_v30 = vld [vmem:[%s9891_s0 + $0x90] sm:$0xf] }
  0x31   :  { %10014 = vst [vmem:[#allocation13_spill] sm:$0xff] %v7888_v58  ;;  %6254 = vmatprep.mubr.msk.bf16.mxu1 %vm1000_vm4, %v7888_v58  ;;  %v402_v31 = vshll.u32 %v7886_v53, 16  ;;  %6515 = vmatmul.mubr.msk.bf16.gmra.mrb[12].mxu0 %vm1000_vm4, %v7888_v58  ;;  %v381_v36 = vor.u32 %v380_v9, %v377_v7  ;;  %v391_v43 = vor.u32 %v390_v17, %v386_v12  ;;  %v408_v48 = vshll.u32 %v7893_v57, 16  ;;  %v59_v9 = vld [vmem:[%s9891_s0 + $0x94] sm:$0xf] }
  0x32   :  { %v396_v42 = vrot.slane %v394_v19, 5  ;;  %v373_v49 = vsel %vm7617_vm3, %v368_v24, %v372_v37  ;;  %v401_v63 = vrot.slane %v399_v27, 4  ;;  %v412_v7 = vshrl.u32 %v7893_v57, 16  ;;  %v7940_v24 = vld [vmem:[%s9891_s0 + $0x98] sm:$0x1] }
  0x33   :  { %v404_v6 = vrot.slane %v402_v31, 5  ;;  %v7926_v17 = vcombine.low %v363_v21, %v373_v49  ;;  %v382_v19 = vrot.slane %v381_v36, 4  ;;  %v392_v60 = vrot.slane %v391_v43, 4  ;;  %v61_v36 = vld [vmem:[%s9891_s0 + $0x9c] sm:$0xf] }
  0x34   :  { %v410_v59 = vrot.slane %v408_v48, 5  ;;  %v414_v2 = vrot.slane %v412_v7, 4  ;;  %v418_v58 = vshll.u32 %v7914_v47, 16  ;;  %v423_v23 = vshrl.u32 %v58_v30, 16 }
  0x35   :  { %10015 = vst [vmem:[#allocation14_spill] sm:$0xff] %v7926_v17  ;;  %v405_v39 = vor.u32 %v404_v6, %v401_v63  ;;  %6518 = vmatprep.mubr.msk.bf16.mxu0 %vm1000_vm4, %v7926_v17  ;;  %6255 = vmatmul.mubr.msk.bf16.gmra.mrb[16].mxu1 %vm1000_vm4, %v7926_v17  ;;  %v387_v37 = vsel %vm7617_vm3, %v382_v19, %v386_v12  ;;  %v426_v27 = vshll.u32 %v58_v30, 16  ;;  %v432_v31 = vshll.u32 %v59_v9, 16 }
  0x36   :  { %v397_v21 = vsel %vm7617_vm3, %v392_v60, %v396_v42  ;;  %v415_v49 = vor.u32 %v414_v2, %v410_v59  ;;  %v420_v63 = vrot.slane %v418_v58, 5  ;;  %v62_v60 = vld [vmem:[%s9891_s0 + $0xa0] sm:$0xf]  ;;  %v425_v12 = vrot.slane %v423_v23, 4  ;;  %v63_v2 = vld [vmem:[%s9891_s0 + $0xa4] sm:$0x1] }
  0x37   :  { %v7945_v43 = vcombine.low %v387_v37, %v397_v21  ;;  %v406_v48 = vrot.slane %v405_v39, 4  ;;  %v428_v42 = vrot.slane %v426_v27, 5  ;;  %v434_v6 = vrot.slane %v432_v31, 5  ;;  %v64_v27 = vld [vmem:[%s9891_s0 + $0xa8] sm:$0xf] }
  0x38   :  { %v436_v7 = vshrl.u32 %v59_v9, 16  ;;  %v416_v19 = vrot.slane %v415_v49, 4  ;;  %v442_v37 = vshll.u32 %v7940_v24, 16  ;;  %v447_v39 = vshrl.u32 %v61_v36, 16 }
  0x39   :  { %10016 = vst [vmem:[#allocation15_spill] sm:$0xff] %v7945_v43  ;;  %6258 = vmatprep.mubr.msk.bf16.mxu1 %vm1000_vm4, %v7945_v43  ;;  %v411_v30 = vsel %vm7617_vm3, %v406_v48, %v410_v59  ;;  %6519 = vmatmul.mubr.msk.bf16.gmra.mrb[16].mxu0 %vm1000_vm4, %v7945_v43  ;;  %v429_v23 = vor.u32 %v428_v42, %v425_v12  ;;  %v450_v9 = vshll.u32 %v61_v36, 16  ;;  %v456_v21 = vshll.u32 %v62_v60, 16  ;;  %v65_v36 = vld [vmem:[%s9891_s0 + $0xac] sm:$0xf] }
  0x3a   :  { %v438_v58 = vrot.slane %v436_v7, 4  ;;  %v421_v59 = vsel %vm7617_vm3, %v416_v19, %v420_v63  ;;  %v444_v31 = vrot.slane %v442_v37, 5  ;;  %v449_v48 = vrot.slane %v447_v39, 4  ;;  %v66_v19 = vld [vmem:[%s9891_s0 + $0xb0] sm:$0x1] }
  0x3b   :  { %v460_v49 = vshrl.u32 %v62_v60, 16  ;;  %v7965_v17 = vcombine.low %v411_v30, %v421_v59  ;;  %v430_v46 = vrot.slane %v429_v23, 4  ;;  %v452_v26 = vrot.slane %v450_v9, 5  ;;  %v67_v9 = vld [vmem:[%s9891_s0 + $0xb4] sm:$0xf] }
  0x3c   :  { %v439_v55 = vor.u32 %v438_v58, %v434_v6  ;;  %v458_v12 = vrot.slane %v456_v21, 5  ;;  %v466_v7 = vshll.u32 %v63_v2, 16  ;;  %v471_v43 = vshrl.u32 %v64_v27, 16 }
  0x3d   :  { %10017 = vst [vmem:[#allocation16_spill] sm:$0xff] %v7965_v17  ;;  %v462_v42 = vrot.slane %v460_v49, 4  ;;  %6522 = vmatprep.mubr.msk.bf16.mxu0 %vm1000_vm4, %v7965_v17  ;;  %6259 = vmatmul.mubr.msk.bf16.gmra.mrb[20].mxu1 %vm1000_vm4, %v7965_v17  ;;  %v435_v63 = vsel %vm7617_vm3, %v430_v46, %v434_v6  ;;  %v453_v30 = vor.u32 %v452_v26, %v449_v48  ;;  %v474_v37 = vshll.u32 %v64_v27, 16  ;;  %v68_v26 = vld [vmem:[%s9891_s0 + $0xb8] sm:$0xf] }
  0x3e   :  { %v440_v60 = vrot.slane %v439_v55, 4  ;;  %v468_v23 = vrot.slane %v466_v7, 5  ;;  %v473_v2 = vrot.slane %v471_v43, 4  ;;  %v480_v58 = vshll.u32 %v65_v36, 16 }
  0x3f   :  { %v463_v39 = vor.u32 %v462_v42, %v458_v12  ;;  %v454_v59 = vrot.slane %v453_v30, 4  ;;  %v476_v46 = vrot.slane %v474_v37, 5  ;;  %v484_v55 = vshrl.u32 %v65_v36, 16 }
  0x40   :  { %v445_v21 = vsel %vm7617_vm3, %v440_v60, %v444_v31  ;;  %v482_v48 = vrot.slane %v480_v58, 5  ;;  %v490_v43 = vshll.u32 %v66_v19, 16  ;;  %v7994_v31 = vld [vmem:[%s9891_s0 + $0xbc] sm:$0x1]  ;;  %v495_v36 = vshrl.u32 %v67_v9, 16 }
  0x41   :  { %v7987_v6 = vcombine.low %v435_v63, %v445_v21  ;;  %v464_v27 = vrot.slane %v463_v39, 4  ;;  %v459_v49 = vsel %vm7617_vm3, %v454_v59, %v458_v12  ;;  %v477_v42 = vor.u32 %v476_v46, %v473_v2  ;;  %v8005_v19 = vld [vmem:[%s9891_s0 + $0xc0] sm:$0xf]  ;;  %v8012_v21 = vld [vmem:[%s9891_s0 + $0xc4] sm:$0xf] }
  0x42   :  { %v486_v7 = vrot.slane %v484_v55, 4  ;;  %v492_v60 = vrot.slane %v490_v43, 5  ;;  %v498_v30 = vshll.u32 %v67_v9, 16  ;;  %v504_v12 = vshll.u32 %v68_v26, 16  ;;  %v8024_v43 = vld [vmem:[%s9891_s0 + $0xc8] sm:$0x1] }
  0x43   :  { %10018 = vst [vmem:[#allocation17_spill] sm:$0xff] %v7987_v6  ;;  %6523 = vmatmul.mubr.msk.bf16.gmra.mrb[20].mxu0 %vm1000_vm4, %v7987_v6  ;;  %6262 = vmatprep.mubr.msk.bf16.mxu1 %vm1000_vm4, %v7987_v6  ;;  %v469_v63 = vsel %vm7617_vm3, %v464_v27, %v468_v23  ;;  %v478_v39 = vrot.slane %v477_v42, 4  ;;  %v497_v58 = vrot.slane %v495_v36, 4  ;;  %v508_v46 = vshrl.u32 %v68_v26, 16 }
  0x44   :  { %v8007_v37 = vcombine.low %v459_v49, %v469_v63  ;;  %v487_v2 = vor.u32 %v486_v7, %v482_v48  ;;  %v500_v59 = vrot.slane %v498_v30, 5  ;;  %v506_v23 = vrot.slane %v504_v12, 5  ;;  %v76_v30 = vld [vmem:[%s9891_s0 + $0xd8] sm:$0xf] }
  0x45   :  { %v514_v9 = vshll.u32 %v7994_v31, 16  ;;  %v483_v55 = vsel %vm7617_vm3, %v478_v39, %v482_v48  ;;  %v3122_v49 = vshrl.u32 %v8005_v19, 16  ;;  %v3125_v26 = vshll.u32 %v8005_v19, 16 }
  0x46   :  { %10019 = vst [vmem:[#allocation18_spill] sm:$0xff] %v8007_v37  ;;  %6526 = vmatprep.mubr.msk.bf16.mxu0 %vm1000_vm4, %v8007_v37  ;;  %6263 = vmatmul.mubr.msk.bf16.gmra.mrb[24].mxu1 %vm1000_vm4, %v8007_v37  ;;  %v488_v27 = vrot.slane %v487_v2, 4  ;;  %v501_v42 = vor.u32 %v500_v59, %v497_v58  ;;  %v510_v7 = vrot.slane %v508_v46, 4  ;;  %v3131_v63 = vshll.u32 %v8012_v21, 16  ;;  %v77_v37 = vld [vmem:[%s9891_s0 + $0xdc] sm:$0xf] }
  0x47   :  { %v516_v36 = vrot.slane %v514_v9, 5  ;;  %v3124_v12 = vrot.slane %v3122_v49, 4  ;;  %v3127_v39 = vrot.slane %v3125_v26, 5  ;;  %v3135_v2 = vshrl.u32 %v8012_v21, 16 }
  0x48   :  { %v493_v48 = vsel %vm7617_vm3, %v488_v27, %v492_v60  ;;  %v502_v59 = vrot.slane %v501_v42, 4  ;;  %v511_v46 = vor.u32 %v510_v7, %v506_v23  ;;  %v3133_v9 = vrot.slane %v3131_v63, 5 }
  0x49   :  { %v8038_v58 = vcombine.low %v483_v55, %v493_v48  ;;  %v3128_v6 = vor.u32 %v3127_v39, %v3124_v12  ;;  %v3137_v17 = vrot.slane %v3135_v2, 4  ;;  %v3141_v1 = vshll.u32 %v8024_v43, 16  ;;  %v78_v55 = vld [vmem:[%s9891_s0 + $0xe0] sm:$0x1]  ;;  %v8053_v12 = vld [vmem:[%s9891_s0 + $0xe4] sm:$0xf] }
  0x4a   :  { %v519_v41 = vshrl.u32 %v76_v30, 16  ;;  %v507_v60 = vsel %vm7617_vm3, %v502_v59, %v506_v23  ;;  %v512_v27 = vrot.slane %v511_v46, 4  ;;  %v522_v49 = vshll.u32 %v76_v30, 16  ;;  %10021 = vst [vmem:[#allocation20_spill] sm:$0xff] %v8053_v12  ;;  %v8060_v30 = vld [vmem:[%s9891_s0 + $0xe8] sm:$0xf] }
  0x4b   :  { %10020 = vst [vmem:[#allocation19_spill] sm:$0xff] %v8038_v58  ;;  %6527 = vmatmul.mubr.msk.bf16.gmra.mrb[24].mxu0 %vm1000_vm4, %v8038_v58  ;;  %6266 = vmatprep.mubr.msk.bf16.mxu1 %vm1000_vm4, %v8038_v58  ;;  %v528_v26 = vshll.u32 %v77_v37, 16  ;;  %v3129_v42 = vrot.slane %v3128_v6, 4  ;;  %v3138_v7 = vor.u32 %v3137_v17, %v3133_v9  ;;  %v3143_v63 = vrot.slane %v3141_v1, 5  ;;  %10022 = vst [vmem:[#allocation21_spill] sm:$0xff] %v8060_v30 }
  0x4c   :  { %v521_v48 = vrot.slane %v519_v41, 4  ;;  %v517_v39 = vsel %vm7617_vm3, %v512_v27, %v516_v36  ;;  %v524_v23 = vrot.slane %v522_v49, 5  ;;  %v532_v59 = vshrl.u32 %v77_v37, 16  ;;  %v8069_v46 = vld [vmem:[%s9891_s0 + $0xec] sm:$0x1] }
  0x4d   :  { %v530_v2 = vrot.slane %v528_v26, 5  ;;  %v8062_v6 = vcombine.low %v507_v60, %v517_v39  ;;  %v3134_v41 = vsel %vm7617_vm3, %v3129_v42, %v3133_v9  ;;  %v3139_v1 = vrot.slane %v3138_v7, 4  ;;  %10024 = vst [vmem:[#allocation23_spill] sm:$0xff] %v8069_v46  ;;  %v8074_v37 = vld [vmem:[%s9892_s1 + $0x4] sm:$0x3] }
  0x4e   :  { %v538_v17 = vshll.u32 %v78_v55, 16  ;;  %10025 = vst [vmem:[#allocation24_spill] sm:$0xff] %v8074_v37  ;;  %v525_v36 = vor.u32 %v524_v23, %v521_v48  ;;  %v534_v27 = vrot.slane %v532_v59, 4  ;;  %v543_v60 = vshrl.u32 %v8053_v12, 16  ;;  %7405 = vmatprep.subr.msk.bf16.mxu1 %vm1097_vm0, %v8074_v37 }
  0x4f   :  { %10023 = vst [vmem:[#allocation22_spill] sm:$0xff] %v8062_v6  ;;  %v546_v49 = vshll.u32 %v8053_v12, 16 }
  0x50   :  { %10 = vsyncpa [#allocation3], 0  ;;  %6530 = vmatprep.mubr.msk.bf16.mxu0 %vm1000_vm4, %v8062_v6  ;;  %6267 = vmatmul.mubr.msk.bf16.gmra.mrb[28].mxu1 %vm1000_vm4, %v8062_v6  ;;  %v3144_v9 = vsel %vm7617_vm3, %v3139_v1, %v3143_v63  ;;  %v540_v55 = vrot.slane %v538_v17, 5  ;;  %v552_v26 = vshll.u32 %v8060_v30, 16  ;;  %v556_v42 = vshrl.u32 %v8060_v30, 16  ;;  %s7533_s23 = smov [#allocation2]  }
  0x51   :  { %v8091_v7 = vld [vmem:[%s9891_s0 + $0xf0] sm:$0xf]  ;;  %v8093_v48 = vcombine.low %v3134_v41, %v3144_v9  ;;  %v526_v39 = vrot.slane %v525_v36, 4  ;;  %v535_v23 = vor.u32 %v534_v27, %v530_v2  ;;  %v545_v59 = vrot.slane %v543_v60, 4  ;;  %v8098_v6 = vld [vmem:[%s9891_s0 + $0xf4] sm:$0xf] }
  0x52   :  { %10026 = vst [vmem:[#allocation25_spill] sm:$0xff] %v8091_v7  ;;  %v548_v63 = vrot.slane %v546_v49, 5  ;;  %v554_v1 = vrot.slane %v552_v26, 5  ;;  %v558_v17 = vrot.slane %v556_v42, 4  ;;  %v562_v58 = vshll.u32 %v8069_v46, 16  ;;  %s5433_s24 = sshll.u32 %s7533_s23, 4  ;;  %s5434_s24 = int_to_ptr.vmem [resolvable:$true] %s5433_s24 }
  0x53   :  { %10027 = vst [vmem:[#allocation26_spill] sm:$0xff] %v8093_v48  ;;  %6531 = vmatmul.mubr.msk.bf16.gmra.mrb[28].mxu0 %vm1000_vm4, %v8093_v48  ;;  %v531_v41 = vsel %vm7617_vm3, %v526_v39, %v530_v2  ;;  %v536_v9 = vrot.slane %v535_v23, 4  ;;  %v567_v36 = vshrl.u32 %v8091_v7, 16  ;;  %v570_v27 = vshll.u32 %v8091_v7, 16  ;;  %v8110_v49 = vld [vmem:[%s9891_s0 + $0xf8] sm:$0x1]  ;;  %p7511_p1 = scmp.lt.s32.totalorder %s5434_s24, %s5434_s24 }
  0x54   :  { %v549_v60 = vor.u32 %v548_v63, %v545_v59  ;;  %v559_v37 = vor.u32 %v558_v17, %v554_v1  ;;  %v564_v30 = vrot.slane %v562_v58, 5  ;;  %v576_v26 = vshll.u32 %v8098_v6, 16  ;;  %v8119_v58 = vld [vmem:[%s9891_s0 + $0xfc] sm:$0xf]  ;;  %s7506_s25 = scalar_lea.vmem %s5434_s24, 32 }
  0x55   :  { %v541_v42 = vsel %vm7617_vm3, %v536_v9, %v540_v55  ;;  %v569_v48 = vrot.slane %v567_v36, 4  ;;  %v572_v2 = vrot.slane %v570_v27, 5  ;;  %v580_v39 = vshrl.u32 %v8098_v6, 16  ;;  %10028 = vst [vmem:[#allocation27_spill] sm:$0xff] %v8119_v58  ;;  %v8125_v55 = vld [vmem:[%s9891_s0 + $0x100] sm:$0xf]  ;;  %p7507_p0 = scmp.ne.s32.totalorder %s5434_s24, %s7506_s25  ;;  %p7512_p2 = scmp.lt.s32.totalorder %s7506_s25, %s7506_s25 }
  0x56   :  { %v5458_v23 = vcombine.low %v531_v41, %v541_v42  ;;  %v550_v46 = vrot.slane %v549_v60, 4  ;;  %v560_v7 = vrot.slane %v559_v37, 4  ;;  %v578_v59 = vrot.slane %v576_v26, 5  ;;  %v8136_v9 = vld [vmem:[%s9891_s0 + $0x104] sm:$0x1] }
  0x57   :  { %v573_v63 = vor.u32 %v572_v2, %v569_v48  ;;  %v582_v17 = vrot.slane %v580_v39, 4  ;;  %v586_v12 = vshll.u32 %v8110_v49, 16  ;;  %vm1970_vm5 = vcmask 1042432   ;;  %p7513_p3 = por %p7512_p2, %p7511_p1 }
  0x58   :  { %6270 = vmatprep.mubr.msk.bf16.mxu1 %vm1000_vm4, %v5458_v23  ;;  %v555_v37 = vsel %vm7617_vm3, %v550_v46, %v554_v1  ;;  %v565_v41 = vsel %vm7617_vm3, %v560_v7, %v564_v30  ;;  %vm1971_vm6 = vcmask 1046532   ;;  %v5571_v48 = vrot.slane %v7589_v11, 9 }
  0x59   :  { %v5459_v36 = vcombine.low %v555_v37, %v565_v41  ;;  %v574_v27 = vrot.slane %v573_v63, 4  ;;  %v583_v60 = vor.u32 %v582_v17, %v578_v59  ;;  %v588_v26 = vrot.slane %v586_v12, 5  ;;  %vm8138_vm7 = vmor %vm1970_vm5, %vm1971_vm6  ;;  %p7514_p4 = pnand %p7513_p3, %p7507_p0 }
  0x5a   :  { %v1982_v46 = vrot.slane %v7594_v13, 5  ;;  %v591_v30 = vshrl.u32 %v8119_v58, 16  ;;  %v594_v7 = vshll.u32 %v8119_v58, 16  ;;  %v600_v11 = vshll.u32 %v8125_v55, 16 }
  0x5b   :  { %6534 = vmatprep.mubr.msk.bf16.mxu0 %vm1000_vm4, %v5459_v36  ;;  %6271 = vmatmul.mubr.msk.bf16.gmra.mrb[32].mxu1 %vm1000_vm4, %v5459_v36  ;;  %v579_v1 = vsel %vm7617_vm3, %v574_v27, %v578_v59  ;;  %v584_v12 = vrot.slane %v583_v60, 4  ;;  %v604_v2 = vshrl.u32 %v8125_v55, 16  ;;  %v610_v39 = vshll.u32 %v8136_v9, 16  ;;  %v8159_v59 = vld [vmem:[%s9891_s0 + $0x108] sm:$0xf] }
  0x5c   :  { %v1983_v13 = vsel %vm8138_vm7, %v5571_v48, %v1982_v46  ;;  %v1984_v23 = vrot.slane %v1982_v46, 4  ;;  %v593_v63 = vrot.slane %v591_v30, 4  ;;  %v596_v17 = vrot.slane %v594_v7, 5 }
  0x5d   :  { %v589_v37 = vsel %vm7617_vm3, %v584_v12, %v588_v26  ;;  %v602_v41 = vrot.slane %v600_v11, 5  ;;  %v606_v58 = vrot.slane %v604_v2, 4  ;;  %v612_v36 = vrot.slane %v610_v39, 5  ;;  %v8171_v26 = vld [vmem:[%s9891_s0 + $0x10c] sm:$0xf] }
  0x5e   :  { %v8161_v27 = vcombine.low %v579_v1, %v589_v37  ;;  %v10032_v60 = vrot.slane %v7599_v14, 5  ;;  %v597_v46 = vor.u32 %v596_v17, %v593_v63  ;;  %v5572_v30 = vrot.slane %v7613_v28, 9 }
  0x5f   :  { %v607_v11 = vor.u32 %v606_v58, %v602_v41  ;;  %v10034_v12 = vrot.slane %v7624_v33, 5  ;;  %v3944_v14 = vsel %vm1097_vm0, %v7898_v8, 0  ;;  %v8190_v58 = vld [vmem:[%s9891_s0 + $0x110] sm:$0x1]  ;;  %v618_v8 = vshll.u32 %v8159_v59, 16 }
  0x60   :  { %10031 = vst [vmem:[#allocation28_spill] sm:$0xff] %v8161_v27  ;;  %v1986_v48 = vsel %vm8138_vm7, %v1984_v23, %v10032_v60  ;;  %6535 = vmatmul.mubr.msk.bf16.gmra.mrb[32].mxu0 %vm1000_vm4, %v8161_v27  ;;  %6274 = vmatprep.mubr.msk.bf16.mxu1 %vm1000_vm4, %v8161_v27  ;;  %v598_v28 = vrot.slane %v597_v46, 4  ;;  %v10036_v63 = vrot.slane %v7630_v40, 5  ;;  %v624_v17 = vshll.u32 %v8171_v26, 16 }
  0x61   :  { %v8173_v7 = vcombine.low %v1983_v13, %v1986_v48  ;;  %v1991_v1 = vrot.slane %v10034_v12, 4  ;;  %v10035_v2 = vmov %v10034_v12  ;;  %v615_v13 = vshrl.u32 %v8159_v59, 16 }
  0x62   :  { %v1990_v39 = vsel %vm8138_vm7, %v5572_v30, %v10035_v2  ;;  %v608_v23 = vrot.slane %v607_v11, 4  ;;  %v628_v37 = vshrl.u32 %v8171_v26, 16  ;;  %v603_v60 = vsel %vm7617_vm3, %v598_v28, %v602_v41  ;;  %v8209_v11 = vld [vmem:[%s9891_s0 + $0x114] sm:$0xf] }
  0x63   :  { %10033 = vst [vmem:[#allocation29_spill] sm:$0xff] %v8173_v7  ;;  %6568 = vmatprep.mubr.msk.bf16.mxu0 %vm1000_vm4, %v8173_v7  ;;  %v1993_v33 = vsel %vm8138_vm7, %v1991_v1, %v10036_v63  ;;  %v617_v46 = vrot.slane %v615_v13, 4  ;;  %v620_v30 = vrot.slane %v618_v8, 5  ;;  %v626_v12 = vrot.slane %v624_v17, 5 }
  0x64   :  { %v8204_v48 = vcombine.low %v1990_v39, %v1993_v33  ;;  %v613_v40 = vsel %vm7617_vm3, %v608_v23, %v612_v36  ;;  %v630_v1 = vrot.slane %v628_v37, 4  ;;  %v634_v2 = vshll.u32 %v8190_v58, 16  ;;  %v8221_v39 = vld [vmem:[%s9891_s0 + $0x118] sm:$0xf]  ;;  %v8227_v23 = vld [vmem:[%s9891_s0 + $0x11c] sm:$0x1] }
  0x65   :  { %v8214_v63 = vcombine.low %v603_v60, %v613_v40  ;;  %v621_v27 = vor.u32 %v620_v30, %v617_v46  ;;  %v5573_v41 = vrot.slane %v7642_v51, 9  ;;  %v1996_v28 = vrot.slane %v7659_v61, 5 }
  0x66   :  { %10037 = vst [vmem:[#allocation30_spill] sm:$0xff] %v8204_v48  ;;  %v631_v13 = vor.u32 %v630_v1, %v626_v12  ;;  %v636_v8 = vrot.slane %v634_v2, 5  ;;  %v1999_v36 = vrot.slane %v7664_v62, 5  ;;  %v639_v33 = vshrl.u32 %v8209_v11, 16 }
  0x67   :  { %10038 = vst [vmem:[#allocation31_spill] sm:$0xff] %v8214_v63  ;;  %6275 = vmatmul.mubr.msk.bf16.gmra.mrb[36].mxu1 %vm1000_vm4, %v8214_v63  ;;  %v622_v51 = vrot.slane %v621_v27, 4  ;;  %v1997_v61 = vsel %vm8138_vm7, %v5573_v41, %v1996_v28  ;;  %v1998_v17 = vrot.slane %v1996_v28, 4  ;;  %v642_v37 = vshll.u32 %v8209_v11, 16  ;;  %v8247_v41 = vld [vmem:[%s9891_s0 + $0x120] sm:$0xf] }
  0x68   :  { %v632_v60 = vrot.slane %v631_v13, 4  ;;  %v641_v46 = vrot.slane %v639_v33, 4  ;;  %v648_v62 = vshll.u32 %v8221_v39, 16  ;;  %v652_v30 = vshrl.u32 %v8221_v39, 16  ;;  %6569 = vmatmul.mubr.msk.bf16.vlgmr.msra.gmra.mrb[0].mxu0 %vm1000_vm4, %v8204_v48 }
  0x69   :  { %v627_v40 = vsel %vm7617_vm3, %v622_v51, %v626_v12  ;;  %v2000_v27 = vsel %vm8138_vm7, %v1998_v17, %v1999_v36  ;;  %v644_v1 = vrot.slane %v642_v37, 5  ;;  %v658_v2 = vshll.u32 %v8227_v23, 16  ;;  %6633 = vmatpush3.bf16.msra.mxu0 %v3944_v14  ;;  %v8256_v12 = vld [vmem:[%s9891_s0 + $0x124] sm:$0xf] }
  0x6a   :  { %v637_v28 = vsel %vm7617_vm3, %v632_v60, %v636_v8  ;;  %v8251_v13 = vcombine.low %v1997_v61, %v2000_v27  ;;  %v650_v33 = vrot.slane %v648_v62, 5  ;;  %v654_v63 = vrot.slane %v652_v30, 4 }
  0x6b   :  { %v8258_v36 = vcombine.low %v627_v40, %v637_v28  ;;  %v645_v51 = vor.u32 %v644_v1, %v641_v46  ;;  %v660_v17 = vrot.slane %v658_v2, 5  ;;  %v5574_v37 = vrot.slane %v7674_v4, 9  ;;  %v8271_v46 = vld [vmem:[%s9891_s0 + $0x128] sm:$0x1] }
  0x6c   :  { %10039 = vst [vmem:[#allocation32_spill] sm:$0xff] %v8251_v13  ;;  %6572 = vmatprep.mubr.msk.bf16.mxu0 %vm1000_vm4, %v8251_v13  ;;  %v655_v14 = vor.u32 %v654_v63, %v650_v33  ;;  %v2003_v8 = vrot.slane %v7684_v16, 5  ;;  %v2006_v61 = vrot.slane %v7693_v20, 5  ;;  %v663_v60 = vshrl.u32 %v8247_v41, 16 }
  0x6d   :  { %10040 = vst [vmem:[#allocation33_spill] sm:$0xff] %v8258_v36  ;;  %6278 = vmatprep.mubr.msk.bf16.mxu1 %vm1000_vm4, %v8258_v36  ;;  %v646_v62 = vrot.slane %v645_v51, 4  ;;  %v666_v4 = vshll.u32 %v8247_v41, 16  ;;  %v672_v30 = vshll.u32 %v8256_v12, 16  ;;  %v676_v63 = vshrl.u32 %v8256_v12, 16 }
  0x6e   :  { %v656_v16 = vrot.slane %v655_v14, 4  ;;  %v2004_v20 = vsel %vm8138_vm7, %v5574_v37, %v2003_v8  ;;  %v2005_v40 = vrot.slane %v2003_v8, 4  ;;  %v665_v27 = vrot.slane %v663_v60, 4  ;;  %v8283_v36 = vld [vmem:[%s9891_s0 + $0x12c] sm:$0xf] }
  0x6f   :  { %v651_v1 = vsel %vm7617_vm3, %v646_v62, %v650_v33  ;;  %v668_v2 = vrot.slane %v666_v4, 5  ;;  %v674_v28 = vrot.slane %v672_v30, 5  ;;  %v678_v51 = vrot.slane %v676_v63, 4  ;;  %v8294_v33 = vld [vmem:[%s9891_s0 + $0x130] sm:$0xf] }
  0x70   :  { %v661_v13 = vsel %vm7617_vm3, %v656_v16, %v660_v17  ;;  %v2007_v14 = vsel %vm8138_vm7, %v2005_v40, %v2006_v61  ;;  %v682_v37 = vshll.u32 %v8271_v46, 16  ;;  %v5575_v8 = vrot.slane %v7701_v32, 9 }
  0x71   :  { %v8296_v60 = vcombine.low %v651_v1, %v661_v13  ;;  %v8298_v62 = vcombine.low %v2004_v20, %v2007_v14  ;;  %v669_v4 = vor.u32 %v668_v2, %v665_v27  ;;  %v679_v30 = vor.u32 %v678_v51, %v674_v28  ;;  %v8310_v20 = vld [vmem:[%s9891_s0 + $0x134] sm:$0x1] }
  0x72   :  { %v684_v63 = vrot.slane %v682_v37, 5  ;;  %v2010_v17 = vrot.slane %v7710_v38, 5  ;;  %v2013_v61 = vrot.slane %v7724_v52, 5  ;;  %v687_v16 = vshrl.u32 %v8283_v36, 16 }
  0x73   :  { %10041 = vst [vmem:[#allocation34_spill] sm:$0xff] %v8296_v60  ;;  %10042 = vst [vmem:[#allocation35_spill] sm:$0xff] %v8298_v62  ;;  %6279 = vmatmul.mubr.msk.bf16.gmra.mrb[40].mxu1 %vm1000_vm4, %v8296_v60  ;;  %6573 = vmatmul.mubr.msk.bf16.gmra.mrb[4].mxu0 %vm1000_vm4, %v8298_v62  ;;  %v670_v32 = vrot.slane %v669_v4, 4  ;;  %v680_v13 = vrot.slane %v679_v30, 4  ;;  %v690_v40 = vshll.u32 %v8283_v36, 16  ;;  %v696_v38 = vshll.u32 %v8294_v33, 16 }
  0x74   :  { %v2011_v52 = vsel %vm8138_vm7, %v5575_v8, %v2010_v17  ;;  %v2012_v27 = vrot.slane %v2010_v17, 4  ;;  %v689_v1 = vrot.slane %v687_v16, 4  ;;  %v700_v2 = vshrl.u32 %v8294_v33, 16  ;;  %v8324_v30 = vld [vmem:[%s9891_s0 + $0x138] sm:$0xf] }
  0x75   :  { %v675_v51 = vsel %vm7617_vm3, %v670_v32, %v674_v28  ;;  %v685_v14 = vsel %vm7617_vm3, %v680_v13, %v684_v63  ;;  %v692_v37 = vrot.slane %v690_v40, 5  ;;  %v698_v4 = vrot.slane %v696_v38, 5  ;;  %v8338_v13 = vld [vmem:[%s9891_s0 + $0x13c] sm:$0xf]  ;;  %v8343_v40 = vld [vmem:[%s9891_s0 + $0x140] sm:$0x1] }
  0x76   :  { %v8326_v60 = vcombine.low %v675_v51, %v685_v14  ;;  %v2014_v8 = vsel %vm8138_vm7, %v2012_v27, %v2013_v61  ;;  %v702_v17 = vrot.slane %v700_v2, 4  ;;  %v706_v16 = vshll.u32 %v8310_v20, 16 }
  0x77   :  { %v8331_v62 = vcombine.low %v2011_v52, %v2014_v8  ;;  %v693_v28 = vor.u32 %v692_v37, %v689_v1  ;;  %v5576_v63 = vrot.slane %v7734_v0, 9  ;;  %v2017_v32 = vrot.slane %v7741_v3, 5  ;;  %v8352_v3 = vld [vmem:[%s9892_s1 + $0xe] sm:$0x3] }
  0x78   :  { %10043 = vst [vmem:[#allocation36_spill] sm:$0xff] %v8326_v60  ;;  %6282 = vmatprep.mubr.msk.bf16.mxu1 %vm1000_vm4, %v8326_v60  ;;  %v703_v61 = vor.u32 %v702_v17, %v698_v4  ;;  %v708_v38 = vrot.slane %v706_v16, 5  ;;  %v2020_v52 = vrot.slane %v7755_v18, 5  ;;  %v711_v0 = vshrl.u32 %v8324_v30, 16  ;;  %10045 = vst [vmem:[#allocation38_spill] sm:$0xff] %v8352_v3  ;;  %7411 = vmatprep.subr.msk.bf16.mxu0 %vm1097_vm0, %v8352_v3 }
  0x79   :  { %10044 = vst [vmem:[#allocation37_spill] sm:$0xff] %v8331_v62  ;;  %6576 = vmatprep.mubr.msk.bf16.mxu0 %vm1000_vm4, %v8331_v62  ;;  %v694_v27 = vrot.slane %v693_v28, 4  ;;  %v2018_v1 = vsel %vm8138_vm7, %v5576_v63, %v2017_v32  ;;  %v2019_v2 = vrot.slane %v2017_v32, 4  ;;  %v714_v51 = vshll.u32 %v8324_v30, 16  ;;  %v8371_v32 = vld [vmem:[%s9891_s0 + $0x144] sm:$0xf] }
  0x7a   :  { %v704_v18 = vrot.slane %v703_v61, 4  ;;  %v713_v14 = vrot.slane %v711_v0, 4  ;;  %v720_v37 = vshll.u32 %v8338_v13, 16  ;;  %v724_v8 = vshrl.u32 %v8338_v13, 16 }
  0x7b   :  { %v699_v17 = vsel %vm7617_vm3, %v694_v27, %v698_v4  ;;  %v2021_v16 = vsel %vm8138_vm7, %v2019_v2, %v2020_v52  ;;  %v716_v28 = vrot.slane %v714_v51, 5  ;;  %v730_v63 = vshll.u32 %v8343_v40, 16  ;;  %v8380_v4 = vld [vmem:[%s9891_s0 + $0x148] sm:$0xf] }
  0x7c   :  { %v709_v61 = vsel %vm7617_vm3, %v704_v18, %v708_v38  ;;  %v8375_v0 = vcombine.low %v2018_v1, %v2021_v16  ;;  %v722_v60 = vrot.slane %v720_v37, 5  ;;  %v726_v62 = vrot.slane %v724_v8, 4 }
  0x7d   :  { %v8382_v52 = vcombine.low %v699_v17, %v709_v61  ;;  %v717_v27 = vor.u32 %v716_v28, %v713_v14  ;;  %v732_v2 = vrot.slane %v730_v63, 5  ;;  %v5577_v51 = vrot.slane %v7765_v25, 9  ;;  %v8395_v14 = vld [vmem:[%s9891_s0 + $0x14c] sm:$0x1] }
  0x7e   :  { %10046 = vst [vmem:[#allocation39_spill] sm:$0xff] %v8375_v0  ;;  %6577 = vmatmul.mubr.msk.bf16.gmra.mrb[8].mxu0 %vm1000_vm4, %v8375_v0  ;;  %v727_v48 = vor.u32 %v726_v62, %v722_v60  ;;  %v2024_v38 = vrot.slane %v7772_v34, 5  ;;  %v2027_v1 = vrot.slane %v7785_v45, 5  ;;  %v735_v18 = vshrl.u32 %v8371_v32, 16 }
  0x7f   :  { %10047 = vst [vmem:[#allocation40_spill] sm:$0xff] %v8382_v52  ;;  %6283 = vmatmul.mubr.msk.bf16.gmra.mrb[44].mxu1 %vm1000_vm4, %v8382_v52  ;;  %v718_v37 = vrot.slane %v717_v27, 4  ;;  %v738_v25 = vshll.u32 %v8371_v32, 16  ;;  %v744_v8 = vshll.u32 %v8380_v4, 16  ;;  %v748_v62 = vshrl.u32 %v8380_v4, 16 }
  0x80   :  { %v728_v34 = vrot.slane %v727_v48, 4  ;;  %v2025_v45 = vsel %vm8138_vm7, %v5577_v51, %v2024_v38  ;;  %v2026_v17 = vrot.slane %v2024_v38, 4  ;;  %v737_v16 = vrot.slane %v735_v18, 4  ;;  %v8407_v52 = vld [vmem:[%s9891_s0 + $0x150] sm:$0xf] }
  0x81   :  { %v723_v28 = vsel %vm7617_vm3, %v718_v37, %v722_v60  ;;  %v740_v63 = vrot.slane %v738_v25, 5  ;;  %v746_v61 = vrot.slane %v744_v8, 5  ;;  %v750_v27 = vrot.slane %v748_v62, 4  ;;  %v8418_v60 = vld [vmem:[%s9891_s0 + $0x154] sm:$0xf] }
  0x82   :  { %v733_v0 = vsel %vm7617_vm3, %v728_v34, %v732_v2  ;;  %v2028_v48 = vsel %vm8138_vm7, %v2026_v17, %v2027_v1  ;;  %v754_v51 = vshll.u32 %v8395_v14, 16  ;;  %v5578_v38 = vrot.slane %v7795_v54, 9 }
  0x83   :  { %v8420_v18 = vcombine.low %v723_v28, %v733_v0  ;;  %v8422_v37 = vcombine.low %v2025_v45, %v2028_v48  ;;  %v741_v25 = vor.u32 %v740_v63, %v737_v16  ;;  %v751_v8 = vor.u32 %v750_v27, %v746_v61  ;;  %v8434_v45 = vld [vmem:[%s9891_s0 + $0x158] sm:$0x1] }
  0x84   :  { %v756_v62 = vrot.slane %v754_v51, 5  ;;  %v2031_v2 = vrot.slane %v7802_v5, 5  ;;  %v2034_v1 = vrot.slane %v7815_v15, 5  ;;  %v759_v34 = vshrl.u32 %v8407_v52, 16 }
  0x85   :  { %10048 = vst [vmem:[#allocation41_spill] sm:$0xff] %v8420_v18  ;;  %10049 = vst [vmem:[#allocation42_spill] sm:$0xff] %v8422_v37  ;;  %6286 = vmatprep.mubr.msk.bf16.mxu1 %vm1000_vm4, %v8420_v18  ;;  %6580 = vmatprep.mubr.msk.bf16.mxu0 %vm1000_vm4, %v8422_v37  ;;  %v742_v54 = vrot.slane %v741_v25, 4  ;;  %v752_v0 = vrot.slane %v751_v8, 4  ;;  %v762_v17 = vshll.u32 %v8407_v52, 16  ;;  %v768_v5 = vshll.u32 %v8418_v60, 16 }
  0x86   :  { %v2032_v15 = vsel %vm8138_vm7, %v5578_v38, %v2031_v2  ;;  %v2033_v16 = vrot.slane %v2031_v2, 4  ;;  %v761_v28 = vrot.slane %v759_v34, 4  ;;  %v772_v63 = vshrl.u32 %v8418_v60, 16  ;;  %v8448_v8 = vld [vmem:[%s9891_s0 + $0x15c] sm:$0xf] }
  0x87   :  { %v747_v27 = vsel %vm7617_vm3, %v742_v54, %v746_v61  ;;  %v757_v48 = vsel %vm7617_vm3, %v752_v0, %v756_v62  ;;  %v764_v51 = vrot.slane %v762_v17, 5  ;;  %v770_v25 = vrot.slane %v768_v5, 5  ;;  %v8462_v0 = vld [vmem:[%s9891_s0 + $0x160] sm:$0xf] }
  0x88   :  { %v8450_v18 = vcombine.low %v747_v27, %v757_v48  ;;  %v2035_v38 = vsel %vm8138_vm7, %v2033_v16, %v2034_v1  ;;  %v774_v2 = vrot.slane %v772_v63, 4  ;;  %v778_v34 = vshll.u32 %v8434_v45, 16 }
  0x89   :  { %v8455_v37 = vcombine.low %v2032_v15, %v2035_v38  ;;  %v765_v61 = vor.u32 %v764_v51, %v761_v28  ;;  %v5579_v62 = vrot.slane %v7824_v35, 9  ;;  %v2038_v54 = vrot.slane %v7832_v44, 5  ;;  %v8470_v15 = vld [vmem:[%s9891_s0 + $0x164] sm:$0x1] }
  0x8a   :  { %10050 = vst [vmem:[#allocation43_spill] sm:$0xff] %v8450_v18  ;;  %6287 = vmatmul.mubr.msk.bf16.gmra.mrb[48].mxu1 %vm1000_vm4, %v8450_v18  ;;  %v775_v17 = vor.u32 %v774_v2, %v770_v25  ;;  %v780_v1 = vrot.slane %v778_v34, 5  ;;  %v2041_v5 = vrot.slane %v7841_v50, 5  ;;  %10052 = vst [vmem:[#allocation45_spill] sm:$0xff] %v8470_v15  ;;  %v783_v35 = vshrl.u32 %v8448_v8, 16 }
  0x8b   :  { %10051 = vst [vmem:[#allocation44_spill] sm:$0xff] %v8455_v37  ;;  %6581 = vmatmul.mubr.msk.bf16.gmra.mrb[12].mxu0 %vm1000_vm4, %v8455_v37  ;;  %v766_v44 = vrot.slane %v765_v61, 4  ;;  %v2039_v16 = vsel %vm8138_vm7, %v5579_v62, %v2038_v54  ;;  %v2040_v28 = vrot.slane %v2038_v54, 4  ;;  %v786_v63 = vshll.u32 %v8448_v8, 16  ;;  %v8488_v62 = vld [vmem:[%s9891_s0 + $0x168] sm:$0xf] }
  0x8c   :  { %v776_v27 = vrot.slane %v775_v17, 4  ;;  %v785_v48 = vrot.slane %v783_v35, 4  ;;  %v792_v50 = vshll.u32 %v8462_v0, 16  ;;  %v796_v51 = vshrl.u32 %v8462_v0, 16  ;;  %10053 = vst [vmem:[#allocation46_spill] sm:$0xff] %v8488_v62 }
  0x8d   :  { %v771_v38 = vsel %vm7617_vm3, %v766_v44, %v770_v25  ;;  %v2042_v2 = vsel %vm8138_vm7, %v2040_v28, %v2041_v5  ;;  %v788_v34 = vrot.slane %v786_v63, 5  ;;  %v802_v61 = vshll.u32 %v8470_v15, 16  ;;  %v8497_v25 = vld [vmem:[%s9891_s0 + $0x16c] sm:$0xf] }
  0x8e   :  { %v781_v54 = vsel %vm7617_vm3, %v776_v27, %v780_v1  ;;  %v8492_v17 = vcombine.low %v2039_v16, %v2042_v2  ;;  %v794_v35 = vrot.slane %v792_v50, 5  ;;  %v798_v18 = vrot.slane %v796_v51, 4  ;;  %10055 = vst [vmem:[#allocation48_spill] sm:$0xff] %v8497_v25 }
  0x8f   :  { %v8499_v5 = vcombine.low %v771_v38, %v781_v54  ;;  %v789_v44 = vor.u32 %v788_v34, %v785_v48  ;;  %v804_v28 = vrot.slane %v802_v61, 5  ;;  %v5580_v63 = vrot.slane %v7854_v10, 9  ;;  %v8512_v48 = vld [vmem:[%s9891_s0 + $0x170] sm:$0x1] }
  0x90   :  { %10054 = vst [vmem:[#allocation47_spill] sm:$0xff] %v8492_v17  ;;  %6584 = vmatprep.mubr.msk.bf16.mxu0 %vm1000_vm4, %v8492_v17  ;;  %v799_v37 = vor.u32 %v798_v18, %v794_v35  ;;  %v2045_v1 = vrot.slane %v7862_v56, 5  ;;  %v2048_v16 = vrot.slane %v7871_v22, 5  ;;  %v807_v27 = vshrl.u32 %v8488_v62, 16  ;;  %10057 = vst [vmem:[#allocation50_spill] sm:$0xff] %v8512_v48 }
  0x91   :  { %10056 = vst [vmem:[#allocation49_spill] sm:$0xff] %v8499_v5  ;;  %6290 = vmatprep.mubr.msk.bf16.mxu1 %vm1000_vm4, %v8499_v5  ;;  %v790_v50 = vrot.slane %v789_v44, 4  ;;  %v810_v10 = vshll.u32 %v8488_v62, 16  ;;  %v816_v51 = vshll.u32 %v8497_v25, 16  ;;  %v820_v18 = vshrl.u32 %v8497_v25, 16 }
  0x92   :  { %v800_v56 = vrot.slane %v799_v37, 4  ;;  %v2046_v22 = vsel %vm8138_vm7, %v5580_v63, %v2045_v1  ;;  %v2047_v38 = vrot.slane %v2045_v1, 4  ;;  %v809_v2 = vrot.slane %v807_v27, 4  ;;  %v8524_v5 = vld [vmem:[%s9891_s0 + $0x174] sm:$0xf] }
  0x93   :  { %v795_v34 = vsel %vm7617_vm3, %v790_v50, %v794_v35  ;;  %v812_v61 = vrot.slane %v810_v10, 5  ;;  %v818_v54 = vrot.slane %v816_v51, 5  ;;  %v822_v44 = vrot.slane %v820_v18, 4  ;;  %v8535_v35 = vld [vmem:[%s9891_s0 + $0x178] sm:$0xf] }
  0x94   :  { %v805_v17 = vsel %vm7617_vm3, %v800_v56, %v804_v28  ;;  %v2049_v37 = vsel %vm8138_vm7, %v2047_v38, %v2048_v16  ;;  %v826_v63 = vshll.u32 %v8512_v48, 16  ;;  %v5581_v1 = vrot.slane %v7886_v53, 9 }
  0x95   :  { %v8537_v27 = vcombine.low %v795_v34, %v805_v17  ;;  %v8539_v50 = vcombine.low %v2046_v22, %v2049_v37  ;;  %v813_v10 = vor.u32 %v812_v61, %v809_v2  ;;  %v823_v51 = vor.u32 %v822_v44, %v818_v54  ;;  %v8551_v22 = vld [vmem:[%s9891_s0 + $0x17c] sm:$0x1] }
  0x96   :  { %v828_v18 = vrot.slane %v826_v63, 5  ;;  %v2052_v28 = vrot.slane %v7893_v57, 5  ;;  %v2055_v16 = vrot.slane %v7914_v47, 5  ;;  %v831_v56 = vshrl.u32 %v8524_v5, 16 }
  0x97   :  { %10058 = vst [vmem:[#allocation51_spill] sm:$0xff] %v8537_v27  ;;  %10059 = vst [vmem:[#allocation52_spill] sm:$0xff] %v8539_v50  ;;  %6291 = vmatmul.mubr.msk.bf16.gmra.mrb[52].mxu1 %vm1000_vm4, %v8537_v27  ;;  %6585 = vmatmul.mubr.msk.bf16.gmra.mrb[16].mxu0 %vm1000_vm4, %v8539_v50  ;;  %v814_v53 = vrot.slane %v813_v10, 4  ;;  %v824_v17 = vrot.slane %v823_v51, 4  ;;  %v834_v38 = vshll.u32 %v8524_v5, 16  ;;  %v840_v57 = vshll.u32 %v8535_v35, 16 }
  0x98   :  { %v2053_v47 = vsel %vm8138_vm7, %v5581_v1, %v2052_v28  ;;  %v2054_v2 = vrot.slane %v2052_v28, 4  ;;  %v833_v34 = vrot.slane %v831_v56, 4  ;;  %v844_v61 = vshrl.u32 %v8535_v35, 16  ;;  %v8565_v51 = vld [vmem:[%s9891_s0 + $0x180] sm:$0xf] }
  0x99   :  { %v819_v44 = vsel %vm7617_vm3, %v814_v53, %v818_v54  ;;  %v829_v37 = vsel %vm7617_vm3, %v824_v17, %v828_v18  ;;  %v836_v63 = vrot.slane %v834_v38, 5  ;;  %v842_v10 = vrot.slane %v840_v57, 5  ;;  %v8577_v18 = vld [vmem:[%s9891_s0 + $0x90] sm:$0xf]  ;;  %v8583_v17 = vld [vmem:[%s9891_s0 + $0x94] sm:$0xf] }
  0x9a   :  { %v8567_v27 = vcombine.low %v819_v44, %v829_v37  ;;  %v2056_v1 = vsel %vm8138_vm7, %v2054_v2, %v2055_v16  ;;  %v846_v28 = vrot.slane %v844_v61, 4  ;;  %v850_v56 = vshll.u32 %v8551_v22, 16  ;;  %10062 = vst [vmem:[#allocation55_spill] sm:$0xff] %v8577_v18  ;;  %10063 = vst [vmem:[#allocation56_spill] sm:$0xff] %v8583_v17  ;;  %v8589_v38 = vld [vmem:[%s9891_s0 + $0x184] sm:$0xf] }
  0x9b   :  { %v8572_v50 = vcombine.low %v2053_v47, %v2056_v1  ;;  %v837_v54 = vor.u32 %v836_v63, %v833_v34  ;;  %v5582_v53 = vrot.slane %v8577_v18, 9  ;;  %v2059_v16 = vrot.slane %v8583_v17, 5  ;;  %v8597_v34 = vld [vmem:[%s9891_s0 + $0x188] sm:$0x1] }
  0x9c   :  { %10060 = vst [vmem:[#allocation53_spill] sm:$0xff] %v8567_v27  ;;  %6294 = vmatprep.mubr.msk.bf16.mxu1 %vm1000_vm4, %v8567_v27  ;;  %v847_v57 = vor.u32 %v846_v28, %v842_v10  ;;  %v852_v47 = vrot.slane %v850_v56, 5  ;;  %v2062_v2 = vrot.slane %v7940_v24, 5  ;;  %v855_v61 = vshrl.u32 %v8565_v51, 16 }
  0x9d   :  { %10061 = vst [vmem:[#allocation54_spill] sm:$0xff] %v8572_v50  ;;  %6588 = vmatprep.mubr.msk.bf16.mxu0 %vm1000_vm4, %v8572_v50  ;;  %v838_v44 = vrot.slane %v837_v54, 4  ;;  %v2060_v37 = vsel %vm8138_vm7, %v5582_v53, %v2059_v16  ;;  %v2061_v63 = vrot.slane %v2059_v16, 4  ;;  %v858_v1 = vshll.u32 %v8565_v51, 16  ;;  %v8615_v53 = vld [vmem:[%s9891_s0 + $0x18c] sm:$0xf] }
  0x9e   :  { %v848_v28 = vrot.slane %v847_v57, 4  ;;  %v857_v56 = vrot.slane %v855_v61, 4  ;;  %v864_v24 = vshll.u32 %v8589_v38, 16  ;;  %v868_v27 = vshrl.u32 %v8589_v38, 16 }
  0x9f   :  { %v843_v7 = vsel %vm7617_vm3, %v838_v44, %v842_v10  ;;  %v2063_v3 = vsel %vm8138_vm7, %v2061_v63, %v2062_v2  ;;  %v860_v50 = vrot.slane %v858_v1, 5  ;;  %v874_v54 = vshll.u32 %v8597_v34, 16  ;;  %v8624_v10 = vld [vmem:[%s9891_s0 + $0x190] sm:$0xf]  ;;  %v8631_v1 = vld [vmem:[%s9891_s0 + $0x9c] sm:$0xf] }
  0xa0   :  { %v853_v16 = vsel %vm7617_vm3, %v848_v28, %v852_v47  ;;  %v8619_v57 = vcombine.low %v2060_v37, %v2063_v3  ;;  %v866_v61 = vrot.slane %v864_v24, 5  ;;  %v870_v48 = vrot.slane %v868_v27, 4  ;;  %10066 = vst [vmem:[#allocation59_spill] sm:$0xff] %v8631_v1  ;;  %v8639_v27 = vld [vmem:[%s9891_s0 + $0xa0] sm:$0xf] }
  0xa1   :  { %v8626_v2 = vcombine.low %v843_v7, %v853_v16  ;;  %v861_v44 = vor.u32 %v860_v50, %v857_v56  ;;  %v876_v63 = vrot.slane %v874_v54, 5  ;;  %v5583_v47 = vrot.slane %v8631_v1, 9  ;;  %10067 = vst [vmem:[#allocation60_spill] sm:$0xff] %v8639_v27  ;;  %v7457_v50 = vld [vmem:[%s9891_s0 + $0xa4] sm:$0x1] }
  0xa2   :  { %10064 = vst [vmem:[#allocation57_spill] sm:$0xff] %v8619_v57  ;;  %6589 = vmatmul.mubr.msk.bf16.gmra.mrb[20].mxu0 %vm1000_vm4, %v8619_v57  ;;  %v871_v3 = vor.u32 %v870_v48, %v866_v61  ;;  %v2066_v7 = vrot.slane %v8639_v27, 5  ;;  %v2069_v37 = vrot.slane %v7457_v50, 5  ;;  %v879_v28 = vshrl.u32 %v8615_v53, 16  ;;  %v8651_v48 = vld [vmem:[%s9891_s0 + $0x194] sm:$0x1] }
  0xa3   :  { %10065 = vst [vmem:[#allocation58_spill] sm:$0xff] %v8626_v2  ;;  %6295 = vmatmul.mubr.msk.bf16.gmra.mrb[56].mxu1 %vm1000_vm4, %v8626_v2  ;;  %v862_v56 = vrot.slane %v861_v44, 4  ;;  %v882_v24 = vshll.u32 %v8615_v53, 16  ;;  %v888_v54 = vshll.u32 %v8624_v10, 16  ;;  %v892_v16 = vshrl.u32 %v8624_v10, 16 }
  0xa4   :  { %v872_v57 = vrot.slane %v871_v3, 4  ;;  %v2067_v50 = vsel %vm8138_vm7, %v5583_v47, %v2066_v7  ;;  %v2068_v1 = vrot.slane %v2066_v7, 4  ;;  %v881_v27 = vrot.slane %v879_v28, 4  ;;  %v8668_v47 = vld [vmem:[%s9891_s0 + $0xa8] sm:$0xf] }
  0xa5   :  { %v867_v44 = vsel %vm7617_vm3, %v862_v56, %v866_v61  ;;  %v884_v2 = vrot.slane %v882_v24, 5  ;;  %v890_v62 = vrot.slane %v888_v54, 5  ;;  %v894_v18 = vrot.slane %v892_v16, 4  ;;  %v8709_v16 = vld [vmem:[%s9891_s0 + $0xb8] sm:$0xf] }
  0xa6   :  { %v877_v17 = vsel %vm7617_vm3, %v872_v57, %v876_v63  ;;  %v2070_v25 = vsel %vm8138_vm7, %v2068_v1, %v2069_v37  ;;  %v898_v15 = vshll.u32 %v8651_v48, 16  ;;  %v5584_v3 = vrot.slane %v8668_v47, 9  ;;  %v8678_v57 = vld [vmem:[%s9891_s0 + $0xac] sm:$0xf]  ;;  %v7460_v1 = vld [vmem:[%s9891_s0 + $0xb0] sm:$0x1] }
  0xa7   :  { %v8671_v7 = vcombine.low %v867_v44, %v877_v17  ;;  %v8673_v61 = vcombine.low %v2067_v50, %v2070_v25  ;;  %v885_v28 = vor.u32 %v884_v2, %v881_v27  ;;  %v895_v56 = vor.u32 %v894_v18, %v890_v62  ;;  %v8687_v25 = vld [vmem:[%s9891_s0] sm:$0xf]  ;;  %v8703_v27 = vld [vmem:[%s9891_s0 + $0xb4] sm:$0xf] }
  0xa8   :  { %v900_v24 = vrot.slane %v898_v15, 5  ;;  %v2073_v63 = vrot.slane %v8678_v57, 5  ;;  %v2076_v37 = vrot.slane %v7460_v1, 5  ;;  %10070 = vst [vmem:[#allocation63_spill] sm:$0xff] %v8687_v25  ;;  %v8692_v15 = vld [vmem:[%s9891_s0 + $0x4] sm:$0xf] }
  0xa9   :  { %10068 = vst [vmem:[#allocation61_spill] sm:$0xff] %v8671_v7  ;;  %10069 = vst [vmem:[#allocation62_spill] sm:$0xff] %v8673_v61  ;;  %v5506_v18 = vcombine.low %v8687_v25, %v8692_v15  ;;  %6298 = vmatprep.mubr.msk.bf16.mxu1 %vm1000_vm4, %v8671_v7  ;;  %6592 = vmatprep.mubr.msk.bf16.mxu0 %vm1000_vm4, %v8673_v61  ;;  %v886_v17 = vrot.slane %v885_v28, 4  ;;  %v896_v2 = vrot.slane %v895_v56, 4  ;;  %v5585_v54 = vrot.slane %v8703_v27, 9 }
  0xaa   :  { %10071 = vst [vmem:[#allocation64_spill] sm:$0xff] %v8692_v15  ;;  %10072 = vst [vmem:[#allocation65_spill] sm:$0xff] %v8703_v27  ;;  %v2080_v50 = vrot.slane %v8709_v16, 5  ;;  %v2074_v44 = vsel %vm8138_vm7, %v5584_v3, %v2073_v63  ;;  %v2075_v1 = vrot.slane %v2073_v63, 4  ;;  %v2083_v28 = vrot.slane %v7994_v31, 5 }
  0xab   :  { %v5737_v56 = vrot.slane %v8005_v19, 9  ;;  %v891_v7 = vsel %vm7617_vm3, %v886_v17, %v890_v62  ;;  %v901_v61 = vsel %vm7617_vm3, %v896_v2, %v900_v24  ;;  %v3543_v63 = vrot.slane %v8012_v21, 5  ;;  %v10074_v17 = vld [vmem:[#allocation20_spill] sm:$0xff]  ;;  %v10076_v21 = vld [vmem:[#allocation23_spill] sm:$0xff] }
  0xac   :  { %v2081_v25 = vsel %vm8138_vm7, %v5585_v54, %v2080_v50  ;;  %v2082_v15 = vrot.slane %v2080_v50, 4  ;;  %v8722_v27 = vcombine.low %v891_v7, %v901_v61  ;;  %v2077_v3 = vsel %vm8138_vm7, %v2075_v1, %v2076_v37  ;;  %v10075_v61 = vld [vmem:[#allocation21_spill] sm:$0xff]  ;;  %v7466_v1 = vld [vmem:[%s9891_s0 + $0x10] sm:$0xf] }
  0xad   :  { %v3546_v31 = vrot.slane %v8024_v43, 5  ;;  %v8728_v19 = vcombine.low %v2074_v44, %v2077_v3  ;;  %v5587_v24 = vrot.slane %v10074_v17, 9  ;;  %v3545_v7 = vrot.slane %v3543_v63, 4 }
  0xae   :  { %10073 = vst [vmem:[#allocation66_spill] sm:$0xff] %v8722_v27  ;;  %v2084_v62 = vsel %vm8138_vm7, %v2082_v15, %v2083_v28  ;;  %6299 = vmatmul.mubr.msk.bf16.gmra.mrb[60].mxu1 %vm1000_vm4, %v8722_v27  ;;  %v2094_v54 = vrot.slane %v10075_v61, 5  ;;  %v2097_v43 = vrot.slane %v10076_v21, 5  ;;  %v3544_v37 = vsel %vm8138_vm7, %v5737_v56, %v3543_v63 }
  0xaf   :  { %v8735_v2 = vcombine.low %v2081_v25, %v2084_v62  ;;  %6593 = vmatmul.mubr.msk.bf16.gmra.mrb[24].mxu0 %vm1000_vm4, %v8728_v19  ;;  %6304 = vmatprep.mubr.msk.bf16.mxu1 %vm1000_vm4, %v5506_v18  ;;  %v3547_v25 = vsel %vm8138_vm7, %v3545_v7, %v3546_v31  ;;  %v2101_v50 = vrot.slane %v8098_v6, 5  ;;  %v7465_v18 = vld [vmem:[%s9891_s0 + $0xc] sm:$0xf]  ;;  %v2108_v3 = vrot.slane %v8125_v55, 5  ;;  %v7467_v6 = vld [vmem:[%s9891_s0 + $0x18] sm:$0xf] }
  0xb0   :  { %v2096_v15 = vrot.slane %v2094_v54, 4  ;;  %v2095_v44 = vsel %vm8138_vm7, %v5587_v24, %v2094_v54  ;;  %v8757_v28 = vcombine.low %v7465_v18, %v7466_v1  ;;  %v8762_v63 = vcombine.low %v3544_v37, %v3547_v25  ;;  %v7468_v31 = vld [vmem:[%s9891_s0 + $0x1c] sm:$0xf]  ;;  %v10078_v24 = vld [vmem:[#allocation25_spill] sm:$0xff]  ;;  %v10079_v55 = vld [vmem:[#allocation27_spill] sm:$0xff] }
  0xb1   :  { %6596 = vmatprep.mubr.msk.bf16.mxu0 %vm1000_vm4, %v8735_v2  ;;  %v8770_v62 = vcombine.low %v7467_v6, %v7468_v31  ;;  %v5588_v7 = vrot.slane %v10078_v24, 9  ;;  %v2103_v61 = vrot.slane %v2101_v50, 4  ;;  %v2104_v54 = vrot.slane %v8110_v49, 5  ;;  %v10080_v25 = vld [vmem:[#allocation24_spill] sm:$0xff]  ;;  %v7469_v6 = vld [vmem:[%s9891_s0 + $0x24] sm:$0xf] }
  0xb2   :  { %v2098_v56 = vsel %vm8138_vm7, %v2096_v15, %v2097_v43  ;;  %10077 = vst [vmem:[#allocation20_spill] sm:$0xff] %v8762_v63  ;;  %v5589_v21 = vrot.slane %v10079_v55, 9  ;;  %v2110_v43 = vrot.slane %v2108_v3, 4  ;;  %v2111_v37 = vrot.slane %v8136_v9, 5 }
  0xb3   :  { %v8772_v17 = vcombine.low %v2095_v44, %v2098_v56  ;;  %v2392_v15 = vsel %vm1097_vm0, %v10080_v25, 0  ;;  %v2102_v49 = vsel %vm8138_vm7, %v5588_v7, %v2101_v50  ;;  %v2105_v9 = vsel %vm8138_vm7, %v2103_v61, %v2104_v54  ;;  %v7470_v50 = vld [vmem:[%s9891_s0 + $0x28] sm:$0xf] }
  0xb4   :  { %v2115_v44 = vrot.slane %v8171_v26, 5  ;;  %v2109_v18 = vsel %vm8138_vm7, %v5589_v21, %v2108_v3  ;;  %v2112_v1 = vsel %vm8138_vm7, %v2110_v43, %v2111_v37  ;;  %v2122_v56 = vrot.slane %v8221_v39, 5  ;;  %v7471_v26 = vld [vmem:[%s9891_s0 + $0x30] sm:$0xf]  ;;  %v7472_v39 = vld [vmem:[%s9891_s0 + $0x34] sm:$0xf] }
  0xb5   :  { %v8804_v31 = vcombine.low %v7469_v6, %v7470_v50  ;;  %v8806_v24 = vcombine.low %v2102_v49, %v2105_v9  ;;  %v8814_v3 = vcombine.low %v7471_v26, %v7472_v39  ;;  %v8816_v7 = vcombine.low %v2109_v18, %v2112_v1  ;;  %v7473_v49 = vld [vmem:[%s9891_s0 + $0x3c] sm:$0xf]  ;;  %v7474_v9 = vld [vmem:[%s9891_s0 + $0x40] sm:$0xf]  ;;  %v7476_v50 = vld [vmem:[%s9891_s0 + $0x4c] sm:$0xf] }
  0xb6   :  { %6305 = vmatmul.mubr.msk.bf16.vlgmr.msra.gmra.mrb[0].mxu1 %vm1000_vm4, %v8757_v28  ;;  %v5590_v61 = vrot.slane %v8159_v59, 9  ;;  %v2117_v54 = vrot.slane %v2115_v44, 4  ;;  %v2118_v55 = vrot.slane %v8190_v58, 5  ;;  %v5591_v21 = vrot.slane %v8209_v11, 9  ;;  %v8832_v59 = vld [vmem:[%s9892_s1 + $0x6] sm:$0x3] }
  0xb7   :  { %6597 = vmatmul.mubr.msk.bf16.gmra.mrb[28].mxu0 %vm1000_vm4, %v8762_v63  ;;  %6308 = vmatprep.mubr.msk.bf16.mxu1 %vm1000_vm4, %v8770_v62  ;;  %v2124_v43 = vrot.slane %v2122_v56, 4  ;;  %v2125_v37 = vrot.slane %v8227_v23, 5  ;;  %v2129_v25 = vrot.slane %v8256_v12, 5  ;;  %v2136_v23 = vrot.slane %v8294_v33, 5 }
  0xb8   :  { %6600 = vmatprep.mubr.msk.bf16.mxu0 %vm1000_vm4, %v8772_v17  ;;  %6369 = vmatpush3.bf16.msra.mxu1 %v2392_v15  ;;  %v2116_v58 = vsel %vm8138_vm7, %v5590_v61, %v2115_v44  ;;  %v2119_v11 = vsel %vm8138_vm7, %v2117_v54, %v2118_v55  ;;  %v2123_v12 = vsel %vm8138_vm7, %v5591_v21, %v2122_v56  ;;  %v5592_v18 = vrot.slane %v8247_v41, 9  ;;  %v7475_v56 = vld [vmem:[%s9891_s0 + $0x48] sm:$0xf]  ;;  %v7477_v21 = vld [vmem:[%s9891_s0 + $0x54] sm:$0xf] }
  0xb9   :  { %7406 = vmatprep.subr.msk.bf16.mxu1 %vm1097_vm0, %v8832_v59  ;;  %v2126_v15 = vsel %vm8138_vm7, %v2124_v43, %v2125_v37  ;;  %v8853_v44 = vcombine.low %v7473_v49, %v7474_v9  ;;  %v5593_v1 = vrot.slane %v8283_v36, 9  ;;  %v8857_v6 = vcombine.low %v2116_v58, %v2119_v11  ;;  %v7478_v43 = vld [vmem:[%s9891_s0 + $0x58] sm:$0xf]  ;;  %v7479_v58 = vld [vmem:[%s9891_s0 + $0x60] sm:$0xf] }
  0xba   :  { %v8865_v26 = vcombine.low %v7475_v56, %v7476_v50  ;;  %v2131_v39 = vrot.slane %v2129_v25, 4  ;;  %v2132_v61 = vrot.slane %v8271_v46, 5  ;;  %v8868_v54 = vcombine.low %v2123_v12, %v2126_v15  ;;  %v7480_v46 = vld [vmem:[%s9891_s0 + $0x64] sm:$0xf] }
  0xbb   :  { %v2138_v41 = vrot.slane %v2136_v23, 4  ;;  %v2139_v55 = vrot.slane %v8310_v20, 5  ;;  %v8877_v37 = vcombine.low %v7477_v21, %v7478_v43  ;;  %v8885_v11 = vcombine.low %v7479_v58, %v7480_v46 }
  0xbc   :  { %v2130_v20 = vsel %vm8138_vm7, %v5592_v18, %v2129_v25  ;;  %v2137_v12 = vsel %vm8138_vm7, %v5593_v1, %v2136_v23  ;;  %v5599_v15 = vrot.slane %v8524_v5, 9  ;;  %v2178_v49 = vrot.slane %v8535_v35, 5 }
  0xbd   :  { %v2133_v9 = vsel %vm8138_vm7, %v2131_v39, %v2132_v61  ;;  %v5594_v56 = vrot.slane %v8324_v30, 9  ;;  %v2143_v25 = vrot.slane %v8338_v13, 5  ;;  %v2181_v18 = vrot.slane %v8551_v22, 5 }
  0xbe   :  { %6309 = vmatmul.mubr.msk.bf16.gmra.mrb[4].mxu1 %vm1000_vm4, %v8804_v31  ;;  %v2140_v23 = vsel %vm8138_vm7, %v2138_v41, %v2139_v55  ;;  %v2179_v1 = vsel %vm8138_vm7, %v5599_v15, %v2178_v49  ;;  %v2180_v50 = vrot.slane %v2178_v49, 4  ;;  %v5600_v21 = vrot.slane %v8565_v51, 9 }
  0xbf   :  { %6601 = vmatmul.mubr.msk.bf16.gmra.mrb[32].mxu0 %vm1000_vm4, %v8806_v24  ;;  %6312 = vmatprep.mubr.msk.bf16.mxu1 %vm1000_vm4, %v8814_v3  ;;  %v2150_v39 = vrot.slane %v8380_v4, 5  ;;  %v2185_v61 = vrot.slane %v8589_v38, 5  ;;  %v2188_v43 = vrot.slane %v8597_v34, 5  ;;  %v5601_v22 = vrot.slane %v8615_v53, 9 }
  0xc0   :  { %6604 = vmatprep.mubr.msk.bf16.mxu0 %vm1000_vm4, %v8816_v7  ;;  %v8915_v58 = vcombine.low %v2130_v20, %v2133_v9  ;;  %v2182_v46 = vsel %vm8138_vm7, %v2180_v50, %v2181_v18  ;;  %v2192_v41 = vrot.slane %v8624_v10, 5  ;;  %v2195_v55 = vrot.slane %v8651_v48, 5 }
  0xc1   :  { %v2146_v15 = vrot.slane %v8343_v40, 5  ;;  %v8922_v49 = vcombine.low %v2179_v1, %v2182_v46  ;;  %v2186_v63 = vsel %vm8138_vm7, %v5600_v21, %v2185_v61  ;;  %v2187_v27 = vrot.slane %v2185_v61, 4 }
  0xc2   :  { %v8926_v34 = vcombine.low %v2137_v12, %v2140_v23  ;;  %v2145_v29 = vrot.slane %v2143_v25, 4  ;;  %v2193_v20 = vsel %vm8138_vm7, %v5601_v22, %v2192_v41  ;;  %v2194_v9 = vrot.slane %v2192_v41, 4  ;;  %v7481_v22 = vld [vmem:[%s9891_s0 + $0x6c] sm:$0xf] }
  0xc3   :  { %10081 = vst [vmem:[#allocation21_spill] sm:$0xff] %v8922_v49  ;;  %v5595_v18 = vrot.slane %v8371_v32, 9  ;;  %v2152_v50 = vrot.slane %v2150_v39, 4  ;;  %v2153_v48 = vrot.slane %v8395_v14, 5  ;;  %v2189_v40 = vsel %vm8138_vm7, %v2187_v27, %v2188_v43 }
  0xc4   :  { %10082 = vst [vmem:[#allocation23_spill] sm:$0xff] %v8926_v34  ;;  %v8936_v1 = vcombine.low %v2186_v63, %v2189_v40  ;;  %v2196_v12 = vsel %vm8138_vm7, %v2194_v9, %v2195_v55  ;;  %v2144_v14 = vsel %vm8138_vm7, %v5594_v56, %v2143_v25  ;;  %v2147_v27 = vsel %vm8138_vm7, %v2145_v29, %v2146_v15  ;;  %v7482_v56 = vld [vmem:[%s9891_s0 + $0x70] sm:$0xf]  ;;  %v7483_v55 = vld [vmem:[%s9891_s0 + $0x78] sm:$0xf]  ;;  %v10087_v9 = vld [vmem:[#allocation45_spill] sm:$0xff] }
  0xc5   :  { %v8944_v23 = vcombine.low %v2193_v20, %v2196_v12  ;;  %v2157_v63 = vrot.slane %v8418_v60, 5  ;;  %v2151_v21 = vsel %vm8138_vm7, %v5595_v18, %v2150_v39  ;;  %v2154_v61 = vsel %vm8138_vm7, %v2152_v50, %v2153_v48  ;;  %v7484_v15 = vld [vmem:[%s9891_s0 + $0x7c] sm:$0xf] }
  0xc6   :  { %6313 = vmatmul.mubr.msk.bf16.gmra.mrb[8].mxu1 %vm1000_vm4, %v8853_v44  ;;  %10083 = vst [vmem:[#allocation25_spill] sm:$0xff] %v8936_v1  ;;  %v2164_v43 = vrot.slane %v8462_v0, 5  ;;  %v8964_v25 = vcombine.low %v7481_v22, %v7482_v56  ;;  %v8968_v29 = vcombine.low %v8524_v5, %v8535_v35  ;;  %v8972_v39 = vcombine.low %v8565_v51, %v8589_v38  ;;  %v10088_v48 = vld [vmem:[#allocation48_spill] sm:$0xff]  ;;  %v10091_v56 = vld [vmem:[#allocation55_spill] sm:$0xff] }
  0xc7   :  { %6605 = vmatmul.mubr.msk.bf16.gmra.mrb[36].mxu0 %vm1000_vm4, %v8857_v6  ;;  %6316 = vmatprep.mubr.msk.bf16.mxu1 %vm1000_vm4, %v8865_v26  ;;  %10084 = vst [vmem:[#allocation27_spill] sm:$0xff] %v8944_v23  ;;  %v8976_v46 = vcombine.low %v8615_v53, %v8624_v10  ;;  %v8978_v41 = vcombine.low %v2144_v14, %v2147_v27  ;;  %v5596_v51 = vrot.slane %v8407_v52, 9  ;;  %v2159_v38 = vrot.slane %v2157_v63, 4  ;;  %v7485_v27 = vld [vmem:[%s9891_s0 + $0x84] sm:$0xf]  ;;  %v10090_v22 = vld [vmem:[#allocation56_spill] sm:$0xff] }
  0xc8   :  { %6608 = vmatprep.mubr.msk.bf16.mxu0 %vm1000_vm4, %v8868_v54  ;;  %v8986_v5 = vcombine.low %v7483_v55, %v7484_v15  ;;  %v8988_v35 = vcombine.low %v2151_v21, %v2154_v61  ;;  %v2160_v53 = vrot.slane %v8434_v45, 5  ;;  %v5597_v10 = vrot.slane %v8448_v8, 9  ;;  %v7486_v21 = vld [vmem:[%s9891_s0 + $0x88] sm:$0xf] }
  0xc9   :  { %10085 = vst [vmem:[#allocation24_spill] sm:$0xff] %v8978_v41  ;;  %v2166_v20 = vrot.slane %v2164_v43, 4  ;;  %v2167_v18 = vrot.slane %v10087_v9, 5  ;;  %v2158_v45 = vsel %vm8138_vm7, %v5596_v51, %v2157_v63  ;;  %v2171_v40 = vrot.slane %v10088_v48, 5  ;;  %v10093_v15 = vld [vmem:[#allocation46_spill] sm:$0xff] }
  0xca   :  { %10086 = vst [vmem:[#allocation67_spill] sm:$0xff] %v8988_v35  ;;  %v2161_v50 = vsel %vm8138_vm7, %v2159_v38, %v2160_v53  ;;  %v2165_v12 = vsel %vm8138_vm7, %v5597_v10, %v2164_v43  ;;  %v9017_v63 = vcombine.low %v7485_v27, %v7486_v21  ;;  %v9023_v55 = vcombine.low %v10091_v56, %v10090_v22  ;;  %v10094_v53 = vld [vmem:[#allocation50_spill] sm:$0xff]  ;;  %v9054_v27 = vld [vmem:[%s9891_s0 + $0x19c] sm:$0xf]  ;;  %v10099_v21 = vld [vmem:[#allocation65_spill] sm:$0xff] }
  0xcb   :  { %v2168_v14 = vsel %vm8138_vm7, %v2166_v20, %v2167_v18  ;;  %v9019_v61 = vcombine.low %v2158_v45, %v2161_v50  ;;  %v5598_v51 = vrot.slane %v10093_v15, 9  ;;  %v2173_v38 = vrot.slane %v2171_v40, 4  ;;  %v10095_v18 = vld [vmem:[#allocation60_spill] sm:$0xff]  ;;  %v10096_v45 = vld [vmem:[#allocation59_spill] sm:$0xff] }
  0xcc   :  { %v9025_v43 = vcombine.low %v2165_v12, %v2168_v14  ;;  %v2174_v10 = vrot.slane %v10094_v53, 5  ;;  %v9043_v50 = vcombine.low %v10096_v45, %v10095_v18  ;;  %v9049_v14 = vcombine.low %v8668_v47, %v8678_v57  ;;  %v9068_v57 = vld [vmem:[%s9891_s0 + $0x198] sm:$0xf]  ;;  %v7489_v18 = vld [vmem:[%s9891_s0 + $0xe4] sm:$0xf] }
  0xcd   :  { %10089 = vst [vmem:[#allocation45_spill] sm:$0xff] %v9019_v61  ;;  %v2172_v20 = vsel %vm8138_vm7, %v5598_v51, %v2171_v40  ;;  %v3550_v47 = vrot.slane %v9054_v27, 5  ;;  %v9073_v40 = vld [vmem:[%s9891_s0 + $0x1a0] sm:$0x1]  ;;  %v9077_v22 = vcombine.low %v10099_v21, %v8709_v16  ;;  %v9082_v56 = vld [vmem:[%s9891_s0 + $0xd8] sm:$0xf] }
  0xce   :  { %6317 = vmatmul.mubr.msk.bf16.gmra.mrb[12].mxu1 %vm1000_vm4, %v8877_v37  ;;  %10092 = vst [vmem:[#allocation48_spill] sm:$0xff] %v9025_v43  ;;  %v2175_v9 = vsel %vm8138_vm7, %v2173_v38, %v2174_v10  ;;  %10098 = vst [vmem:[#allocation55_spill] sm:$0xff] %v9073_v40  ;;  %v9087_v51 = vld [vmem:[%s9891_s0 + $0xdc] sm:$0xf]  ;;  %v5738_v53 = vrot.slane %v9068_v57, 9  ;;  %vm7531_vm8 = vmmov 0  }
  0xcf   :  { %6609 = vmatmul.mubr.msk.bf16.gmra.mrb[40].mxu0 %vm1000_vm4, %v8915_v58  ;;  %6320 = vmatprep.mubr.msk.bf16.mxu1 %vm1000_vm4, %v8885_v11  ;;  %v9045_v12 = vcombine.low %v2172_v20, %v2175_v9  ;;  %v5522_v38 = vcombine.low %v9082_v56, %v9087_v51  ;;  %v3552_v10 = vrot.slane %v3550_v47, 4  ;;  %v3553_v20 = vrot.slane %v9073_v40, 5  ;;  %v7490_v45 = vld [vmem:[%s9891_s0 + $0xe8] sm:$0xf]  ;;  %v7491_v40 = vld [vmem:[%s9891_s0 + $0xf0] sm:$0xf] }
  0xd0   :  { %6612 = vmatprep.mubr.msk.bf16.mxu0 %vm1000_vm4, %v8926_v34  ;;  %v3551_v16 = vsel %vm8138_vm7, %v5738_v53, %v3550_v47  ;;  %v9110_v21 = vcombine.low %v7489_v18, %v7490_v45  ;;  %v7492_v47 = vld [vmem:[%s9891_s0 + $0xf4] sm:$0xf]  ;;  %v10101_v45 = vld [vmem:[#allocation38_spill] sm:$0xff]  ;;  %vm5353_vm9 = vcmask 1041409  }
  0xd1   :  { %10097 = vst [vmem:[#allocation56_spill] sm:$0xff] %v9045_v12  ;;  %v3554_v9 = vsel %vm8138_vm7, %v3552_v10, %v3553_v20  ;;  %v9120_v53 = vcombine.low %v7491_v40, %v7492_v47  ;;  %v7493_v10 = vld [vmem:[%s9891_s0 + $0xfc] sm:$0xf]  ;;  %v7494_v40 = vld [vmem:[%s9891_s0 + $0x100] sm:$0xf]  ;;  %v4362_v47 = vsel %vm1097_vm0, %v10101_v45, 0 }
  0xd2   :  { %v9136_v20 = vcombine.low %v7493_v10, %v7494_v40  ;;  %v9153_v10 = vld [vmem:[%s9892_s1 + $0x10] sm:$0x3]  ;;  %v7497_v40 = vld [vmem:[%s9891_s0 + $0x114] sm:$0xf]  ;;  %v7499_v45 = vld [vmem:[%s9891_s0 + $0x120] sm:$0xf] }
  0xd6   :  { %6321 = vmatmul.mubr.msk.bf16.gmra.mrb[16].mxu1 %vm1000_vm4, %v8964_v25 }
  0xd7   :  { %6613 = vmatmul.mubr.msk.bf16.gmra.mrb[44].mxu0 %vm1000_vm4, %v8978_v41  ;;  %6324 = vmatprep.mubr.msk.bf16.mxu1 %vm1000_vm4, %v8986_v5 }
  0xd8   :  { %6616 = vmatprep.mubr.msk.bf16.mxu0 %vm1000_vm4, %v8988_v35 }
  0xde   :  { %6325 = vmatmul.mubr.msk.bf16.gmra.mrb[20].mxu1 %vm1000_vm4, %v9017_v63 }
  0xdf   :  { %6617 = vmatmul.mubr.msk.bf16.gmra.mrb[48].mxu0 %vm1000_vm4, %v9019_v61  ;;  %6328 = vmatprep.mubr.msk.bf16.mxu1 %vm1000_vm4, %v9023_v55 }
  0xe0   :  { %6620 = vmatprep.mubr.msk.bf16.mxu0 %vm1000_vm4, %v9025_v43 }
  0xe6   :  { %6329 = vmatmul.mubr.msk.bf16.gmra.mrb[24].mxu1 %vm1000_vm4, %v9043_v50 }
  0xe7   :  { %6621 = vmatmul.mubr.msk.bf16.gmra.mrb[52].mxu0 %vm1000_vm4, %v9045_v12  ;;  %6332 = vmatprep.mubr.msk.bf16.mxu1 %vm1000_vm4, %v9049_v14 }
  0xe8   :  { %6624 = vmatprep.mubr.msk.bf16.mxu0 %vm1000_vm4, %v8922_v49 }
  0xee   :  { %6333 = vmatmul.mubr.msk.bf16.gmra.mrb[28].mxu1 %vm1000_vm4, %v9077_v22 }
  0xef   :  { %6625 = vmatmul.mubr.msk.bf16.gmra.mrb[56].mxu0 %vm1000_vm4, %v8936_v1  ;;  %6336 = vmatprep.mubr.msk.bf16.mxu1 %vm1000_vm4, %v5522_v38  ;;  %v9112_v38 = vcombine.low %v3551_v16, %v3554_v9  ;;  %v7495_v16 = vld [vmem:[%s9891_s0 + $0x108] sm:$0xf]  ;;  %v7496_v9 = vld [vmem:[%s9891_s0 + $0x10c] sm:$0xf] }
  0xf0   :  { %6628 = vmatprep.mubr.msk.bf16.mxu0 %vm1000_vm4, %v8944_v23  ;;  %v9144_v18 = vcombine.low %v7495_v16, %v7496_v9  ;;  %v7498_v16 = vld [vmem:[%s9891_s0 + $0x118] sm:$0xf] }
  0xf1   :  { %10100 = vst [vmem:[#allocation46_spill] sm:$0xff] %v9112_v38  ;;  %v9169_v9 = vcombine.low %v7497_v40, %v7498_v16  ;;  %v9189_v40 = vcombine.low %v8283_v36, %v8294_v33  ;;  %v9193_v16 = vcombine.low %v8324_v30, %v8338_v13  ;;  %v9205_v36 = vcombine.low %v8371_v32, %v8380_v4  ;;  %v10105_v32 = vld [vmem:[#allocation64_spill] sm:$0xff] }
  0xf2   :  { %v9209_v33 = vcombine.low %v8407_v52, %v8418_v60  ;;  %v9221_v30 = vcombine.low %v8448_v8, %v8462_v0  ;;  %v9225_v13 = vcombine.low %v10093_v15, %v10088_v48  ;;  %v1975_v4 = vrot.slane %v10105_v32, 5  ;;  %v7501_v52 = vld [vmem:[%s9891_s0 + $0x8] sm:$0x1]  ;;  %v10106_v8 = vld [vmem:[#allocation63_spill] sm:$0xff]  ;;  %v7502_v32 = vld [vmem:[%s9891_s0 + $0xc0] sm:$0xf] }
  0xf3   :  { %10102 = vst [vmem:[#allocation50_spill] sm:$0xff] %v9193_v16  ;;  %10103 = vst [vmem:[#allocation60_spill] sm:$0xff] %v9205_v36  ;;  %v1978_v60 = vrot.slane %v7501_v52, 5  ;;  %v5570_v0 = vrot.slane %v10106_v8, 9  ;;  %v7503_v52 = vld [vmem:[%s9891_s0 + $0xc4] sm:$0xf] }
  0xf4   :  { %10104 = vst [vmem:[#allocation59_spill] sm:$0xff] %v9209_v33  ;;  %v1977_v48 = vrot.slane %v1975_v4, 4  ;;  %v9258_v8 = vcombine.low %v7502_v32, %v7503_v52  ;;  %v10109_v32 = vld [vmem:[#allocation32_spill] sm:$0xff]  ;;  %v10111_v52 = vld [vmem:[#allocation37_spill] sm:$0xff] }
  0xf5   :  { %v1976_v15 = vsel %vm8138_vm7, %v5570_v0, %v1975_v4  ;;  %v9270_v4 = vld [vmem:[%s9891_s0 + $0xcc] sm:$0xf] }
  0xf6   :  { %6337 = vmatmul.mubr.msk.bf16.gmra.mrb[32].mxu1 %vm1000_vm4, %v9110_v21 }
  0xf7   :  { %6629 = vmatmul.mubr.msk.bf16.gmra.mrb[60].mxu0 %vm1000_vm4, %v9112_v38  ;;  %6340 = vmatprep.mubr.msk.bf16.mxu1 %vm1000_vm4, %v9120_v53 }
  0xf8   :  { %6634 = vmatprep.mubr.msk.bf16.mxu0 %vm1000_vm4, %v8770_v62 }
  0xfe   :  { %6341 = vmatmul.mubr.msk.bf16.gmra.mrb[36].mxu1 %vm1000_vm4, %v9136_v20 }
  0xff   :  { %6635 = vmatmul.mubr.msk.bf16.vlgmr.msra.gmra.mrb[0].mxu0 %vm1000_vm4, %v8804_v31  ;;  %6344 = vmatprep.mubr.msk.bf16.mxu1 %vm1000_vm4, %v9144_v18 }
 0x100   :  { %6699 = vmatpush3.bf16.msra.mxu0 %v4362_v47  ;;  %6638 = vmatprep.mubr.msk.bf16.mxu0 %vm1000_vm4, %v8814_v3  ;;  %v7500_v47 = vld [vmem:[%s9891_s0 + $0x124] sm:$0xf] }
 0x101   :  { %7412 = vmatprep.subr.msk.bf16.mxu0 %vm1097_vm0, %v9153_v10  ;;  %v9177_v38 = vcombine.low %v7499_v45, %v7500_v47  ;;  %v1979_v45 = vsel %vm8138_vm7, %v1977_v48, %v1978_v60  ;;  %v9275_v60 = vld [vmem:[%s9891_s0 + $0xd0] sm:$0xf]  ;;  %v2766_v48 = vsel %vm1097_vm0, %v8832_v59, 0 }
 0x102   :  { %v5603_v47 = vcombine.low %v1976_v15, %v1979_v45  ;;  %v5775_v0 = vcombine.low %v9270_v4, %v9275_v60  ;;  %v10107_v15 = vld [vmem:[#allocation29_spill] sm:$0xff]  ;;  %v10108_v45 = vld [vmem:[#allocation30_spill] sm:$0xff]  ;;  %v10110_v59 = vld [vmem:[#allocation35_spill] sm:$0xff] }
 0x106   :  { %6345 = vmatmul.mubr.msk.bf16.gmra.mrb[40].mxu1 %vm1000_vm4, %v9169_v9 }
 0x107   :  { %6639 = vmatmul.mubr.msk.bf16.gmra.mrb[4].mxu0 %vm1000_vm4, %v8853_v44  ;;  %6348 = vmatprep.mubr.msk.bf16.mxu1 %vm1000_vm4, %v9177_v38 }
 0x108   :  { %6642 = vmatprep.mubr.msk.bf16.mxu0 %vm1000_vm4, %v8865_v26 }
 0x10e   :  { %6349 = vmatmul.mubr.msk.bf16.gmra.mrb[44].mxu1 %vm1000_vm4, %v9189_v40 }
 0x10f   :  { %6643 = vmatmul.mubr.msk.bf16.gmra.mrb[8].mxu0 %vm1000_vm4, %v8877_v37  ;;  %6352 = vmatprep.mubr.msk.bf16.mxu1 %vm1000_vm4, %v9193_v16 }
 0x110   :  { %6646 = vmatprep.mubr.msk.bf16.mxu0 %vm1000_vm4, %v8885_v11 }
 0x116   :  { %6353 = vmatmul.mubr.msk.bf16.gmra.mrb[48].mxu1 %vm1000_vm4, %v9205_v36 }
 0x117   :  { %6647 = vmatmul.mubr.msk.bf16.gmra.mrb[12].mxu0 %vm1000_vm4, %v8964_v25  ;;  %6356 = vmatprep.mubr.msk.bf16.mxu1 %vm1000_vm4, %v9209_v33 }
 0x118   :  { %6650 = vmatprep.mubr.msk.bf16.mxu0 %vm1000_vm4, %v8986_v5 }
 0x11e   :  { %6357 = vmatmul.mubr.msk.bf16.gmra.mrb[52].mxu1 %vm1000_vm4, %v9221_v30 }
 0x11f   :  { %6651 = vmatmul.mubr.msk.bf16.gmra.mrb[16].mxu0 %vm1000_vm4, %v9017_v63  ;;  %6360 = vmatprep.mubr.msk.bf16.mxu1 %vm1000_vm4, %v9225_v13 }
 0x120   :  { %6654 = vmatprep.mubr.msk.bf16.mxu0 %vm1000_vm4, %v9023_v55 }
 0x126   :  { %6361 = vmatmul.mubr.msk.bf16.gmra.mrb[56].mxu1 %vm1000_vm4, %v8968_v29 }
 0x127   :  { %6655 = vmatmul.mubr.msk.bf16.gmra.mrb[20].mxu0 %vm1000_vm4, %v9043_v50  ;;  %6364 = vmatprep.mubr.msk.bf16.mxu1 %vm1000_vm4, %v8972_v39 }
 0x128   :  { %6658 = vmatprep.mubr.msk.bf16.mxu0 %vm1000_vm4, %v9049_v14 }
 0x12e   :  { %6365 = vmatmul.mubr.msk.bf16.gmra.mrb[60].mxu1 %vm1000_vm4, %v8976_v46 }
 0x12f   :  { %6659 = vmatmul.mubr.msk.bf16.gmra.mrb[24].mxu0 %vm1000_vm4, %v9077_v22  ;;  %6370 = vmatprep.mubr.msk.bf16.mxu1 %vm1000_vm4, %v5603_v47  ;;  %v7504_v47 = vld [vmem:[%s9892_s1 + $0x8] sm:$0x3] }
 0x130   :  { %6662 = vmatprep.mubr.msk.bf16.mxu0 %vm1000_vm4, %v9258_v8 }
 0x136   :  { %6371 = vmatmul.mubr.msk.bf16.vlgmr.msra.gmra.mrb[0].mxu1 %vm1000_vm4, %v10107_v15  ;;  %v10114_v15 = vld [vmem:[#allocation44_spill] sm:$0xff] }
 0x137   :  { %6663 = vmatmul.mubr.msk.bf16.gmra.mrb[28].mxu0 %vm1000_vm4, %v5775_v0  ;;  %6374 = vmatprep.mubr.msk.bf16.mxu1 %vm1000_vm4, %v10108_v45  ;;  %v10112_v0 = vld [vmem:[#allocation39_spill] sm:$0xff] }
 0x138   :  { %6666 = vmatprep.mubr.msk.bf16.mxu0 %vm1000_vm4, %v9120_v53  ;;  %6435 = vmatpush3.bf16.msra.mxu1 %v2766_v48  ;;  %v10113_v48 = vld [vmem:[#allocation42_spill] sm:$0xff] }
 0x139   :  { %7408 = vmatprep.subr.msk.bf16.mxu1 %vm1097_vm0, %v7504_v47  ;;  %v10115_v47 = vld [vmem:[#allocation47_spill] sm:$0xff] }
 0x13e   :  { %6375 = vmatmul.mubr.msk.bf16.gmra.mrb[4].mxu1 %vm1000_vm4, %v10109_v32 }
 0x13f   :  { %6667 = vmatmul.mubr.msk.bf16.gmra.mrb[32].mxu0 %vm1000_vm4, %v9136_v20  ;;  %6378 = vmatprep.mubr.msk.bf16.mxu1 %vm1000_vm4, %v10110_v59 }
 0x140   :  { %6670 = vmatprep.mubr.msk.bf16.mxu0 %vm1000_vm4, %v9144_v18 }
 0x146   :  { %6379 = vmatmul.mubr.msk.bf16.gmra.mrb[8].mxu1 %vm1000_vm4, %v10111_v52 }
 0x147   :  { %6671 = vmatmul.mubr.msk.bf16.gmra.mrb[36].mxu0 %vm1000_vm4, %v9169_v9  ;;  %6382 = vmatprep.mubr.msk.bf16.mxu1 %vm1000_vm4, %v10112_v0  ;;  %v10116_v0 = vld [vmem:[#allocation52_spill] sm:$0xff] }
 0x148   :  { %6674 = vmatprep.mubr.msk.bf16.mxu0 %vm1000_vm4, %v9177_v38 }
 0x14e   :  { %6383 = vmatmul.mubr.msk.bf16.gmra.mrb[12].mxu1 %vm1000_vm4, %v10113_v48  ;;  %v10117_v48 = vld [vmem:[#allocation54_spill] sm:$0xff] }
 0x14f   :  { %6675 = vmatmul.mubr.msk.bf16.gmra.mrb[40].mxu0 %vm1000_vm4, %v9189_v40  ;;  %6386 = vmatprep.mubr.msk.bf16.mxu1 %vm1000_vm4, %v10114_v15  ;;  %v10118_v15 = vld [vmem:[#allocation57_spill] sm:$0xff] }
 0x150   :  { %6678 = vmatprep.mubr.msk.bf16.mxu0 %vm1000_vm4, %v9193_v16 }
 0x156   :  { %6387 = vmatmul.mubr.msk.bf16.gmra.mrb[16].mxu1 %vm1000_vm4, %v10115_v47  ;;  %v2087_v47 = vrot.slane %v9087_v51, 5 }
 0x157   :  { %6679 = vmatmul.mubr.msk.bf16.gmra.mrb[44].mxu0 %vm1000_vm4, %v9205_v36  ;;  %6390 = vmatprep.mubr.msk.bf16.mxu1 %vm1000_vm4, %v10116_v0  ;;  %v5586_v36 = vrot.slane %v9082_v56, 9 }
 0x158   :  { %6682 = vmatprep.mubr.msk.bf16.mxu0 %vm1000_vm4, %v9209_v33  ;;  %v2089_v0 = vrot.slane %v2087_v47, 4  ;;  %v7505_v33 = vld [vmem:[%s9891_s0 + $0xe0] sm:$0x1] }
 0x159   :  { %v2090_v16 = vrot.slane %v7505_v33, 5  ;;  %v2088_v56 = vsel %vm8138_vm7, %v5586_v36, %v2087_v47  ;;  %v9351_v33 = vcombine.low %v9068_v57, %v9054_v27  ;;  %v9368_v36 = vld [vmem:[%s9891_s0 + $0x1a8] sm:$0xf]  ;;  %v4748_v47 = vsel %vm1097_vm0, %v9153_v10, 0  ;;  %v10126_v10 = vld [vmem:[#allocation11_spill] sm:$0xff] }
 0x15a   :  { %10121 = vst [vmem:[#allocation38_spill] sm:$0xff] %v9368_v36 }
 0x15b   :  { %v2091_v51 = vsel %vm8138_vm7, %v2089_v0, %v2090_v16  ;;  %v9363_v16 = vld [vmem:[%s9891_s0 + $0x1a4] sm:$0xf] }
 0x15c   :  { %10120 = vst [vmem:[#allocation65_spill] sm:$0xff] %v9363_v16  ;;  %v5776_v0 = vcombine.low %v9363_v16, %v9368_v36 }
 0x15e   :  { %6391 = vmatmul.mubr.msk.bf16.gmra.mrb[20].mxu1 %vm1000_vm4, %v10117_v48  ;;  %v10119_v48 = vld [vmem:[#allocation62_spill] sm:$0xff] }
 0x15f   :  { %6683 = vmatmul.mubr.msk.bf16.gmra.mrb[48].mxu0 %vm1000_vm4, %v9221_v30  ;;  %6394 = vmatprep.mubr.msk.bf16.mxu1 %vm1000_vm4, %v10118_v15  ;;  %v5619_v15 = vcombine.low %v2088_v56, %v2091_v51  ;;  %v10123_v56 = vld [vmem:[#allocation8_spill] sm:$0xff]  ;;  %v10125_v51 = vld [vmem:[#allocation10_spill] sm:$0xff] }
 0x160   :  { %6686 = vmatprep.mubr.msk.bf16.mxu0 %vm1000_vm4, %v9225_v13 }
 0x166   :  { %6395 = vmatmul.mubr.msk.bf16.gmra.mrb[24].mxu1 %vm1000_vm4, %v10119_v48 }
 0x167   :  { %6687 = vmatmul.mubr.msk.bf16.gmra.mrb[52].mxu0 %vm1000_vm4, %v8968_v29  ;;  %6398 = vmatprep.mubr.msk.bf16.mxu1 %vm1000_vm4, %v8728_v19 }
 0x168   :  { %6690 = vmatprep.mubr.msk.bf16.mxu0 %vm1000_vm4, %v8972_v39 }
 0x16e   :  { %6399 = vmatmul.mubr.msk.bf16.gmra.mrb[28].mxu1 %vm1000_vm4, %v8735_v2 }
 0x16f   :  { %6691 = vmatmul.mubr.msk.bf16.gmra.mrb[56].mxu0 %vm1000_vm4, %v8976_v46  ;;  %6402 = vmatprep.mubr.msk.bf16.mxu1 %vm1000_vm4, %v5619_v15  ;;  %v10122_v15 = vld [vmem:[#allocation7_spill] sm:$0xff] }
 0x170   :  { %6694 = vmatprep.mubr.msk.bf16.mxu0 %vm1000_vm4, %v9351_v33 }
 0x176   :  { %6403 = vmatmul.mubr.msk.bf16.gmra.mrb[32].mxu1 %vm1000_vm4, %v8772_v17  ;;  %v10124_v17 = vld [vmem:[#allocation9_spill] sm:$0xff] }
 0x177   :  { %6695 = vmatmul.mubr.msk.bf16.gmra.mrb[60].mxu0 %vm1000_vm4, %v5776_v0  ;;  %6406 = vmatprep.mubr.msk.bf16.mxu1 %vm1000_vm4, %v8806_v24  ;;  %v10127_v0 = vld [vmem:[#allocation12_spill] sm:$0xff] }
 0x178   :  { %6700 = vmatprep.mubr.msk.bf16.mxu0 %vm1000_vm4, %v10122_v15  ;;  %v10128_v15 = vld [vmem:[#allocation13_spill] sm:$0xff] }
 0x17e   :  { %6407 = vmatmul.mubr.msk.bf16.gmra.mrb[36].mxu1 %vm1000_vm4, %v8816_v7 }
 0x17f   :  { %6701 = vmatmul.mubr.msk.bf16.vlgmr.msra.gmra.mrb[0].mxu0 %vm1000_vm4, %v10123_v56  ;;  %6410 = vmatprep.mubr.msk.bf16.mxu1 %vm1000_vm4, %v8857_v6  ;;  %v10130_v56 = vld [vmem:[#allocation15_spill] sm:$0xff] }
 0x180   :  { %6765 = vmatpush3.bf16.msra.mxu0 %v4748_v47  ;;  %6704 = vmatprep.mubr.msk.bf16.mxu0 %vm1000_vm4, %v10124_v17  ;;  %v10129_v47 = vld [vmem:[#allocation14_spill] sm:$0xff]  ;;  %v10131_v17 = vld [vmem:[#allocation16_spill] sm:$0xff] }
 0x186   :  { %6411 = vmatmul.mubr.msk.bf16.gmra.mrb[40].mxu1 %vm1000_vm4, %v8868_v54 }
 0x187   :  { %6705 = vmatmul.mubr.msk.bf16.gmra.mrb[4].mxu0 %vm1000_vm4, %v10125_v51  ;;  %6414 = vmatprep.mubr.msk.bf16.mxu1 %vm1000_vm4, %v8915_v58  ;;  %v4300_v51 = vshrl.u32 %v9270_v4, 16 }
 0x188   :  { %6708 = vmatprep.mubr.msk.bf16.mxu0 %vm1000_vm4, %v10126_v10  ;;  %v4303_v10 = vshll.u32 %v9270_v4, 16 }
 0x18e   :  { %6415 = vmatmul.mubr.msk.bf16.gmra.mrb[44].mxu1 %vm1000_vm4, %v8926_v34 }
 0x18f   :  { %6709 = vmatmul.mubr.msk.bf16.gmra.mrb[8].mxu0 %vm1000_vm4, %v10127_v0  ;;  %6418 = vmatprep.mubr.msk.bf16.mxu1 %vm1000_vm4, %v8978_v41  ;;  %v4313_v0 = vshrl.u32 %v9275_v60, 16 }
 0x190   :  { %6712 = vmatprep.mubr.msk.bf16.mxu0 %vm1000_vm4, %v10128_v15  ;;  %v10132_v15 = vld [vmem:[#allocation17_spill] sm:$0xff] }
 0x196   :  { %6419 = vmatmul.mubr.msk.bf16.gmra.mrb[48].mxu1 %vm1000_vm4, %v8988_v35  ;;  %v4315_v35 = vrot.slane %v4313_v0, 4 }
 0x197   :  { %6713 = vmatmul.mubr.msk.bf16.gmra.mrb[12].mxu0 %vm1000_vm4, %v10129_v47  ;;  %6422 = vmatprep.mubr.msk.bf16.mxu1 %vm1000_vm4, %v9019_v61  ;;  %v4309_v47 = vshll.u32 %v9275_v60, 16  ;;  %v4305_v61 = vrot.slane %v4303_v10, 5 }
 0x198   :  { %6716 = vmatprep.mubr.msk.bf16.mxu0 %vm1000_vm4, %v10130_v56  ;;  %v4302_v56 = vrot.slane %v4300_v51, 4 }
 0x19a   :  { %v4306_v51 = vor.u32 %v4305_v61, %v4302_v56 }
 0x19e   :  { %6423 = vmatmul.mubr.msk.bf16.gmra.mrb[52].mxu1 %vm1000_vm4, %v9025_v43  ;;  %v4311_v43 = vrot.slane %v4309_v47, 5  ;;  %v4307_v47 = vrot.slane %v4306_v51, 4  ;;  %v3159_v51 = vshrl.u32 %v9054_v27, 16 }
 0x19f   :  { %6717 = vmatmul.mubr.msk.bf16.gmra.mrb[16].mxu0 %vm1000_vm4, %v10131_v17  ;;  %6426 = vmatprep.mubr.msk.bf16.mxu1 %vm1000_vm4, %v9045_v12  ;;  %v9428_v17 = vld [vmem:[%s9891_s0 + $0xd4] sm:$0x1]  ;;  %v10133_v12 = vld [vmem:[#allocation18_spill] sm:$0xff] }
 0x1a0   :  { %6720 = vmatprep.mubr.msk.bf16.mxu0 %vm1000_vm4, %v10132_v15  ;;  %v10134_v15 = vld [vmem:[#allocation19_spill] sm:$0xff]  ;;  %v4316_v10 = vor.u32 %v4315_v35, %v4311_v43  ;;  %v4319_v0 = vshll.u32 %v9428_v17, 16  ;;  %v4312_v35 = vsel %vm7617_vm3, %v4307_v47, %v4311_v43  ;;  %v3161_v47 = vrot.slane %v3159_v51, 4 }
 0x1a1   :  { %v10140_v43 = vld [vmem:[#allocation31_spill] sm:$0xff] }
 0x1a2   :  { %v4317_v41 = vrot.slane %v4316_v10, 4  ;;  %v4321_v34 = vrot.slane %v4319_v0, 5 }
 0x1a4   :  { %v4322_v61 = vsel %vm7617_vm3, %v4317_v41, %v4321_v34  ;;  %v10143_v34 = vld [vmem:[#allocation36_spill] sm:$0xff]  ;;  %v3149_v41 = vshll.u32 %v9068_v57, 16 }
 0x1a5   :  { %v5810_v56 = vcombine.low %v4312_v35, %v4322_v61  ;;  %v4337_v35 = vshrl.u32 %v9368_v36, 16  ;;  %v4333_v61 = vshll.u32 %v9368_v36, 16  ;;  %v10151_v36 = vld [vmem:[#allocation58_spill] sm:$0xff] }
 0x1a6   :  { %6427 = vmatmul.mubr.msk.bf16.gmra.mrb[56].mxu1 %vm1000_vm4, %v8922_v49  ;;  %v10135_v49 = vld [vmem:[#allocation22_spill] sm:$0xff]  ;;  %v3151_v0 = vrot.slane %v3149_v41, 5 }
 0x1a7   :  { %6721 = vmatmul.mubr.msk.bf16.gmra.mrb[20].mxu0 %vm1000_vm4, %v10133_v12  ;;  %6430 = vmatprep.mubr.msk.bf16.mxu1 %vm1000_vm4, %v8936_v1  ;;  %v10136_v12 = vld [vmem:[#allocation26_spill] sm:$0xff]  ;;  %v4339_v51 = vrot.slane %v4337_v35, 4 }
 0x1a8   :  { %6724 = vmatprep.mubr.msk.bf16.mxu0 %vm1000_vm4, %v10134_v15 }
 0x1ae   :  { %6431 = vmatmul.mubr.msk.bf16.gmra.mrb[60].mxu1 %vm1000_vm4, %v8944_v23 }
 0x1af   :  { %6725 = vmatmul.mubr.msk.bf16.gmra.mrb[24].mxu0 %vm1000_vm4, %v10135_v49  ;;  %6436 = vmatprep.mubr.msk.bf16.mxu1 %vm1000_vm4, %v8757_v28  ;;  %v10138_v49 = vld [vmem:[#allocation28_spill] sm:$0xff]  ;;  %v10139_v28 = vld [vmem:[#allocation5_spill] sm:$0xff] }
 0x1b0   :  { %6728 = vmatprep.mubr.msk.bf16.mxu0 %vm1000_vm4, %v10136_v12  ;;  %v10148_v12 = vld [vmem:[#allocation51_spill] sm:$0xff] }
 0x1b6   :  { %6437 = vmatmul.mubr.msk.bf16.vlgmr.msra.gmra.mrb[0].mxu1 %vm1000_vm4, %v8770_v62  ;;  %v10141_v62 = vld [vmem:[#allocation33_spill] sm:$0xff] }
 0x1b7   :  { %6729 = vmatmul.mubr.msk.bf16.gmra.mrb[28].mxu0 %vm1000_vm4, %v5810_v56  ;;  %6440 = vmatprep.mubr.msk.bf16.mxu1 %vm1000_vm4, %v8804_v31  ;;  %v10142_v31 = vld [vmem:[#allocation34_spill] sm:$0xff] }
 0x1b8   :  { %6732 = vmatprep.mubr.msk.bf16.mxu0 %vm1000_vm4, %v10138_v49  ;;  %6890 = vmatpush3.bf16.msra.mxu1 %v10139_v28 }
 0x1be   :  { %6441 = vmatmul.mubr.msk.bf16.gmra.mrb[4].mxu1 %vm1000_vm4, %v8814_v3  ;;  %v10144_v3 = vld [vmem:[#allocation40_spill] sm:$0xff] }
 0x1bf   :  { %6733 = vmatmul.mubr.msk.bf16.gmra.mrb[32].mxu0 %vm1000_vm4, %v10140_v43  ;;  %6444 = vmatprep.mubr.msk.bf16.mxu1 %vm1000_vm4, %v8853_v44  ;;  %v10145_v44 = vld [vmem:[#allocation41_spill] sm:$0xff] }
 0x1c0   :  { %6736 = vmatprep.mubr.msk.bf16.mxu0 %vm1000_vm4, %v10141_v62 }
 0x1c6   :  { %6445 = vmatmul.mubr.msk.bf16.gmra.mrb[8].mxu1 %vm1000_vm4, %v8865_v26  ;;  %v10146_v26 = vld [vmem:[#allocation43_spill] sm:$0xff] }
 0x1c7   :  { %6737 = vmatmul.mubr.msk.bf16.gmra.mrb[36].mxu0 %vm1000_vm4, %v10142_v31  ;;  %6448 = vmatprep.mubr.msk.bf16.mxu1 %vm1000_vm4, %v8877_v37  ;;  %v10147_v37 = vld [vmem:[#allocation49_spill] sm:$0xff] }
 0x1c8   :  { %6740 = vmatprep.mubr.msk.bf16.mxu0 %vm1000_vm4, %v10143_v34 }
 0x1ce   :  { %6449 = vmatmul.mubr.msk.bf16.gmra.mrb[12].mxu1 %vm1000_vm4, %v8885_v11  ;;  %v3146_v11 = vshrl.u32 %v9068_v57, 16  ;;  %v4327_v57 = vshll.u32 %v9363_v16, 16 }
 0x1cf   :  { %6741 = vmatmul.mubr.msk.bf16.gmra.mrb[40].mxu0 %vm1000_vm4, %v10144_v3  ;;  %6452 = vmatprep.mubr.msk.bf16.mxu1 %vm1000_vm4, %v8964_v25  ;;  %v3155_v25 = vshll.u32 %v9054_v27, 16  ;;  %v10149_v27 = vld [vmem:[#allocation53_spill] sm:$0xff] }
 0x1d0   :  { %6744 = vmatprep.mubr.msk.bf16.mxu0 %vm1000_vm4, %v10145_v44  ;;  %v3148_v10 = vrot.slane %v3146_v11, 4  ;;  %v4329_v41 = vrot.slane %v4327_v57, 5 }
 0x1d2   :  { %v3152_v56 = vor.u32 %v3151_v0, %v3148_v10  ;;  %v10152_v10 = vld [vmem:[#allocation61_spill] sm:$0xff] }
 0x1d6   :  { %6453 = vmatmul.mubr.msk.bf16.gmra.mrb[16].mxu1 %vm1000_vm4, %v8986_v5  ;;  %v3157_v5 = vrot.slane %v3155_v25, 5  ;;  %v4335_v25 = vrot.slane %v4333_v61, 5 }
 0x1d7   :  { %6745 = vmatmul.mubr.msk.bf16.gmra.mrb[44].mxu0 %vm1000_vm4, %v10146_v26  ;;  %6456 = vmatprep.mubr.msk.bf16.mxu1 %vm1000_vm4, %v9017_v63  ;;  %v4324_v63 = vshrl.u32 %v9363_v16, 16  ;;  %v9511_v16 = vld [vmem:[%s9891_s0 + $0x1ac] sm:$0x1] }
 0x1d8   :  { %6748 = vmatprep.mubr.msk.bf16.mxu0 %vm1000_vm4, %v10147_v37  ;;  %v3162_v49 = vor.u32 %v3161_v47, %v3157_v5  ;;  %v4340_v47 = vor.u32 %v4339_v51, %v4335_v25 }
 0x1d9   :  { %v4326_v11 = vrot.slane %v4324_v63, 4  ;;  %v4343_v63 = vshll.u32 %v9511_v16, 16 }
 0x1da   :  { %v3163_v23 = vrot.slane %v3162_v49, 4 }
 0x1db   :  { %v4330_v0 = vor.u32 %v4329_v41, %v4326_v11  ;;  %v4345_v49 = vrot.slane %v4343_v63, 5 }
 0x1dd   :  { %v4331_v61 = vrot.slane %v4330_v0, 4 }
 0x1de   :  { %6457 = vmatmul.mubr.msk.bf16.gmra.mrb[20].mxu1 %vm1000_vm4, %v9023_v55  ;;  %v10150_v55 = vld [vmem:[#allocation55_spill] sm:$0xff] }
 0x1df   :  { %6749 = vmatmul.mubr.msk.bf16.gmra.mrb[48].mxu0 %vm1000_vm4, %v10148_v12  ;;  %6460 = vmatprep.mubr.msk.bf16.mxu1 %vm1000_vm4, %v9043_v50  ;;  %v3165_v28 = vshll.u32 %v10150_v55, 16  ;;  %v3153_v50 = vrot.slane %v3152_v56, 4  ;;  %v4341_v56 = vrot.slane %v4340_v47, 4 }
 0x1e0   :  { %6752 = vmatprep.mubr.msk.bf16.mxu0 %vm1000_vm4, %v10149_v27 }
 0x1e1   :  { %v3167_v1 = vrot.slane %v3165_v28, 5  ;;  %v3158_v57 = vsel %vm7617_vm3, %v3153_v50, %v3157_v5 }
 0x1e3   :  { %v3168_v35 = vsel %vm7617_vm3, %v3163_v23, %v3167_v1  ;;  %v4336_v1 = vsel %vm7617_vm3, %v4331_v61, %v4335_v25  ;;  %v4346_v23 = vsel %vm7617_vm3, %v4341_v56, %v4345_v49 }
 0x1e4   :  { %v5811_v5 = vcombine.low %v4336_v1, %v4346_v23  ;;  %v5884_v1 = vld [vmem:[%s9894_s3] sm:$0xff]   ;;  %v7530_v23 = vmov 0.0|0.0  }
 0x1e5   :  { %6865 = vmatprep.subr.bf16.mxu1 %v7530_v23 }
 0x1e6   :  { %6461 = vmatmul.mubr.msk.bf16.gmra.mrb[24].mxu1 %vm1000_vm4, %v9049_v14  ;;  %v9526_v14 = vcombine.low %v3158_v57, %v3168_v35 }
 0x1e7   :  { %6753 = vmatmul.mubr.msk.bf16.gmra.mrb[52].mxu0 %vm1000_vm4, %v10151_v36  ;;  %6464 = vmatprep.mubr.msk.bf16.mxu1 %vm1000_vm4, %v9077_v22  ;;  %v10153_v22 = vld [vmem:[#allocation66_spill] sm:$0xff] }
 0x1e8   :  { %6756 = vmatprep.mubr.msk.bf16.mxu0 %vm1000_vm4, %v10152_v10 }
 0x1ee   :  { %6465 = vmatmul.mubr.msk.bf16.gmra.mrb[28].mxu1 %vm1000_vm4, %v9258_v8  ;;  %v10160_v8 = vld [vmem:[#allocation47_spill] sm:$0xff] }
 0x1ef   :  { %6757 = vmatmul.mubr.msk.bf16.gmra.mrb[56].mxu0 %vm1000_vm4, %v10153_v22  ;;  %6468 = vmatprep.mubr.msk.bf16.mxu1 %vm1000_vm4, %v9110_v21  ;;  %v10154_v21 = vld [vmem:[#allocation39_spill] sm:$0xff] }
 0x1f0   :  { %6760 = vmatprep.mubr.msk.bf16.mxu0 %vm1000_vm4, %v9526_v14 }
 0x1f6   :  { %6469 = vmatmul.mubr.msk.bf16.gmra.mrb[32].mxu1 %vm1000_vm4, %v9120_v53  ;;  %v10155_v53 = vld [vmem:[#allocation50_spill] sm:$0xff] }
 0x1f7   :  { %6761 = vmatmul.mubr.msk.bf16.gmra.mrb[60].mxu0 %vm1000_vm4, %v5811_v5  ;;  %6472 = vmatprep.mubr.msk.bf16.mxu1 %vm1000_vm4, %v9136_v20  ;;  %v10156_v20 = vld [vmem:[#allocation42_spill] sm:$0xff] }
 0x1f8   :  { %6766 = vmatprep.mubr.msk.bf16.mxu0 %vm1000_vm4, %v10108_v45  ;;  %v10162_v45 = vld [vmem:[#allocation54_spill] sm:$0xff] }
 0x1fe   :  { %6473 = vmatmul.mubr.msk.bf16.gmra.mrb[36].mxu1 %vm1000_vm4, %v9144_v18  ;;  %v10157_v18 = vld [vmem:[#allocation60_spill] sm:$0xff] }
 0x1ff   :  { %6767 = vmatmul.mubr.msk.bf16.vlgmr.msra.gmra.mrb[0].mxu0 %vm1000_vm4, %v10109_v32  ;;  %6476 = vmatprep.mubr.msk.bf16.mxu1 %vm1000_vm4, %v9169_v9  ;;  %v10158_v9 = vld [vmem:[#allocation44_spill] sm:$0xff]  ;;  %v10163_v32 = vld [vmem:[#allocation57_spill] sm:$0xff] }
 0x200   :  { %6770 = vmatprep.mubr.msk.bf16.mxu0 %vm1000_vm4, %v10110_v59  ;;  %v4724_v59 = vrot.slane %v9428_v17, 5 }
 0x206   :  { %6477 = vmatmul.mubr.msk.bf16.gmra.mrb[40].mxu1 %vm1000_vm4, %v9177_v38  ;;  %v10159_v38 = vld [vmem:[#allocation59_spill] sm:$0xff] }
 0x207   :  { %6771 = vmatmul.mubr.msk.bf16.gmra.mrb[4].mxu0 %vm1000_vm4, %v10111_v52  ;;  %6480 = vmatprep.mubr.msk.bf16.mxu1 %vm1000_vm4, %v9189_v40  ;;  %v10161_v40 = vld [vmem:[#allocation52_spill] sm:$0xff]  ;;  %v10172_v52 = vld [vmem:[#allocation25_spill] sm:$0xff] }
 0x208   :  { %6774 = vmatprep.mubr.msk.bf16.mxu0 %vm1000_vm4, %v10154_v21 }
 0x20e   :  { %6481 = vmatmul.mubr.msk.bf16.gmra.mrb[44].mxu1 %vm1000_vm4, %v10155_v53 }
 0x20f   :  { %6775 = vmatmul.mubr.msk.bf16.gmra.mrb[8].mxu0 %vm1000_vm4, %v10156_v20  ;;  %6484 = vmatprep.mubr.msk.bf16.mxu1 %vm1000_vm4, %v10157_v18  ;;  %v5915_v18 = vld [vmem:[%s9894_s3 + $0x8] sm:$0xff]  }
 0x210   :  { %6778 = vmatprep.mubr.msk.bf16.mxu0 %vm1000_vm4, %v10158_v9 }
 0x216   :  { %6485 = vmatmul.mubr.msk.bf16.gmra.mrb[48].mxu1 %vm1000_vm4, %v10159_v38 }
 0x217   :  { %6779 = vmatmul.mubr.msk.bf16.gmra.mrb[12].mxu0 %vm1000_vm4, %v10160_v8  ;;  %6488 = vmatprep.mubr.msk.bf16.mxu1 %vm1000_vm4, %v9221_v30  ;;  %v4721_v30 = vrot.slane %v9275_v60, 5  ;;  %v10171_v60 = vld [vmem:[#allocation21_spill] sm:$0xff] }
 0x218   :  { %6782 = vmatprep.mubr.msk.bf16.mxu0 %vm1000_vm4, %v10161_v40 }
 0x21e   :  { %6489 = vmatmul.mubr.msk.bf16.gmra.mrb[52].mxu1 %vm1000_vm4, %v9225_v13  ;;  %v5844_v13 = vrot.slane %v9270_v4, 9 }
 0x21f   :  { %6783 = vmatmul.mubr.msk.bf16.gmra.mrb[16].mxu0 %vm1000_vm4, %v10162_v45  ;;  %6492 = vmatprep.mubr.msk.bf16.mxu1 %vm1000_vm4, %v8968_v29  ;;  %v4723_v29 = vrot.slane %v4721_v30, 4  ;;  %v5916_v45 = vld [vmem:[%s9894_s3 + $0x10] sm:$0xff]  }
 0x220   :  { %6786 = vmatprep.mubr.msk.bf16.mxu0 %vm1000_vm4, %v10163_v32 }
 0x226   :  { %6493 = vmatmul.mubr.msk.bf16.gmra.mrb[56].mxu1 %vm1000_vm4, %v8972_v39  ;;  %v10164_v39 = vld [vmem:[#allocation20_spill] sm:$0xff] }
 0x227   :  { %6787 = vmatmul.mubr.msk.bf16.gmra.mrb[20].mxu0 %vm1000_vm4, %v10119_v48  ;;  %6496 = vmatprep.mubr.msk.bf16.mxu1 %vm1000_vm4, %v8976_v46  ;;  %v4725_v46 = vsel %vm8138_vm7, %v4723_v29, %v4724_v59  ;;  %v10173_v48 = vld [vmem:[#allocation38_spill] sm:$0xff] }
 0x228   :  { %6790 = vmatprep.mubr.msk.bf16.mxu0 %vm1000_vm4, %v8728_v19  ;;  %v4722_v19 = vsel %vm8138_vm7, %v5844_v13, %v4721_v30  ;;  %v5917_v13 = vld [vmem:[%s9894_s3 + $0x18] sm:$0xff]  }
 0x229   :  { %v5847_v4 = vcombine.low %v4722_v19, %v4725_v46  ;;  %v5918_v19 = vld [vmem:[%s9894_s3 + $0x20] sm:$0xff]  }
 0x22e   :  { %6497 = vmatmul.mubr.msk.bf16.gmra.mrb[60].mxu1 %vm1000_vm4, %v9351_v33  ;;  %v4728_v33 = vrot.slane %v10173_v48, 5 }
 0x22f   :  { %6791 = vmatmul.mubr.msk.bf16.gmra.mrb[24].mxu0 %vm1000_vm4, %v8735_v2  ;;  %6538 = vmatprep.mubr.msk.bf16.mxu1 %vm1000_vm4, %v10140_v43  ;;  %v10165_v2 = vld [vmem:[#allocation23_spill] sm:$0xff]  ;;  %v4731_v43 = vrot.slane %v9511_v16, 5 }
 0x230   :  { %6794 = vmatprep.mubr.msk.bf16.mxu0 %vm1000_vm4, %v10164_v39  ;;  %v4730_v15 = vrot.slane %v4728_v33, 4 }
 0x236   :  { %6539 = vmatmul.mubr.msk.bf16.vlgmr.msra.gmra.mrb[36].mxu1 %vm1000_vm4, %v10141_v62  ;;  %v10175_v62 = vld [vmem:[#allocation27_spill] sm:$0xff] }
 0x237   :  { %6795 = vmatmul.mubr.msk.bf16.gmra.mrb[28].mxu0 %vm1000_vm4, %v5847_v4  ;;  %6542 = vmatprep.mubr.msk.bf16.mxu1 %vm1000_vm4, %v10142_v31  ;;  %v10176_v31 = vld [vmem:[#allocation46_spill] sm:$0xff]  ;;  %v9762_v4 = vld [vmem:[%s9893_s2] ss:$0 sm:$0xff] }
 0x238   :  { %6798 = vmatprep.mubr.msk.bf16.mxu0 %vm1000_vm4, %v8806_v24  ;;  %v10166_v24 = vld [vmem:[#allocation24_spill] sm:$0xff]  ;;  %6867 = vmatpush3.bf16.msra.mxu1 %v5884_v1 }
 0x239   :  { %6868 = vmatprep.subr.bf16.mxu1 %v7530_v23 }
 0x23c   :  { %6870 = vmatpush3.bf16.msra.mxu1 %v5915_v18 }
 0x23d   :  { %6871 = vmatprep.subr.bf16.mxu1 %v7530_v23 }
 0x23e   :  { %6543 = vmatmul.mubr.msk.bf16.gmra.mrb[40].mxu1 %vm1000_vm4, %v10143_v34 }
 0x23f   :  { %6799 = vmatmul.mubr.msk.bf16.gmra.mrb[32].mxu0 %vm1000_vm4, %v8816_v7  ;;  %6546 = vmatprep.mubr.msk.bf16.mxu1 %vm1000_vm4, %v10144_v3  ;;  %v10167_v7 = vld [vmem:[#allocation67_spill] sm:$0xff]  ;;  %v4732_v3 = vsel %vm8138_vm7, %v4730_v15, %v4731_v43 }
 0x240   :  { %6802 = vmatprep.mubr.msk.bf16.mxu0 %vm1000_vm4, %v8857_v6  ;;  %v10168_v6 = vld [vmem:[#allocation45_spill] sm:$0xff]  ;;  %6873 = vmatpush3.bf16.msra.mxu1 %v5916_v45  ;;  %v5920_v45 = vld [vmem:[%s9894_s3 + $0x30] sm:$0xff]  }
 0x241   :  { %6874 = vmatprep.subr.bf16.mxu1 %v7530_v23 }
 0x244   :  { %6876 = vmatpush3.bf16.msra.mxu1 %v5917_v13 }
 0x245   :  { %6877 = vmatprep.subr.bf16.mxu1 %v7530_v23 }
 0x246   :  { %6547 = vmatmul.mubr.msk.bf16.gmra.mrb[44].mxu1 %vm1000_vm4, %v10145_v44 }
 0x247   :  { %6803 = vmatmul.mubr.msk.bf16.gmra.mrb[36].mxu0 %vm1000_vm4, %v8868_v54  ;;  %6550 = vmatprep.mubr.msk.bf16.mxu1 %vm1000_vm4, %v10146_v26  ;;  %v10169_v54 = vld [vmem:[#allocation48_spill] sm:$0xff] }
 0x248   :  { %6806 = vmatprep.mubr.msk.bf16.mxu0 %vm1000_vm4, %v8915_v58  ;;  %v10170_v58 = vld [vmem:[#allocation56_spill] sm:$0xff]  ;;  %6879 = vmatpush3.bf16.msra.mxu1 %v5918_v19 }
 0x249   :  { %6880 = vmatprep.subr.bf16.mxu1 %v7530_v23 }
 0x24e   :  { %6551 = vmatmul.mubr.msk.bf16.gmra.mrb[48].mxu1 %vm1000_vm4, %v10147_v37 }
 0x24f   :  { %6807 = vmatmul.mubr.msk.bf16.gmra.mrb[40].mxu0 %vm1000_vm4, %v10165_v2  ;;  %6554 = vmatprep.mubr.msk.bf16.mxu1 %vm1000_vm4, %v10148_v12 }
 0x250   :  { %6810 = vmatprep.mubr.msk.bf16.mxu0 %vm1000_vm4, %v10166_v24 }
 0x256   :  { %6555 = vmatmul.mubr.msk.bf16.gmra.mrb[52].mxu1 %vm1000_vm4, %v10149_v27 }
 0x257   :  { %6811 = vmatmul.mubr.msk.bf16.gmra.mrb[44].mxu0 %vm1000_vm4, %v10167_v7  ;;  %6558 = vmatprep.mubr.msk.bf16.mxu1 %vm1000_vm4, %v10151_v36  ;;  %v10174_v36 = vld [vmem:[#allocation65_spill] sm:$0xff] }
 0x258   :  { %6814 = vmatprep.mubr.msk.bf16.mxu0 %vm1000_vm4, %v10168_v6  ;;  %v5845_v17 = vrot.slane %v10174_v36, 9 }
 0x25a   :  { %v4729_v34 = vsel %vm8138_vm7, %v5845_v17, %v4728_v33 }
 0x25b   :  { %v5848_v44 = vcombine.low %v4729_v34, %v4732_v3 }
 0x25e   :  { %6559 = vmatmul.mubr.msk.bf16.gmra.mrb[56].mxu1 %vm1000_vm4, %v10152_v10 }
 0x25f   :  { %6815 = vmatmul.mubr.msk.bf16.gmra.mrb[48].mxu0 %vm1000_vm4, %v10169_v54  ;;  %6562 = vmatprep.mubr.msk.bf16.mxu1 %vm1000_vm4, %v10153_v22 }
 0x260   :  { %6818 = vmatprep.mubr.msk.bf16.mxu0 %vm1000_vm4, %v10170_v58 }
 0x266   :  { %6563 = vmatmul.mubr.msk.bf16.gmra.mrb[60].mxu1 %vm1000_vm4, %v9526_v14 }
 0x267   :  { %6819 = vmatmul.mubr.msk.bf16.gmra.mrb[52].mxu0 %vm1000_vm4, %v10171_v60 }
 0x268   :  { %6822 = vmatprep.mubr.msk.bf16.mxu0 %vm1000_vm4, %v10172_v52 }
 0x26f   :  { %6823 = vmatmul.mubr.msk.bf16.gmra.mrb[56].mxu0 %vm1000_vm4, %v10175_v62 }
 0x270   :  { %6826 = vmatprep.mubr.msk.bf16.mxu0 %vm1000_vm4, %v10176_v31  ;;  %v5919_v31 = vld [vmem:[%s9894_s3 + $0x28] sm:$0xff]  }
 0x271   :  { %6882 = vmatpush3.bf16.msra.mxu1 %v5919_v31 }
 0x272   :  { %6883 = vmatprep.subr.bf16.mxu1 %v7530_v23 }
 0x275   :  { %6885 = vmatpush3.bf16.msra.mxu1 %v5920_v45 }
 0x276   :  { %6886 = vmatprep.subr.bf16.mxu1 %v7530_v23 }
 0x277   :  { %6827 = vmatmul.mubr.msk.bf16.gmra.mrb[60].mxu0 %vm1000_vm4, %v5848_v44 }
 0x289   :  { %v6438_v26 = vpop.f32.mrb[0].mxu1 }
 0x28a   :  { %v2802_v37 = vpop.f32.mrb[1].mxu1 }
 0x28b   :  { %v6439_v12 = vpop.f32.mrb[2].mxu1 }
 0x28c   :  { %v2805_v27 = vpop.f32.mrb[3].mxu1 }
 0x291   :  { %v9675_v16 = vpop.f32.mrb[4].mxu1 }
 0x292   :  { %v9677_v55 = vpop.f32.mrb[5].mxu1 }
 0x293   :  { %v9679_v28 = vpop.f32.mrb[6].mxu1 }
 0x294   :  { %v9681_v11 = vpop.f32.mrb[7].mxu1 }
 0x299   :  { %v9683_v41 = vpop.f32.mrb[8].mxu1 }
 0x29a   :  { %v9685_v25 = vpop.f32.mrb[9].mxu1 }
 0x29b   :  { %v9687_v42 = vpop.f32.mrb[10].mxu1 }
 0x29c   :  { %v9689_v51 = vpop.f32.mrb[11].mxu1 }
 0x2a1   :  { %v9691_v50 = vpop.f32.mrb[12].mxu1 }
 0x2a2   :  { %v9693_v10 = vpop.f32.mrb[13].mxu1 }
 0x2a3   :  { %v9695_v0 = vpop.f32.mrb[14].mxu1 }
 0x2a4   :  { %v9697_v47 = vpop.f32.mrb[15].mxu1 }
 0x2a9   :  { %v9699_v63 = vpop.f32.mrb[16].mxu1 }
 0x2aa   :  { %v9701_v57 = vpop.f32.mrb[17].mxu1 }
 0x2ab   :  { %v9703_v35 = vpop.f32.mrb[18].mxu1 }
 0x2ac   :  { %v9705_v14 = vpop.f32.mrb[19].mxu1 }
 0x2b1   :  { %v9707_v61 = vpop.f32.mrb[20].mxu1 }
 0x2b2   :  { %v9709_v56 = vpop.f32.mrb[21].mxu1 }
 0x2b3   :  { %v9711_v49 = vpop.f32.mrb[22].mxu1 }
 0x2b4   :  { %v9713_v22 = vpop.f32.mrb[23].mxu1 }
 0x2b9   :  { %v9719_v5 = vpop.f32.mrb[24].mxu1 }
 0x2ba   :  { %v9722_v21 = vpop.f32.mrb[25].mxu1 }
 0x2bb   :  { %v9724_v53 = vpop.f32.mrb[26].mxu1 }
 0x2bc   :  { %v9726_v20 = vpop.f32.mrb[27].mxu1 }
 0x2c1   :  { %v9732_v9 = vpop.f32.mrb[28].mxu1 }
 0x2c2   :  { %v9734_v38 = vpop.f32.mrb[29].mxu1 }
 0x2c3   :  { %v9736_v8 = vpop.f32.mrb[30].mxu1 }
 0x2c4   :  { %v9738_v40 = vpop.f32.mrb[31].mxu1 }
 0x2c9   :  { %v9744_v32 = vpop.f32.mrb[32].mxu1 }
 0x2ca   :  { %v9746_v30 = vpop.f32.mrb[33].mxu1 }
 0x2cb   :  { %v9751_v29 = vpop.f32.mrb[34].mxu1 }
 0x2cc   :  { %v9753_v59 = vpop.f32.mrb[35].mxu1 }
 0x2d2   :  { %v6768_v39 = vpop.f32.mrb[0].mxu0 }
 0x2d3   :  { %v6891_v46 = vadd.f32 %v6768_v39, %v6438_v26  ;;  %v4784_v2 = vpop.f32.mrb[1].mxu0 }
 0x2d4   :  { %v6892_v24 = vadd.f32 %v4784_v2, %v2802_v37  ;;  %v6769_v7 = vpop.f32.mrb[2].mxu0 }
 0x2d5   :  { %v6893_v6 = vadd.f32 %v6769_v7, %v6439_v12  ;;  %v4787_v54 = vpop.f32.mrb[3].mxu0  ;;  %v5112_v52 = vadd.f32 %v6891_v46, %v9762_v4 }
 0x2d6   :  { %v5110_v58 = vadd.f32 %v6892_v24, %v9762_v4  ;;  %v6894_v60 = vadd.f32 %v4787_v54, %v2805_v27 }
 0x2d7   :  { %v5113_v33 = vadd.f32 %v6893_v6, %v9762_v4  ;;  %v5176_v34 = vmax.f32 %v5112_v52, 0.0 }
 0x2d8   :  { %v5111_v48 = vadd.f32 %v6894_v60, %v9762_v4  ;;  %v5174_v36 = vmax.f32 %v5110_v58, 0.0 }
 0x2d9   :  { %v5177_v37 = vmax.f32 %v5113_v33, 0.0 }
 0x2da   :  { %v5175_v17 = vmax.f32 %v5111_v48, 0.0  ;;  %v6772_v15 = vpop.f32.mrb[4].mxu0 }
 0x2db   :  { %v6895_v43 = vadd.f32 %v6772_v15, %v9675_v16  ;;  %v4800_v62 = vpop.f32.mrb[5].mxu0 }
 0x2dc   :  { %v5238_v3 = vadd.f32 %v5175_v17, %v5174_v36  ;;  %v6896_v44 = vadd.f32 %v4800_v62, %v9677_v55  ;;  %v6773_v26 = vpop.f32.mrb[6].mxu0 }
 0x2dd   :  { %v6897_v12 = vadd.f32 %v6773_v26, %v9679_v28  ;;  %v4803_v27 = vpop.f32.mrb[7].mxu0  ;;  %v5116_v13 = vadd.f32 %v6895_v43, %v9762_v4  ;;  %v7532_v28 = vmov 0.0  }
 0x2de   :  { %v5239_v1 = vadd.f32 %v5238_v3, %v5176_v34  ;;  %v5114_v16 = vadd.f32 %v6896_v44, %v9762_v4  ;;  %v6898_v18 = vadd.f32 %v4803_v27, %v9681_v11  ;;  %6862 = vmatprep.mubr.msk.f32.mxu1 %vm7531_vm8, %v7532_v28  ;;  %v5921_v11 = vld [vmem:[%s9894_s3 + $0x38] sm:$0xff]  }
 0x2df   :  { %v5117_v2 = vadd.f32 %v6897_v12, %v9762_v4  ;;  %v5180_v58 = vmax.f32 %v5116_v13, 0.0  ;;  %6888 = vmatpush3.bf16.msra.mxu1 %v5921_v11 }
 0x2e0   :  { %v5178_v55 = vmax.f32 %v5114_v16, 0.0  ;;  %v5240_v39 = vadd.f32 %v5239_v1, %v5177_v37  ;;  %v5115_v19 = vadd.f32 %v6898_v18, %v9762_v4 }
 0x2e1   :  { %v5181_v36 = vmax.f32 %v5117_v2, 0.0 }
 0x2e2   :  { %v5241_v46 = vadd.f32 %v5240_v39, %v5178_v55  ;;  %v5179_v24 = vmax.f32 %v5115_v19, 0.0  ;;  %v6776_v7 = vpop.f32.mrb[8].mxu0 }
 0x2e3   :  { %v6899_v6 = vadd.f32 %v6776_v7, %v9683_v41  ;;  %v4816_v54 = vpop.f32.mrb[9].mxu0 }
 0x2e4   :  { %v5242_v60 = vadd.f32 %v5241_v46, %v5179_v24  ;;  %v6900_v52 = vadd.f32 %v4816_v54, %v9685_v25  ;;  %v6777_v48 = vpop.f32.mrb[10].mxu0 }
 0x2e5   :  { %v6901_v23 = vadd.f32 %v6777_v48, %v9687_v42  ;;  %v4819_v33 = vpop.f32.mrb[11].mxu0  ;;  %v5120_v62 = vadd.f32 %v6899_v6, %v9762_v4 }
 0x2e6   :  { %v5243_v17 = vadd.f32 %v5242_v60, %v5180_v58  ;;  %v5118_v15 = vadd.f32 %v6900_v52, %v9762_v4  ;;  %v6902_v43 = vadd.f32 %v4819_v33, %v9689_v51 }
 0x2e7   :  { %v5121_v25 = vadd.f32 %v6901_v23, %v9762_v4  ;;  %v5184_v12 = vmax.f32 %v5120_v62, 0.0 }
 0x2e8   :  { %v5182_v31 = vmax.f32 %v5118_v15, 0.0  ;;  %v5244_v41 = vadd.f32 %v5243_v17, %v5181_v36  ;;  %v5119_v34 = vadd.f32 %v6902_v43, %v9762_v4 }
 0x2e9   :  { %v5185_v45 = vmax.f32 %v5121_v25, 0.0 }
 0x2ea   :  { %v5245_v3 = vadd.f32 %v5244_v41, %v5182_v31  ;;  %v5183_v44 = vmax.f32 %v5119_v34, 0.0  ;;  %v6780_v26 = vpop.f32.mrb[12].mxu0 }
 0x2eb   :  { %v6903_v42 = vadd.f32 %v6780_v26, %v9691_v50  ;;  %v4832_v37 = vpop.f32.mrb[13].mxu0 }
 0x2ec   :  { %v5246_v27 = vadd.f32 %v5245_v3, %v5183_v44  ;;  %v6904_v1 = vadd.f32 %v4832_v37, %v9693_v10  ;;  %v6781_v16 = vpop.f32.mrb[14].mxu0 }
 0x2ed   :  { %v6905_v51 = vadd.f32 %v6781_v16, %v9695_v0  ;;  %v4835_v18 = vpop.f32.mrb[15].mxu0  ;;  %v5124_v19 = vadd.f32 %v6903_v42, %v9762_v4 }
 0x2ee   :  { %v5247_v13 = vadd.f32 %v5246_v27, %v5184_v12  ;;  %v5122_v55 = vadd.f32 %v6904_v1, %v9762_v4  ;;  %v6906_v39 = vadd.f32 %v4835_v18, %v9697_v47 }
 0x2ef   :  { %v5125_v2 = vadd.f32 %v6905_v51, %v9762_v4  ;;  %v5188_v6 = vmax.f32 %v5124_v19, 0.0 }
 0x2f0   :  { %v5186_v28 = vmax.f32 %v5122_v55, 0.0  ;;  %v5248_v11 = vadd.f32 %v5247_v13, %v5185_v45  ;;  %v5123_v50 = vadd.f32 %v6906_v39, %v9762_v4 }
 0x2f1   :  { %v5189_v48 = vmax.f32 %v5125_v2, 0.0 }
 0x2f2   :  { %v5249_v46 = vadd.f32 %v5248_v11, %v5186_v28  ;;  %v5187_v10 = vmax.f32 %v5123_v50, 0.0  ;;  %v6784_v24 = vpop.f32.mrb[16].mxu0 }
 0x2f3   :  { %v6907_v0 = vadd.f32 %v6784_v24, %v9699_v63  ;;  %v4848_v7 = vpop.f32.mrb[17].mxu0 }
 0x2f4   :  { %v5250_v54 = vadd.f32 %v5249_v46, %v5187_v10  ;;  %v6908_v58 = vadd.f32 %v4848_v7, %v9701_v57  ;;  %v6785_v60 = vpop.f32.mrb[18].mxu0 }
 0x2f5   :  { %v6909_v47 = vadd.f32 %v6785_v60, %v9703_v35  ;;  %v4851_v52 = vpop.f32.mrb[19].mxu0  ;;  %v5128_v17 = vadd.f32 %v6907_v0, %v9762_v4 }
 0x2f6   :  { %v5251_v23 = vadd.f32 %v5250_v54, %v5188_v6  ;;  %v5126_v33 = vadd.f32 %v6908_v58, %v9762_v4  ;;  %v6910_v36 = vadd.f32 %v4851_v52, %v9705_v14 }
 0x2f7   :  { %v5129_v31 = vadd.f32 %v6909_v47, %v9762_v4  ;;  %v5192_v3 = vmax.f32 %v5128_v17, 0.0 }
 0x2f8   :  { %v5190_v15 = vmax.f32 %v5126_v33, 0.0  ;;  %v5252_v43 = vadd.f32 %v5251_v23, %v5189_v48  ;;  %v5127_v63 = vadd.f32 %v6910_v36, %v9762_v4 }
 0x2f9   :  { %v5193_v37 = vmax.f32 %v5129_v31, 0.0 }
 0x2fa   :  { %v5253_v62 = vadd.f32 %v5252_v43, %v5190_v15  ;;  %v5191_v57 = vmax.f32 %v5127_v63, 0.0  ;;  %v6788_v41 = vpop.f32.mrb[20].mxu0 }
 0x2fb   :  { %v6911_v35 = vadd.f32 %v6788_v41, %v9707_v61  ;;  %v4864_v34 = vpop.f32.mrb[21].mxu0 }
 0x2fc   :  { %v5254_v25 = vadd.f32 %v5253_v62, %v5191_v57  ;;  %v6912_v44 = vadd.f32 %v4864_v34, %v9709_v56  ;;  %v6789_v26 = vpop.f32.mrb[22].mxu0 }
 0x2fd   :  { %v6913_v14 = vadd.f32 %v6789_v26, %v9711_v49  ;;  %v4867_v42 = vpop.f32.mrb[23].mxu0  ;;  %v5132_v16 = vadd.f32 %v6911_v35, %v9762_v4 }
 0x2fe   :  { %v5255_v12 = vadd.f32 %v5254_v25, %v5192_v3  ;;  %v5130_v27 = vadd.f32 %v6912_v44, %v9762_v4  ;;  %v6914_v1 = vadd.f32 %v4867_v42, %v9713_v22 }
 0x2ff   :  { %v5133_v13 = vadd.f32 %v6913_v14, %v9762_v4  ;;  %v5196_v19 = vmax.f32 %v5132_v16, 0.0 }
 0x300   :  { %v5194_v51 = vmax.f32 %v5130_v27, 0.0  ;;  %v5256_v18 = vadd.f32 %v5255_v12, %v5193_v37  ;;  %v5131_v61 = vadd.f32 %v6914_v1, %v9762_v4 }
 0x301   :  { %v5197_v2 = vmax.f32 %v5133_v13, 0.0 }
 0x302   :  { %v5257_v45 = vadd.f32 %v5256_v18, %v5194_v51  ;;  %v5195_v56 = vmax.f32 %v5131_v61, 0.0  ;;  %v6792_v55 = vpop.f32.mrb[24].mxu0 }
 0x303   :  { %v6915_v49 = vadd.f32 %v6792_v55, %v9719_v5  ;;  %v4880_v39 = vpop.f32.mrb[25].mxu0 }
 0x304   :  { %v5258_v28 = vadd.f32 %v5257_v45, %v5195_v56  ;;  %v6916_v11 = vadd.f32 %v4880_v39, %v9722_v21  ;;  %v6793_v50 = vpop.f32.mrb[26].mxu0 }
 0x305   :  { %v6917_v22 = vadd.f32 %v6793_v50, %v9724_v53  ;;  %v4883_v46 = vpop.f32.mrb[27].mxu0  ;;  %v5136_v7 = vadd.f32 %v6915_v49, %v9762_v4 }
 0x306   :  { %v5259_v10 = vadd.f32 %v5258_v28, %v5196_v19  ;;  %v5134_v24 = vadd.f32 %v6916_v11, %v9762_v4  ;;  %v6918_v0 = vadd.f32 %v4883_v46, %v9726_v20 }
 0x307   :  { %v5137_v21 = vadd.f32 %v6917_v22, %v9762_v4  ;;  %v5200_v36 = vmax.f32 %v5136_v7, 0.0 }
 0x308   :  { %v5198_v6 = vmax.f32 %v5134_v24, 0.0  ;;  %v5260_v54 = vadd.f32 %v5259_v10, %v5197_v2  ;;  %v5135_v5 = vadd.f32 %v6918_v0, %v9762_v4 }
 0x309   :  { %v6540_v58 = vpop.f32.mrb[36].mxu1  ;;  %v5201_v31 = vmax.f32 %v5137_v21, 0.0 }
 0x30a   :  { %v5261_v60 = vadd.f32 %v5260_v54, %v5198_v6  ;;  %v5199_v47 = vmax.f32 %v5135_v5, 0.0  ;;  %v6796_v52 = vpop.f32.mrb[28].mxu0  ;;  %v3364_v53 = vpop.f32.mrb[37].mxu1 }
 0x30b   :  { %v6919_v48 = vadd.f32 %v6796_v52, %v9732_v9  ;;  %v4896_v23 = vpop.f32.mrb[29].mxu0  ;;  %v6541_v33 = vpop.f32.mrb[38].mxu1 }
 0x30c   :  { %v5262_v17 = vadd.f32 %v5261_v60, %v5199_v47  ;;  %v6920_v20 = vadd.f32 %v4896_v23, %v9734_v38  ;;  %v6797_v15 = vpop.f32.mrb[30].mxu0  ;;  %v3367_v43 = vpop.f32.mrb[39].mxu1 }
 0x30d   :  { %v6921_v63 = vadd.f32 %v6797_v15, %v9736_v8  ;;  %v4899_v62 = vpop.f32.mrb[31].mxu0  ;;  %v5140_v34 = vadd.f32 %v6919_v48, %v9762_v4 }
 0x30e   :  { %v5263_v57 = vadd.f32 %v5262_v17, %v5200_v36  ;;  %v5138_v41 = vadd.f32 %v6920_v20, %v9762_v4  ;;  %v6922_v35 = vadd.f32 %v4899_v62, %v9738_v40 }
 0x30f   :  { %v5141_v38 = vadd.f32 %v6921_v63, %v9762_v4  ;;  %v5204_v1 = vmax.f32 %v5140_v34, 0.0 }
 0x310   :  { %v5202_v9 = vmax.f32 %v5138_v41, 0.0  ;;  %v5264_v3 = vadd.f32 %v5263_v57, %v5201_v31  ;;  %v5139_v25 = vadd.f32 %v6922_v35, %v9762_v4 }
 0x311   :  { %v6544_v44 = vpop.f32.mrb[40].mxu1  ;;  %v5205_v13 = vmax.f32 %v5141_v38, 0.0 }
 0x312   :  { %v5265_v26 = vadd.f32 %v5264_v3, %v5202_v9  ;;  %v5203_v14 = vmax.f32 %v5139_v25, 0.0  ;;  %v6800_v42 = vpop.f32.mrb[32].mxu0  ;;  %v3380_v8 = vpop.f32.mrb[41].mxu1 }
 0x313   :  { %v6923_v37 = vadd.f32 %v6800_v42, %v9744_v32  ;;  %v4912_v12 = vpop.f32.mrb[33].mxu0  ;;  %v6545_v27 = vpop.f32.mrb[42].mxu1 }
 0x314   :  { %v5266_v16 = vadd.f32 %v5265_v26, %v5203_v14  ;;  %v6924_v40 = vadd.f32 %v4912_v12, %v9746_v30  ;;  %v6801_v51 = vpop.f32.mrb[34].mxu0  ;;  %v3383_v18 = vpop.f32.mrb[43].mxu1 }
 0x315   :  { %v6925_v61 = vadd.f32 %v6801_v51, %v9751_v29  ;;  %v4915_v45 = vpop.f32.mrb[35].mxu0  ;;  %v5144_v32 = vadd.f32 %v6923_v37, %v9762_v4 }
 0x316   :  { %v5267_v56 = vadd.f32 %v5266_v16, %v5204_v1  ;;  %v5142_v55 = vadd.f32 %v6924_v40, %v9762_v4  ;;  %v6926_v49 = vadd.f32 %v4915_v45, %v9753_v59 }
 0x317   :  { %v5145_v30 = vadd.f32 %v6925_v61, %v9762_v4  ;;  %v5208_v24 = vmax.f32 %v5144_v32, 0.0 }
 0x318   :  { %v9841_v39 = vadd.f32 %v5267_v56, %v5205_v13  ;;  %v5143_v19 = vadd.f32 %v6926_v49, %v9762_v4  ;;  %v5206_v11 = vmax.f32 %v5142_v55, 0.0 }
 0x319   :  { %v6548_v28 = vpop.f32.mrb[44].mxu1  ;;  %v5209_v60 = vmax.f32 %v5145_v30, 0.0 }
 0x31a   :  { %v5207_v50 = vmax.f32 %v5143_v19, 0.0  ;;  %v6804_v22 = vpop.f32.mrb[36].mxu0  ;;  %v3396_v29 = vpop.f32.mrb[45].mxu1 }
 0x31b   :  { %v6927_v46 = vadd.f32 %v6804_v22, %v6540_v58  ;;  %v4928_v2 = vpop.f32.mrb[37].mxu0  ;;  %v6549_v10 = vpop.f32.mrb[46].mxu1 }
 0x31c   :  { %v5275_v0 = vadd.f32 %v5207_v50, %v5206_v11  ;;  %v6928_v7 = vadd.f32 %v4928_v2, %v3364_v53  ;;  %v6805_v59 = vpop.f32.mrb[38].mxu0  ;;  %v3399_v6 = vpop.f32.mrb[47].mxu1 }
 0x31d   :  { %v6929_v54 = vadd.f32 %v6805_v59, %v6541_v33  ;;  %v4931_v5 = vpop.f32.mrb[39].mxu0  ;;  %v5148_v48 = vadd.f32 %v6927_v46, %v9762_v4 }
 0x31e   :  { %v5276_v21 = vadd.f32 %v5275_v0, %v5208_v24  ;;  %v5146_v47 = vadd.f32 %v6928_v7, %v9762_v4  ;;  %v6930_v52 = vadd.f32 %v4931_v5, %v3367_v43 }
 0x31f   :  { %v5149_v15 = vadd.f32 %v6929_v54, %v9762_v4  ;;  %v5212_v41 = vmax.f32 %v5148_v48, 0.0 }
 0x320   :  { %v5210_v23 = vmax.f32 %v5146_v47, 0.0  ;;  %v5277_v36 = vadd.f32 %v5276_v21, %v5209_v60  ;;  %v5147_v58 = vadd.f32 %v6930_v52, %v9762_v4 }
 0x321   :  { %v6552_v17 = vpop.f32.mrb[48].mxu1  ;;  %v5213_v26 = vmax.f32 %v5149_v15, 0.0 }
 0x322   :  { %v5278_v20 = vadd.f32 %v5277_v36, %v5210_v23  ;;  %v5211_v53 = vmax.f32 %v5147_v58, 0.0  ;;  %v6808_v63 = vpop.f32.mrb[40].mxu0  ;;  %v3412_v62 = vpop.f32.mrb[49].mxu1 }
 0x323   :  { %v6931_v33 = vadd.f32 %v6808_v63, %v6544_v44  ;;  %v4944_v31 = vpop.f32.mrb[41].mxu0  ;;  %v6553_v57 = vpop.f32.mrb[50].mxu1 }
 0x324   :  { %v5279_v35 = vadd.f32 %v5278_v20, %v5211_v53  ;;  %v6932_v34 = vadd.f32 %v4944_v31, %v3380_v8  ;;  %v6809_v43 = vpop.f32.mrb[42].mxu0  ;;  %v3415_v9 = vpop.f32.mrb[51].mxu1 }
 0x325   :  { %v6933_v3 = vadd.f32 %v6809_v43, %v6545_v27  ;;  %v4947_v25 = vpop.f32.mrb[43].mxu0  ;;  %v5152_v37 = vadd.f32 %v6931_v33, %v9762_v4 }
 0x326   :  { %v5280_v38 = vadd.f32 %v5279_v35, %v5212_v41  ;;  %v5150_v14 = vadd.f32 %v6932_v34, %v9762_v4  ;;  %v6934_v42 = vadd.f32 %v4947_v25, %v3383_v18 }
 0x327   :  { %v5153_v51 = vadd.f32 %v6933_v3, %v9762_v4  ;;  %v5216_v55 = vmax.f32 %v5152_v37, 0.0 }
 0x328   :  { %v5214_v12 = vmax.f32 %v5150_v14, 0.0  ;;  %v5281_v1 = vadd.f32 %v5280_v38, %v5213_v26  ;;  %v5151_v44 = vadd.f32 %v6934_v42, %v9762_v4 }
 0x329   :  { %v6556_v16 = vpop.f32.mrb[52].mxu1  ;;  %v5217_v50 = vmax.f32 %v5153_v51, 0.0 }
 0x32a   :  { %v5282_v40 = vadd.f32 %v5281_v1, %v5214_v12  ;;  %v5215_v8 = vmax.f32 %v5151_v44, 0.0  ;;  %v6812_v61 = vpop.f32.mrb[44].mxu0  ;;  %v3428_v45 = vpop.f32.mrb[53].mxu1 }
 0x32b   :  { %v6935_v27 = vadd.f32 %v6812_v61, %v6548_v28  ;;  %v4960_v13 = vpop.f32.mrb[45].mxu0  ;;  %v6557_v56 = vpop.f32.mrb[54].mxu1 }
 0x32c   :  { %v5283_v49 = vadd.f32 %v5282_v40, %v5215_v8  ;;  %v6936_v32 = vadd.f32 %v4960_v13, %v3396_v29  ;;  %v6813_v18 = vpop.f32.mrb[46].mxu0  ;;  %v3431_v19 = vpop.f32.mrb[55].mxu1 }
 0x32d   :  { %v6937_v11 = vadd.f32 %v6813_v18, %v6549_v10  ;;  %v4963_v30 = vpop.f32.mrb[47].mxu0  ;;  %v5156_v24 = vadd.f32 %v6935_v27, %v9762_v4 }
 0x32e   :  { %v5284_v22 = vadd.f32 %v5283_v49, %v5216_v55  ;;  %v5154_v46 = vadd.f32 %v6936_v32, %v9762_v4  ;;  %v6938_v2 = vadd.f32 %v4963_v30, %v3399_v6 }
 0x32f   :  { %v5157_v5 = vadd.f32 %v6937_v11, %v9762_v4  ;;  %v5220_v48 = vmax.f32 %v5156_v24, 0.0 }
 0x330   :  { %v5218_v0 = vmax.f32 %v5154_v46, 0.0  ;;  %v5285_v7 = vadd.f32 %v5284_v22, %v5217_v50  ;;  %v5155_v28 = vadd.f32 %v6938_v2, %v9762_v4 }
 0x331   :  { %v6560_v59 = vpop.f32.mrb[56].mxu1  ;;  %v5221_v53 = vmax.f32 %v5157_v5, 0.0 }
 0x332   :  { %v5286_v54 = vadd.f32 %v5285_v7, %v5218_v0  ;;  %v5219_v29 = vmax.f32 %v5155_v28, 0.0  ;;  %v6816_v60 = vpop.f32.mrb[48].mxu0  ;;  %v3444_v21 = vpop.f32.mrb[57].mxu1 }
 0x333   :  { %v6939_v10 = vadd.f32 %v6816_v60, %v6552_v17  ;;  %v4976_v47 = vpop.f32.mrb[49].mxu0  ;;  %v6561_v52 = vpop.f32.mrb[58].mxu1 }
 0x334   :  { %v5287_v23 = vadd.f32 %v5286_v54, %v5219_v29  ;;  %v6940_v36 = vadd.f32 %v4976_v47, %v3412_v62  ;;  %v6817_v6 = vpop.f32.mrb[50].mxu0  ;;  %v3447_v58 = vpop.f32.mrb[59].mxu1 }
 0x335   :  { %v6941_v20 = vadd.f32 %v6817_v6, %v6553_v57  ;;  %v4979_v15 = vpop.f32.mrb[51].mxu0  ;;  %v5160_v41 = vadd.f32 %v6939_v10, %v9762_v4 }
 0x336   :  { %v5288_v63 = vadd.f32 %v5287_v23, %v5220_v48  ;;  %v5158_v33 = vadd.f32 %v6940_v36, %v9762_v4  ;;  %v6942_v31 = vadd.f32 %v4979_v15, %v3415_v9 }
 0x337   :  { %v5161_v25 = vadd.f32 %v6941_v20, %v9762_v4  ;;  %v5224_v37 = vmax.f32 %v5160_v41, 0.0 }
 0x338   :  { %v5222_v35 = vmax.f32 %v5158_v33, 0.0  ;;  %v5289_v34 = vadd.f32 %v5288_v63, %v5221_v53  ;;  %v5159_v17 = vadd.f32 %v6942_v31, %v9762_v4 }
 0x339   :  { %v6564_v43 = vpop.f32.mrb[60].mxu1  ;;  %v5225_v8 = vmax.f32 %v5161_v25, 0.0 }
 0x33a   :  { %v5290_v3 = vadd.f32 %v5289_v34, %v5222_v35  ;;  %v5223_v62 = vmax.f32 %v5159_v17, 0.0  ;;  %v6820_v26 = vpop.f32.mrb[52].mxu0  ;;  %v3460_v38 = vpop.f32.mrb[61].mxu1  ;;  %v5269_v34 = vrot.slane %v9841_v39, 4 }
 0x33b   :  { %v6943_v57 = vadd.f32 %v6820_v26, %v6556_v16  ;;  %v4992_v14 = vpop.f32.mrb[53].mxu0  ;;  %v6565_v42 = vpop.f32.mrb[62].mxu1 }
 0x33c   :  { %v5291_v12 = vadd.f32 %v5290_v3, %v5223_v62  ;;  %v6944_v1 = vadd.f32 %v4992_v14, %v3428_v45  ;;  %v6821_v9 = vpop.f32.mrb[54].mxu0  ;;  %v3463_v44 = vpop.f32.mrb[63].mxu1 }
 0x33d   :  { %v6945_v40 = vadd.f32 %v6821_v9, %v6557_v56  ;;  %v4995_v51 = vpop.f32.mrb[55].mxu0  ;;  %v5164_v55 = vadd.f32 %v6943_v57, %v9762_v4  ;;  %v5270_v57 = vadd.f32 %v5269_v34, %v9841_v39  ;;  %v5882_v39 = vld [vmem:[%s9895_s4] ss:$0 sm:$0xff] }
 0x33e   :  { %v5292_v61 = vadd.f32 %v5291_v12, %v5224_v37  ;;  %v5162_v27 = vadd.f32 %v6944_v1, %v9762_v4  ;;  %v6946_v13 = vadd.f32 %v4995_v51, %v3431_v19 }
 0x33f   :  { %v5165_v11 = vadd.f32 %v6945_v40, %v9762_v4  ;;  %v5228_v56 = vmax.f32 %v5164_v55, 0.0  ;;  %v5271_v1 = vrot.slane %v5270_v57, 2 }
 0x340   :  { %v5226_v49 = vmax.f32 %v5162_v27, 0.0  ;;  %v5293_v32 = vadd.f32 %v5292_v61, %v5225_v8  ;;  %v5163_v16 = vadd.f32 %v6946_v13, %v9762_v4 }
 0x341   :  { %v5229_v19 = vmax.f32 %v5165_v11, 0.0  ;;  %v5272_v51 = vadd.f32 %v5271_v1, %v5270_v57 }
 0x342   :  { %v5294_v18 = vadd.f32 %v5293_v32, %v5226_v49  ;;  %v5227_v30 = vmax.f32 %v5163_v16, 0.0  ;;  %v6824_v45 = vpop.f32.mrb[56].mxu0 }
 0x343   :  { %v6947_v50 = vadd.f32 %v6824_v45, %v6560_v59  ;;  %v5008_v22 = vpop.f32.mrb[57].mxu0  ;;  %v5273_v61 = vrot.slane %v5272_v51, 1 }
 0x344   :  { %v5295_v46 = vadd.f32 %v5294_v18, %v5227_v30  ;;  %v6948_v2 = vadd.f32 %v5008_v22, %v3444_v21  ;;  %v6825_v24 = vpop.f32.mrb[58].mxu0 }
 0x345   :  { %v6949_v0 = vadd.f32 %v6825_v24, %v6561_v52  ;;  %v5011_v7 = vpop.f32.mrb[59].mxu0  ;;  %v5168_v29 = vadd.f32 %v6947_v50, %v9762_v4  ;;  %v5274_v55 = vadd.f32 %v5273_v61, %v5272_v51 }
 0x346   :  { %v5296_v28 = vadd.f32 %v5295_v46, %v5228_v56  ;;  %v5166_v54 = vadd.f32 %v6948_v2, %v9762_v4  ;;  %v6950_v5 = vadd.f32 %v5011_v7, %v3447_v58 }
 0x347   :  { %v5169_v59 = vadd.f32 %v6949_v0, %v9762_v4  ;;  %v5232_v52 = vmax.f32 %v5168_v29, 0.0 }
 0x348   :  { %v5230_v60 = vmax.f32 %v5166_v54, 0.0  ;;  %v5297_v10 = vadd.f32 %v5296_v28, %v5229_v19  ;;  %v5167_v47 = vadd.f32 %v6950_v5, %v9762_v4 }
 0x349   :  { %v5233_v58 = vmax.f32 %v5169_v59, 0.0 }
 0x34a   :  { %v5298_v48 = vadd.f32 %v5297_v10, %v5230_v60  ;;  %v5231_v23 = vmax.f32 %v5167_v47, 0.0  ;;  %v6828_v36 = vpop.f32.mrb[60].mxu0 }
 0x34b   :  { %v6951_v21 = vadd.f32 %v6828_v36, %v6564_v43  ;;  %v5024_v6 = vpop.f32.mrb[61].mxu0 }
 0x34c   :  { %v5299_v20 = vadd.f32 %v5298_v48, %v5231_v23  ;;  %v6952_v15 = vadd.f32 %v5024_v6, %v3460_v38  ;;  %v6829_v53 = vpop.f32.mrb[62].mxu0 }
 0x34d   :  { %v6953_v63 = vadd.f32 %v6829_v53, %v6565_v42  ;;  %v5027_v33 = vpop.f32.mrb[63].mxu0  ;;  %v5172_v17 = vadd.f32 %v6951_v21, %v9762_v4 }
 0x34e   :  { %v5300_v31 = vadd.f32 %v5299_v20, %v5232_v52  ;;  %v5170_v41 = vadd.f32 %v6952_v15, %v9762_v4  ;;  %v6954_v35 = vadd.f32 %v5027_v33, %v3463_v44 }
 0x34f   :  { %v5173_v26 = vadd.f32 %v6953_v63, %v9762_v4  ;;  %v5236_v14 = vmax.f32 %v5172_v17, 0.0 }
 0x350   :  { %v5234_v3 = vmax.f32 %v5170_v41, 0.0  ;;  %v5301_v25 = vadd.f32 %v5300_v31, %v5233_v58  ;;  %v5171_v43 = vadd.f32 %v6954_v35, %v9762_v4 }
 0x351   :  { %v5237_v37 = vmax.f32 %v5173_v26, 0.0 }
 0x352   :  { %v5302_v62 = vadd.f32 %v5301_v25, %v5234_v3  ;;  %v5235_v38 = vmax.f32 %v5171_v43, 0.0 }
 0x354   :  { %v5303_v42 = vadd.f32 %v5302_v62, %v5235_v38 }
 0x356   :  { %v5304_v12 = vadd.f32 %v5303_v42, %v5236_v14 }
 0x358   :  { %v5305_v9 = vadd.f32 %v5304_v12, %v5237_v37 }
 0x35a   :  { %v5306_v44 = vrot.slane %v5305_v9, 4 }
 0x35c   :  { %v5307_v40 = vadd.f32 %v5306_v44, %v5305_v9 }
 0x35e   :  { %v5308_v8 = vrot.slane %v5307_v40, 2 }
 0x360   :  { %v5309_v27 = vadd.f32 %v5308_v8, %v5307_v40 }
 0x362   :  { %v5310_v13 = vrot.slane %v5309_v27, 1 }
 0x364   :  { %v5311_v49 = vadd.f32 %v5310_v13, %v5309_v27 }
 0x366   :  { %v5354_v4 = vsel %vm5353_vm9, %v5311_v49, %v5274_v55 }
 0x367   :  { %6863 = vmatmul.mubr.f32.vlgmr.msra.gmra.mrb[64].mxu1 %v5354_v4 }
 0x43a   :  { %v5422_v32 = vpop.f32.mrb[64].mxu1 }
 0x43b   :  { %v5423_v16 = vadd.f32 %v5882_v39, %v5422_v32  ;;  %v6864_v18 = vpop.f32.mrb[65].mxu1 }
 0x43d   :  { %5426 = vst [vmem:[#allocation2] sm:$0x3] %v5423_v16 }
 0x43e   :  { %7517 = shalt.err (!%p7514_p4)
}
 0x43f   :  { %s7518_s28 = scalar_lea.hbm %s9896_s5, 32 }
 0x440   :  { %p7519_p5 = scmp.ne.s32.totalorder %s9896_s5, %s7518_s28  ;;  %p7522_p6 = scmp.lt.u32.totalorder %s7518_s28, %s9896_s5 }
 0x442   :  { %p7524_p7 = pnand %p7522_p6, %p7519_p5 }
 0x444   :  { %7527 = shalt.err (!%p7524_p7)
}
 0x445   :  { %5436 = dma.vmem_to_hbm [thread:$0]  %s5434_s24, 32, %s9896_s5, [#allocation3]  }
 0x446   :  { %7528 = dma.done.wait [#allocation3], 32  }
 0x447   :  { %7529 = vsyncadd [#allocation3], 4294967264 }
 0x448   :  { %5440 = vsyncpa [#allocation3], 1 }

</bundles_post_ra>
